<compile_context>
chip_gen: v7x
topology: tpu7x:2x2x1
jax: 0.10.0
libtpu: 0.0.40
codegen_flags: <defaults>
</compile_context>

<pallas_src>
import math
import numpy as np
import jax
import jax.numpy as jnp
from jax import lax
from jax.experimental import pallas as pl
from jax.experimental.pallas import tpu as pltpu

N_INPUT = 82
N_HID = 24          # self.n
DIM_K = 4
DIM_V = 18
N_HEADS = 2
DK = DIM_K // N_HEADS   # 2
DV = DIM_V // N_HEADS   # 9
N_OUT = 2
NORM_FACT = 1.0 / math.sqrt(DK)   # 1/sqrt(dim_k // num_heads)

# Packed-weight row layout (consumed groups start on 8-sublane boundaries).
_QKV_ROW0 = 24            # fused q/kdiff/v block starts here (8-aligned)
_QKV_ROWS = 40            # q0(2) q1(2) kd(2) pad(2) | v0(9) pad(7) | v1(9) pad(7)
_W5_ROW0 = _QKV_ROW0 + _QKV_ROWS    # 64 (8-aligned)
_WPACK_ROWS = 72          # multiple of 8
_WPACK_COLS = 128         # one lane-width wide
_BPACK_ROWS = 32          # b1 in rows 0:24, halved class-diff bias at row 24


def _gelu_exact(x):
    # torch.nn.functional.gelu default (approximate='none'): 0.5*x*(1+erf(x/sqrt(2)))
    # (review: tanh-approx GELU would be cheaper, but it changes module semantics)
    return 0.5 * x * (1.0 + lax.erf(x * (1.0 / math.sqrt(2.0))))


def transformer_kernel(x_ref, wpack_ref, bpack_ref, out_ref):
    # x block in natural (tb, 82) layout; cast to bf16 for single-pass MXU.
    xb = x_ref[...].astype(jnp.bfloat16)                               # (tb, 82)

    # ---- fc1 + GELU ----------------------------------------------------------
    w1 = wpack_ref[0:N_HID, 0:N_INPUT]                                 # (24, 82) bf16
    b1 = bpack_ref[0:N_HID, :]                                         # (24, 1)  f32
    # (24,82) x (tb,82) contracted on dim 1 of both -> (24, tb); the input
    # "transpose" is absorbed by MXU operand staging / idle XLU slot.
    h = lax.dot_general(w1, xb, (((1,), (1,)), ((), ())),
                        preferred_element_type=jnp.float32)            # (24, tb) f32
    h = _gelu_exact(h + b1)
    # TODO(synk): Dropout(p=0.05) is identity in eval mode; training-mode
    #             random masking is not implemented (inference kernel).

    # ---- fused q / kdiff / v projection (one MXU matmul) ---------------------
    wqkv = wpack_ref[_QKV_ROW0:_QKV_ROW0 + _QKV_ROWS, 0:N_HID]         # (40, 24) bf16
    qkv = jnp.dot(wqkv, h.astype(jnp.bfloat16),
                  preferred_element_type=jnp.float32)                  # (40, tb) f32

    q0 = qkv[0:2]             # head-0 query                            (2, tb)
    q1 = qkv[2:4]             # head-1 query
    kd = qkv[4:6]             # (k_head0 - k_head1) * 0.5 * norm_fact (host-folded)
    v0 = qkv[8:17]            # head-0 value (8-sublane-aligned start)  (9, tb)
    v1 = qkv[24:33]           # head-1 value (8-sublane-aligned start)

    # 2-way softmax over keys == sigmoid of the score difference; scale and the
    # sigmoid's 1/2 are folded into kd, so this is just tanh on the EUP.
    p0 = 0.5 * (jnp.tanh(jnp.sum(q0 * kd, axis=0, keepdims=True)) + 1.0)   # (1, tb)
    p1 = 0.5 * (jnp.tanh(jnp.sum(q1 * kd, axis=0, keepdims=True)) + 1.0)

    att0 = p0 * v0 + (1.0 - p0) * v1                                   # (9, tb)
    att1 = p1 * v0 + (1.0 - p1) * v1

    # ---- GELU -> fc5 (head interleave + class difference folded on host) -----
    g0 = _gelu_exact(att0).astype(jnp.bfloat16)
    g1 = _gelu_exact(att1).astype(jnp.bfloat16)
    w5d0 = wpack_ref[_W5_ROW0:_W5_ROW0 + 1, 0:DV]                      # (1, 9) bf16
    w5d1 = wpack_ref[_W5_ROW0 + 1:_W5_ROW0 + 2, 0:DV]
    bd = bpack_ref[N_HID:N_HID + 1, :]                                 # (1, 1) f32
    z = (jnp.dot(w5d0, g0, preferred_element_type=jnp.float32) +
         jnp.dot(w5d1, g1, preferred_element_type=jnp.float32) + bd)   # (1, tb)

    # Final 2-class softmax == sigmoid of the (pre-halved) logit difference.
    p_cls0 = 0.5 * (jnp.tanh(z) + 1.0)
    out_ref[0:1, :] = p_cls0.astype(out_ref.dtype)
    out_ref[1:2, :] = (1.0 - p_cls0).astype(out_ref.dtype)


def pack_params(params, mxu_dtype=jnp.bfloat16):
    """Torch-layout params -> one packed bf16 weight slab + one f32 bias slab."""
    W1, b1, Wq, Wk, Wv, W5, b5 = params

    # Fused projection sub-block (40, 24): q0,q1,kdiff in rows 0:6; v0 at 8:17;
    # v1 at 24:33 (value groups start on 8-sublane boundaries).
    kd = (Wk[0:DK] - Wk[DK:2 * DK]) * (0.5 * NORM_FACT)
    wqkv = jnp.zeros((_QKV_ROWS, N_HID), jnp.float32)
    wqkv = wqkv.at[0:2 * DK].set(Wq)
    wqkv = wqkv.at[2 * DK:3 * DK].set(kd)
    wqkv = wqkv.at[8:8 + DV].set(Wv[0:DV])
    wqkv = wqkv.at[24:24 + DV].set(Wv[DV:2 * DV])

    # fc5: att.transpose(1,2).reshape interleaves heads (even cols -> head 0),
    # and the 2-class softmax only needs the halved row difference.
    w5d = 0.5 * (W5[0] - W5[1])                                        # (18,)

    wpack = jnp.zeros((_WPACK_ROWS, _WPACK_COLS), jnp.float32)
    wpack = wpack.at[0:N_HID, 0:N_INPUT].set(W1)
    wpack = wpack.at[_QKV_ROW0:_QKV_ROW0 + _QKV_ROWS, 0:N_HID].set(wqkv)
    wpack = wpack.at[_W5_ROW0, 0:DV].set(w5d[0::2])        # acts on head 0
    wpack = wpack.at[_W5_ROW0 + 1, 0:DV].set(w5d[1::2])    # acts on head 1
    wpack = wpack.astype(mxu_dtype)

    bpack = jnp.zeros((_BPACK_ROWS, 1), jnp.float32)
    bpack = bpack.at[0:N_HID, 0].set(b1)
    bpack = bpack.at[N_HID, 0].set(0.5 * (b5[0] - b5[1]))
    return wpack, bpack


def _round_up(n, m):
    return ((n + m - 1) // m) * m


def transformer_forward(x, params, *, tb=2048):
    """x: (batch, 82) float32 (or bfloat16) -> (batch, 2) softmax probabilities.

    Shipping x already as bfloat16 halves the kernel's dominant HBM traffic
    (the in-kernel cast then becomes a no-op).
    """
    batch = x.shape[0]
    assert x.shape[1] == N_INPUT

    # Lane axis is 128 wide; clamp the tile so small batches don't over-pad and
    # large batches use fat tiles (per-step overhead dominates small tiles).
    tb = min(tb, _round_up(batch, 128))
    tb = max(128, _round_up(tb, 128))
    padded = _round_up(batch, tb)
    if padded != batch:                       # pad pass only for ragged batches
        x = jnp.pad(x, ((0, padded - batch), (0, 0)))

    wpack, bpack = pack_params(params)

    outT = pl.pallas_call(
        transformer_kernel,
        out_shape=jax.ShapeDtypeStruct((N_OUT, padded), jnp.float32),
        grid_spec=pltpu.PrefetchScalarGridSpec(
            num_scalar_prefetch=0,
            grid=(padded // tb,),
            in_specs=[
                pl.BlockSpec((tb, N_INPUT), lambda i: (i, 0)),   # x, natural layout
                pl.BlockSpec(wpack.shape, lambda i: (0, 0)),     # packed weights
                pl.BlockSpec(bpack.shape, lambda i: (0, 0)),     # packed biases
            ],
            out_specs=pl.BlockSpec((N_OUT, tb), lambda i: (0, i)),
        ),
        compiler_params=pltpu.CompilerParams(
            dimension_semantics=("parallel",)),   # v7x: shard grid across both TCs
    )(x, wpack, bpack)

    return outT[:, :batch].T                      # (batch, 2); tiny host transpose


def init_params(key):
    """Deterministic init mimicking nn.Linear's U(-1/sqrt(fan_in), 1/sqrt(fan_in)).
    Weights kept in torch (out_features, in_features) layout."""
    def linear(key, fan_out, fan_in, bias=True):
        k1, k2 = jax.random.split(key)
        bound = 1.0 / math.sqrt(fan_in)
        w = jax.random.uniform(k1, (fan_out, fan_in), jnp.float32, -bound, bound)
        if bias:
            b = jax.random.uniform(k2, (fan_out,), jnp.float32, -bound, bound)
            return w, b
        return w

    ks = jax.random.split(key, 5)
    W1, b1 = linear(ks[0], N_HID, N_INPUT)
    Wq = linear(ks[1], DIM_K, N_HID, bias=False)
    Wk = linear(ks[2], DIM_K, N_HID, bias=False)
    Wv = linear(ks[3], DIM_V, N_HID, bias=False)
    W5, b5 = linear(ks[4], N_OUT, DIM_V)
    return (W1, b1, Wq, Wk, Wv, W5, b5)


def reference_forward(x, params):
    """Pure-JAX f32 reference mirroring the PyTorch forward (eval mode)."""
    W1, b1, Wq, Wk, Wv, W5, b5 = params
    x1 = jax.nn.gelu(x @ W1.T + b1, approximate=False)
    batch = x1.shape[0]
    q = (x1 @ Wq.T).reshape(batch, N_HEADS, DK)
    k = (x1 @ Wk.T).reshape(batch, N_HEADS, DK)
    v = (x1 @ Wv.T).reshape(batch, N_HEADS, DV)
    dist = jnp.einsum('bid,bjd->bij', q, k) * NORM_FACT
    dist = jax.nn.softmax(dist, axis=-1)
    att = jnp.einsum('bij,bjd->bid', dist, v)
    att = jnp.transpose(att, (0, 2, 1)).reshape(batch, DIM_V)
    x2 = jax.nn.gelu(att, approximate=False)
    return jax.nn.softmax(x2 @ W5.T + b5, axis=1)


if __name__ == "__main__":
    key = jax.random.PRNGKey(0)
    k_param, k_x = jax.random.split(key)
    params = init_params(k_param)

    # 4 grid steps at the default tb=2048 -> >=2 steps per v7x TensorCore, so
    # the input DMA pipelines across steps and both TCs get work.
    batch = 8192
    x = jax.random.normal(k_x, (batch, N_INPUT), jnp.float32)

    out = transformer_forward(x, params)
    out = jax.block_until_ready(out)

    ref = reference_forward(x, params)
    # Tolerance loosened vs the f32 reference because the kernel uses bf16 MXU
    # operands (f32 accumulation); observed deviation is a few 1e-3 on [0,1] probs.
    np.testing.assert_allclose(np.asarray(out), np.asarray(ref), rtol=2e-2, atol=2e-2)

    print("KERNEL_OK")
</pallas_src>

<mosaic_0001>
module attributes {stable_mosaic.version = 11 : i64} {
  func.func @transformer_kernel(%arg0: i32, %arg1: memref<2048x82xf32, #tpu.memory_space<vmem>>, %arg2: memref<72x128xbf16, #tpu.memory_space<vmem>>, %arg3: memref<32x1xf32, #tpu.memory_space<vmem>>, %arg4: memref<2x2048xf32, #tpu.memory_space<vmem>>) attributes {dimension_semantics = [#tpu.dimension_semantics<parallel>], iteration_bounds = array<i64: 4>, scalar_prefetch = 0 : i64, scratch_operands = 0 : i64, tpu.core_type = #tpu.core_type<tc>, window_params = [{transform_indices = @transform_0, window_bounds = array<i64: 2048, 82>}, {pipeline_mode = #tpu.pipeline_mode<synchronous>, transform_indices = @transform_1, window_bounds = array<i64: 72, 128>}, {pipeline_mode = #tpu.pipeline_mode<synchronous>, transform_indices = @transform_2, window_bounds = array<i64: 32, 1>}, {transform_indices = @transform_3, window_bounds = array<i64: 2, 2048>}]} {
    %c0 = arith.constant 0 : index
    %c0_0 = arith.constant 0 : index
    %0 = vector.load %arg1[%c0, %c0_0] : memref<2048x82xf32, #tpu.memory_space<vmem>>, vector<2048x82xf32>
    %1 = arith.truncf %0 : vector<2048x82xf32> to vector<2048x82xbf16>
    %c0_1 = arith.constant 0 : index
    %c0_2 = arith.constant 0 : index
    %2 = vector.load %arg2[%c0_1, %c0_2] : memref<72x128xbf16, #tpu.memory_space<vmem>>, vector<24x82xbf16>
    %c0_3 = arith.constant 0 : index
    %c0_4 = arith.constant 0 : index
    %3 = vector.load %arg3[%c0_3, %c0_4] : memref<32x1xf32, #tpu.memory_space<vmem>>, vector<24x1xf32>
    %cst = arith.constant dense<0.000000e+00> : vector<24x2048xf32>
    %4 = tpu.matmul %2, %1, %cst {dimension_numbers = #tpu.dot_dimension_numbers<[1], [1], [0], [0], [0, 0, 1, 0], [], []>} : vector<24x82xbf16>, vector<2048x82xbf16>, vector<24x2048xf32> -> vector<24x2048xf32>
    %5 = vector.broadcast %3 : vector<24x1xf32> to vector<24x2048xf32>
    %6 = arith.addf %4, %5 : vector<24x2048xf32>
    %cst_5 = arith.constant 5.000000e-01 : f32
    %7 = vector.broadcast %cst_5 : f32 to vector<24x2048xf32>
    %8 = arith.mulf %7, %6 : vector<24x2048xf32>
    %cst_6 = arith.constant 0.707106769 : f32
    %9 = vector.broadcast %cst_6 : f32 to vector<24x2048xf32>
    %10 = arith.mulf %6, %9 : vector<24x2048xf32>
    %11 = math.erf %10 : vector<24x2048xf32>
    %cst_7 = arith.constant 1.000000e+00 : f32
    %12 = vector.broadcast %cst_7 : f32 to vector<24x2048xf32>
    %13 = arith.addf %12, %11 : vector<24x2048xf32>
    %14 = arith.mulf %8, %13 : vector<24x2048xf32>
    %c24 = arith.constant 24 : index
    %c0_8 = arith.constant 0 : index
    %15 = vector.load %arg2[%c24, %c0_8] : memref<72x128xbf16, #tpu.memory_space<vmem>>, vector<40x24xbf16>
    %16 = arith.truncf %14 : vector<24x2048xf32> to vector<24x2048xbf16>
    %cst_9 = arith.constant dense<0.000000e+00> : vector<40x2048xf32>
    %17 = tpu.matmul %15, %16, %cst_9 {dimension_numbers = #tpu.dot_dimension_numbers<[1], [0], [0], [1], [0, 0, 1, 1], [], []>} : vector<40x24xbf16>, vector<24x2048xbf16>, vector<40x2048xf32> -> vector<40x2048xf32>
    %18 = vector.extract_strided_slice %17 {offsets = [0, 0], sizes = [2, 2048], strides = [1, 1]} : vector<40x2048xf32> to vector<2x2048xf32>
    %19 = vector.extract_strided_slice %17 {offsets = [2, 0], sizes = [2, 2048], strides = [1, 1]} : vector<40x2048xf32> to vector<2x2048xf32>
    %20 = vector.extract_strided_slice %17 {offsets = [4, 0], sizes = [2, 2048], strides = [1, 1]} : vector<40x2048xf32> to vector<2x2048xf32>
    %21 = vector.extract_strided_slice %17 {offsets = [8, 0], sizes = [9, 2048], strides = [1, 1]} : vector<40x2048xf32> to vector<9x2048xf32>
    %22 = vector.extract_strided_slice %17 {offsets = [24, 0], sizes = [9, 2048], strides = [1, 1]} : vector<40x2048xf32> to vector<9x2048xf32>
    %23 = arith.mulf %18, %20 : vector<2x2048xf32>
    %cst_10 = arith.constant dense<0.000000e+00> : vector<2048xf32>
    %24 = vector.multi_reduction <add>, %23, %cst_10 [0] : vector<2x2048xf32> to vector<2048xf32>
    %25 = vector.shape_cast %24 : vector<2048xf32> to vector<1x2048xf32>
    %26 = math.tanh %25 : vector<1x2048xf32>
    %cst_11 = arith.constant 1.000000e+00 : f32
    %27 = vector.broadcast %cst_11 : f32 to vector<1x2048xf32>
    %28 = arith.addf %26, %27 : vector<1x2048xf32>
    %cst_12 = arith.constant 5.000000e-01 : f32
    %29 = vector.broadcast %cst_12 : f32 to vector<1x2048xf32>
    %30 = arith.mulf %29, %28 : vector<1x2048xf32>
    %31 = arith.mulf %19, %20 : vector<2x2048xf32>
    %cst_13 = arith.constant dense<0.000000e+00> : vector<2048xf32>
    %32 = vector.multi_reduction <add>, %31, %cst_13 [0] : vector<2x2048xf32> to vector<2048xf32>
    %33 = vector.shape_cast %32 : vector<2048xf32> to vector<1x2048xf32>
    %34 = math.tanh %33 : vector<1x2048xf32>
    %cst_14 = arith.constant 1.000000e+00 : f32
    %35 = vector.broadcast %cst_14 : f32 to vector<1x2048xf32>
    %36 = arith.addf %34, %35 : vector<1x2048xf32>
    %cst_15 = arith.constant 5.000000e-01 : f32
    %37 = vector.broadcast %cst_15 : f32 to vector<1x2048xf32>
    %38 = arith.mulf %37, %36 : vector<1x2048xf32>
    %39 = vector.broadcast %30 : vector<1x2048xf32> to vector<9x2048xf32>
    %40 = arith.mulf %39, %21 : vector<9x2048xf32>
    %cst_16 = arith.constant 1.000000e+00 : f32
    %41 = vector.broadcast %cst_16 : f32 to vector<1x2048xf32>
    %42 = arith.subf %41, %30 : vector<1x2048xf32>
    %43 = vector.broadcast %42 : vector<1x2048xf32> to vector<9x2048xf32>
    %44 = arith.mulf %43, %22 : vector<9x2048xf32>
    %45 = arith.addf %40, %44 : vector<9x2048xf32>
    %46 = vector.broadcast %38 : vector<1x2048xf32> to vector<9x2048xf32>
    %47 = arith.mulf %46, %21 : vector<9x2048xf32>
    %cst_17 = arith.constant 1.000000e+00 : f32
    %48 = vector.broadcast %cst_17 : f32 to vector<1x2048xf32>
    %49 = arith.subf %48, %38 : vector<1x2048xf32>
    %50 = vector.broadcast %49 : vector<1x2048xf32> to vector<9x2048xf32>
    %51 = arith.mulf %50, %22 : vector<9x2048xf32>
    %52 = arith.addf %47, %51 : vector<9x2048xf32>
    %cst_18 = arith.constant 5.000000e-01 : f32
    %53 = vector.broadcast %cst_18 : f32 to vector<9x2048xf32>
    %54 = arith.mulf %53, %45 : vector<9x2048xf32>
    %cst_19 = arith.constant 0.707106769 : f32
    %55 = vector.broadcast %cst_19 : f32 to vector<9x2048xf32>
    %56 = arith.mulf %45, %55 : vector<9x2048xf32>
    %57 = math.erf %56 : vector<9x2048xf32>
    %cst_20 = arith.constant 1.000000e+00 : f32
    %58 = vector.broadcast %cst_20 : f32 to vector<9x2048xf32>
    %59 = arith.addf %58, %57 : vector<9x2048xf32>
    %60 = arith.mulf %54, %59 : vector<9x2048xf32>
    %61 = arith.truncf %60 : vector<9x2048xf32> to vector<9x2048xbf16>
    %cst_21 = arith.constant 5.000000e-01 : f32
    %62 = vector.broadcast %cst_21 : f32 to vector<9x2048xf32>
    %63 = arith.mulf %62, %52 : vector<9x2048xf32>
    %cst_22 = arith.constant 0.707106769 : f32
    %64 = vector.broadcast %cst_22 : f32 to vector<9x2048xf32>
    %65 = arith.mulf %52, %64 : vector<9x2048xf32>
    %66 = math.erf %65 : vector<9x2048xf32>
    %cst_23 = arith.constant 1.000000e+00 : f32
    %67 = vector.broadcast %cst_23 : f32 to vector<9x2048xf32>
    %68 = arith.addf %67, %66 : vector<9x2048xf32>
    %69 = arith.mulf %63, %68 : vector<9x2048xf32>
    %70 = arith.truncf %69 : vector<9x2048xf32> to vector<9x2048xbf16>
    %c64 = arith.constant 64 : index
    %c0_24 = arith.constant 0 : index
    %71 = vector.load %arg2[%c64, %c0_24] : memref<72x128xbf16, #tpu.memory_space<vmem>>, vector<1x9xbf16>
    %c65 = arith.constant 65 : index
    %c0_25 = arith.constant 0 : index
    %72 = vector.load %arg2[%c65, %c0_25] : memref<72x128xbf16, #tpu.memory_space<vmem>>, vector<1x9xbf16>
    %c24_26 = arith.constant 24 : index
    %c0_27 = arith.constant 0 : index
    %73 = vector.load %arg3[%c24_26, %c0_27] : memref<32x1xf32, #tpu.memory_space<vmem>>, vector<1x1xf32>
    %cst_28 = arith.constant dense<0.000000e+00> : vector<1x2048xf32>
    %74 = tpu.matmul %71, %61, %cst_28 {dimension_numbers = #tpu.dot_dimension_numbers<[1], [0], [0], [1], [0, 0, 1, 1], [], []>} : vector<1x9xbf16>, vector<9x2048xbf16>, vector<1x2048xf32> -> vector<1x2048xf32>
    %cst_29 = arith.constant dense<0.000000e+00> : vector<1x2048xf32>
    %75 = tpu.matmul %72, %70, %cst_29 {dimension_numbers = #tpu.dot_dimension_numbers<[1], [0], [0], [1], [0, 0, 1, 1], [], []>} : vector<1x9xbf16>, vector<9x2048xbf16>, vector<1x2048xf32> -> vector<1x2048xf32>
    %76 = arith.addf %74, %75 : vector<1x2048xf32>
    %77 = vector.broadcast %73 : vector<1x1xf32> to vector<1x2048xf32>
    %78 = arith.addf %76, %77 : vector<1x2048xf32>
    %79 = math.tanh %78 : vector<1x2048xf32>
    %cst_30 = arith.constant 1.000000e+00 : f32
    %80 = vector.broadcast %cst_30 : f32 to vector<1x2048xf32>
    %81 = arith.addf %79, %80 : vector<1x2048xf32>
    %cst_31 = arith.constant 5.000000e-01 : f32
    %82 = vector.broadcast %cst_31 : f32 to vector<1x2048xf32>
    %83 = arith.mulf %82, %81 : vector<1x2048xf32>
    %c0_32 = arith.constant 0 : index
    %c0_33 = arith.constant 0 : index
    %84 = vector.load %arg4[%c0_32, %c0_33] : memref<2x2048xf32, #tpu.memory_space<vmem>>, vector<1x2048xf32>
    tpu.vector_store %arg4[%c0_32, %c0_33], %83 {strides = array<i32>} : memref<2x2048xf32, #tpu.memory_space<vmem>>, vector<1x2048xf32>,
    %cst_34 = arith.constant 1.000000e+00 : f32
    %85 = vector.broadcast %cst_34 : f32 to vector<1x2048xf32>
    %86 = arith.subf %85, %83 : vector<1x2048xf32>
    %c1 = arith.constant 1 : index
    %c0_35 = arith.constant 0 : index
    %87 = vector.load %arg4[%c1, %c0_35] : memref<2x2048xf32, #tpu.memory_space<vmem>>, vector<1x2048xf32>
    tpu.vector_store %arg4[%c1, %c0_35], %86 {strides = array<i32>} : memref<2x2048xf32, #tpu.memory_space<vmem>>, vector<1x2048xf32>,
    return
  }
  func.func @transform_0(%arg0: i32) -> (i32, i32) {
    %c0_i32 = arith.constant 0 : i32
    %c0_i32_0 = arith.constant 0 : i32
    return %arg0, %c0_i32 : i32, i32
  }
  func.func @transform_1(%arg0: i32) -> (i32, i32) {
    %c0_i32 = arith.constant 0 : i32
    %c0_i32_0 = arith.constant 0 : i32
    %c0_i32_1 = arith.constant 0 : i32
    return %c0_i32, %c0_i32_0 : i32, i32
  }
  func.func @transform_2(%arg0: i32) -> (i32, i32) {
    %c0_i32 = arith.constant 0 : i32
    %c0_i32_0 = arith.constant 0 : i32
    %c0_i32_1 = arith.constant 0 : i32
    return %c0_i32, %c0_i32_0 : i32, i32
  }
  func.func @transform_3(%arg0: i32) -> (i32, i32) {
    %c0_i32 = arith.constant 0 : i32
    %c0_i32_0 = arith.constant 0 : i32
    return %c0_i32, %arg0 : i32, i32
  }
}

</mosaic_0001>

<bundles_post_ra>
// kernel: tpu_custom_call.1
= control target key start
LH: loop header
LB: loop body
LE: loop exit
PB: predicated region body
PF: predicated region fallthrough
CT: control target
= control target key end

     0   :  { %8 = vsyncpa [#allocation3], 0  ;;  %s6942_s0 = inlined_call_operand.vmem [shape: f32[8192,82], index: 0, kind: input, shape index: {}]   ;;  %s6943_s1 = inlined_call_operand.vmem [shape: bf16[72,128], index: 1, kind: input, shape index: {}]   ;;  %s6944_s2 = inlined_call_operand.vmem [shape: f32[32,1], index: 2, kind: input, shape index: {}]   ;;  %s6945_s3 = inlined_call_operand.hbm [shape: f32[2,8192], index: 3, kind: output, shape index: {}]  }
   0x1   :  { %10 = vsyncpa [#allocation3 + $0x1], 0  ;;  %s5217_s12 = smov 0   ;;  %s5219_s13 = smov 0  }
   0x2   :  { %s5221_s14 = smov 0   ;;  %s5223_s15 = smov 0  }
   0x3 LB: > { %s5238_s16 = sadd.s32 4294967295, %s5191_s15   ;;  %s4447_s17 = sadd.s32 4294967294, %s5191_s15   ;;  %s5191_s15 = sphi %s5223_s15, %s6995_s15   ;;  %s5187_s14 = sphi %s5221_s14, %s6994_s14   ;;  %s5183_s13 = sphi %s5219_s13, %s6993_s13   ;;  %s5179_s12 = sphi %s5217_s12, %s6992_s12  }
   0x4   : > { %s5242_s18 = sadd.s32 1, %s5191_s15   ;;  %s91_s19 = sadd.s32 1, %s5187_s14 }
   0x5   : > { %s88_s20 = ssub.s32 %s5191_s15, %s5242_s18  ;;  %p101_p0 = scmp.ne.s32.totalorder %s5187_s14, %s5183_s13 }
   0x6   : > { %p89_p1 = scmp.eq.s32.totalorder %s88_s20, 0  ;;  %p102_p2 = scmp.eq.s32.totalorder %s5238_s16, 3 }
   0x7   : > { %p107_p3 = scmp.ne.s32.totalorder %s5183_s13, %s5179_s12  ;;  %p108_p4 = scmp.eq.s32.totalorder %s4447_s17, 3 }
   0x8   : > { %s5253_s21 = scalar_select %p89_p1, %s5187_s14, %s91_s19  }
   0x9   : > { %p5255_p5 = por %p102_p2, %p101_p0  ;;  %p5259_p6 = por %p108_p4, %p107_p3 }
   0xa   : > { %p4450_p7 = scmp.ge.s32.totalorder %s5191_s15, 1  ;;  %p141_p8 = scmp.lt.s32.totalorder %s5191_s15, 5 }
   0xc   : > { %p142_p9 = pnand %p4450_p7, %p141_p8 }
   0xe   : > { %145 = sbr.rel (%p142_p9) target bundleno = 1132 (0x46c), region = 32 }
  0x15   : > { %s4452_s24 = sshll.u32 %s5238_s16, 8  ;;  %vm586_vm0 = vcmask 670720   ;;  %v5269_v0 = vld [vmem:[%s6943_s1] sm:$0xff]   ;;  %v6946_v45 = vmov 0   ;;  %vm1685_vm1 = vcmask 1043456   ;;  %vm1675_vm2 = vcmask 195584  }
  0x16   : > { %p166_p10 = scmp.lt.s32.totalorder %s4452_s24, 1023  ;;  %4549 = vmatprep.mubr.msk.bf16.mxu0 %vm586_vm0, %v5269_v0  ;;  %4569 = vmatprep.mubr.msk.bf16.mxu1 %vm586_vm0, %v5269_v0  ;;  %vm2286_vm3 = vcmask 1041408   ;;  %vm3291_vm4 = vcmask 1044480   ;;  %vm3287_vm5 = vcmask 72704   ;;  %s162_s8 = sand.u32 1, %s5183_s13  }
  0x17   : > { %4799 = vset.pattern.permute.xlu0 %v6946_v45  ;;  %4800 = vset.pattern.permute.xlu1 %v6946_v45  ;;  %s4451_s9 = sshll.u32 %s162_s8, 5  ;;  %s4532_s11 = sshll.u32 %s5238_s16, 9 }
  0x18   : > { %s6997_s24 = smov (!%p166_p10, %s4452_s24), 1023  ;;  %s6876_s10 = scalar_lea.vmem [#allocation2], %s4451_s9 }
  0x19   : > { %s4453_s27 = sshll.u32 %s6997_s24, 3  ;;  %s4388_s17 = sshll.u32 %s6876_s10, 4  ;;  %s6899_s17 = int_to_ptr.vmem [resolvable:$true] %s4388_s17 }
  0x1a   : > { %s5278_s30 = scalar_lea.vmem %s6942_s0, %s4453_s27  ;;  %s6897_s24 = scalar_lea.hbm %s6945_s3, %s4532_s11 }
  0x1b   : > { %v189_v1 = vld [vmem:[%s5278_s30 + $0x80] sm:$0xff]  ;;  %v190_v2 = vld [vmem:[%s5278_s30 + $0x88] sm:$0xff]  ;;  %v191_v12 = vld [vmem:[%s5278_s30 + $0x90] sm:$0xff]  ;;  %s4374_s16 = scalar_lea.sflag [#allocation3], %s162_s8  ;;  %s5129_s25 = scalar_lea.vmem %s6899_s17, 512 }
  0x1c   : > { %v221_v3 = vld [vmem:[%s5278_s30 + $0x180] sm:$0xff]  ;;  %v437_v4 = vpack.c.bf16 %v190_v2, %v189_v1  ;;  %v222_v5 = vld [vmem:[%s5278_s30 + $0x188] sm:$0xff]  ;;  %v192_v14 = vld [vmem:[%s5278_s30 + $0x98] sm:$0xff]  ;;  %p5130_p11 = scmp.ne.s32.totalorder %s6899_s17, %s5129_s25  ;;  %s5196_s26 = smov [#allocation2]  }
  0x1d   : > { %v173_v6 = vld [vmem:[%s5278_s30] sm:$0xff]  ;;  %v174_v7 = vld [vmem:[%s5278_s30 + $0x8] sm:$0xff]  ;;  %v453_v8 = vpack.c.bf16 %v222_v5, %v221_v3  ;;  %v223_v15 = vld [vmem:[%s5278_s30 + $0x190] sm:$0xff]  ;;  %v438_v18 = vpack.c.bf16 %v192_v14, %v191_v12  ;;  %s5133_s27 = sshll.u32 %s5196_s26, 4  ;;  %s5134_s27 = int_to_ptr.vmem [resolvable:$false] %s5133_s27 }
  0x1e   : > { %v429_v9 = vpack.c.bf16 %v174_v7, %v173_v6  ;;  %v205_v10 = vld [vmem:[%s5278_s30 + $0x100] sm:$0xff]  ;;  %v206_v11 = vld [vmem:[%s5278_s30 + $0x108] sm:$0xff]  ;;  %4693 = vmatprep.subr.msk.bf16.mxu0 %vm586_vm0, %v437_v4  ;;  %v224_v16 = vld [vmem:[%s5278_s30 + $0x198] sm:$0xff]  ;;  %p5131_p12 = pnand %p5130_p11, %p5255_p5  ;;  %s5135_s28 = scalar_lea.vmem %s5134_s27, 1024 }
  0x1f   : > { %v445_v13 = vpack.c.bf16 %v206_v11, %v205_v10  ;;  %4701 = vmatprep.subr.msk.bf16.mxu1 %vm586_vm0, %v453_v8  ;;  %v454_v19 = vpack.c.bf16 %v224_v16, %v223_v15  ;;  %v175_v20 = vld [vmem:[%s5278_s30 + $0x10] sm:$0xff]  ;;  %v176_v21 = vld [vmem:[%s5278_s30 + $0x18] sm:$0xff]  ;;  %v193_v27 = vld [vmem:[%s5278_s30 + $0xa0] sm:$0xff]  ;;  %p5136_p0 = scmp.lt.s32.totalorder %s6899_s17, %s5134_s27  ;;  %p5137_p1 = scmp.lt.s32.totalorder %s5135_s28, %s5129_s25 }
  0x20   : > { %v594_v17 = vsel %vm586_vm0, %v429_v9, 0  ;;  %v207_v22 = vld [vmem:[%s5278_s30 + $0x110] sm:$0xff]  ;;  %v208_v24 = vld [vmem:[%s5278_s30 + $0x118] sm:$0xff]  ;;  %v430_v25 = vpack.c.bf16 %v176_v21, %v175_v20  ;;  %v194_v28 = vld [vmem:[%s5278_s30 + $0xa8] sm:$0xff]  ;;  %p5132_p13 = pneg %p5131_p12 }
  0x21   : > { %4534 = vmatpush3.bf16.xpose.msra.mxu0 %v594_v17  ;;  %v642_v23 = vsel %vm586_vm0, %v445_v13, 0  ;;  %v446_v26 = vpack.c.bf16 %v208_v24, %v207_v22  ;;  %v225_v29 = vld [vmem:[%s5278_s30 + $0x1a0] sm:$0xff]  ;;  %v226_v30 = vld [vmem:[%s5278_s30 + $0x1a8] sm:$0xff]  ;;  %v439_v32 = vpack.c.bf16 %v194_v28, %v193_v27  ;;  %v195_v41 = vld [vmem:[%s5278_s30 + $0xb0] sm:$0xff]  ;;  %p5138_p2 = por %p5137_p1, %p5136_p0 }
  0x22   : > { %4554 = vmatpush3.bf16.xpose.msra.mxu1 %v642_v23  ;;  %4694 = vmatprep.subr.msk.bf16.mxu0 %vm586_vm0, %v438_v18  ;;  %v597_v31 = vsel %vm586_vm0, %v430_v25, 0  ;;  %v455_v34 = vpack.c.bf16 %v226_v30, %v225_v29  ;;  %v177_v35 = vld [vmem:[%s5278_s30 + $0x20] sm:$0xff]  ;;  %v178_v36 = vld [vmem:[%s5278_s30 + $0x28] sm:$0xff]  ;;  %v196_v42 = vld [vmem:[%s5278_s30 + $0xb8] sm:$0xff] }
  0x23   : > { %4702 = vmatprep.subr.msk.bf16.mxu1 %vm586_vm0, %v454_v19  ;;  %v645_v33 = vsel %vm586_vm0, %v446_v26, 0  ;;  %v209_v37 = vld [vmem:[%s5278_s30 + $0x120] sm:$0xff]  ;;  %v210_v38 = vld [vmem:[%s5278_s30 + $0x128] sm:$0xff]  ;;  %v431_v39 = vpack.c.bf16 %v178_v36, %v177_v35  ;;  %v227_v43 = vld [vmem:[%s5278_s30 + $0x1b0] sm:$0xff]  ;;  %v440_v47 = vpack.c.bf16 %v196_v42, %v195_v41  ;;  %p5139_p3 = pnand %p5138_p2, %p5132_p13 }
  0x24   : > { %v447_v40 = vpack.c.bf16 %v210_v38, %v209_v37  ;;  %v228_v44 = vld [vmem:[%s5278_s30 + $0x1b8] sm:$0xff]  ;;  %v179_v50 = vld [vmem:[%s5278_s30 + $0x30] sm:$0xff]  ;;  %v197_v56 = vld [vmem:[%s5278_s30 + $0xc0] sm:$0xff] }
  0x25   : > { %v600_v46 = vsel %vm586_vm0, %v431_v39, 0  ;;  %v456_v49 = vpack.c.bf16 %v228_v44, %v227_v43  ;;  %v180_v51 = vld [vmem:[%s5278_s30 + $0x38] sm:$0xff]  ;;  %v211_v52 = vld [vmem:[%s5278_s30 + $0x130] sm:$0xff]  ;;  %v198_v57 = vld [vmem:[%s5278_s30 + $0xc8] sm:$0xff] }
  0x26   : > { %v648_v48 = vsel %vm586_vm0, %v447_v40, 0  ;;  %v212_v53 = vld [vmem:[%s5278_s30 + $0x138] sm:$0xff]  ;;  %v432_v54 = vpack.c.bf16 %v180_v51, %v179_v50  ;;  %v229_v58 = vld [vmem:[%s5278_s30 + $0x1c0] sm:$0xff]  ;;  %v230_v59 = vld [vmem:[%s5278_s30 + $0x1c8] sm:$0xff]  ;;  %v441_v61 = vpack.c.bf16 %v198_v57, %v197_v56 }
  0x27   : > { %v448_v55 = vpack.c.bf16 %v212_v53, %v211_v52  ;;  %v457_v63 = vpack.c.bf16 %v230_v59, %v229_v58  ;;  %v181_v1 = vld [vmem:[%s5278_s30 + $0x40] sm:$0xff]  ;;  %v182_v2 = vld [vmem:[%s5278_s30 + $0x48] sm:$0xff]  ;;  %v199_v7 = vld [vmem:[%s5278_s30 + $0xd0] sm:$0xff] }
  0x28   : > { %v603_v60 = vsel %vm586_vm0, %v432_v54, 0  ;;  %v213_v3 = vld [vmem:[%s5278_s30 + $0x140] sm:$0xff]  ;;  %v214_v4 = vld [vmem:[%s5278_s30 + $0x148] sm:$0xff]  ;;  %v433_v5 = vpack.c.bf16 %v182_v2, %v181_v1  ;;  %v200_v8 = vld [vmem:[%s5278_s30 + $0xd8] sm:$0xff] }
  0x29   : > { %4536 = vmatpush3.bf16.xpose.msra.mxu0 %v597_v31  ;;  %v651_v62 = vsel %vm586_vm0, %v448_v55, 0  ;;  %v449_v6 = vpack.c.bf16 %v214_v4, %v213_v3  ;;  %v231_v9 = vld [vmem:[%s5278_s30 + $0x1d0] sm:$0xff]  ;;  %v232_v10 = vld [vmem:[%s5278_s30 + $0x1d8] sm:$0xff]  ;;  %v442_v12 = vpack.c.bf16 %v200_v8, %v199_v7  ;;  %v201_v21 = vld [vmem:[%s5278_s30 + $0xe0] sm:$0xff] }
  0x2a   : > { %4556 = vmatpush3.bf16.xpose.msra.mxu1 %v645_v33  ;;  %4695 = vmatprep.subr.msk.bf16.mxu0 %vm586_vm0, %v439_v32  ;;  %v606_v11 = vsel %vm586_vm0, %v433_v5, 0  ;;  %v458_v14 = vpack.c.bf16 %v232_v10, %v231_v9  ;;  %v183_v15 = vld [vmem:[%s5278_s30 + $0x50] sm:$0xff]  ;;  %v184_v16 = vld [vmem:[%s5278_s30 + $0x58] sm:$0xff]  ;;  %v202_v22 = vld [vmem:[%s5278_s30 + $0xe8] sm:$0xff] }
  0x2b   : > { %4703 = vmatprep.subr.msk.bf16.mxu1 %vm586_vm0, %v455_v34  ;;  %v654_v13 = vsel %vm586_vm0, %v449_v6, 0  ;;  %v215_v17 = vld [vmem:[%s5278_s30 + $0x150] sm:$0xff]  ;;  %v216_v18 = vld [vmem:[%s5278_s30 + $0x158] sm:$0xff]  ;;  %v434_v19 = vpack.c.bf16 %v184_v16, %v183_v15  ;;  %v233_v23 = vld [vmem:[%s5278_s30 + $0x1e0] sm:$0xff]  ;;  %v443_v26 = vpack.c.bf16 %v202_v22, %v201_v21 }
  0x2c   : > { %v450_v20 = vpack.c.bf16 %v216_v18, %v215_v17  ;;  %v234_v24 = vld [vmem:[%s5278_s30 + $0x1e8] sm:$0xff]  ;;  %v185_v29 = vld [vmem:[%s5278_s30 + $0x60] sm:$0xff]  ;;  %v203_v35 = vld [vmem:[%s5278_s30 + $0xf0] sm:$0xff] }
  0x2d   : > { %v609_v25 = vsel %vm586_vm0, %v434_v19, 0  ;;  %v459_v28 = vpack.c.bf16 %v234_v24, %v233_v23  ;;  %v186_v30 = vld [vmem:[%s5278_s30 + $0x68] sm:$0xff]  ;;  %v217_v31 = vld [vmem:[%s5278_s30 + $0x160] sm:$0xff]  ;;  %v204_v36 = vld [vmem:[%s5278_s30 + $0xf8] sm:$0xff] }
  0x2e   : > { %v657_v27 = vsel %vm586_vm0, %v450_v20, 0  ;;  %v218_v32 = vld [vmem:[%s5278_s30 + $0x168] sm:$0xff]  ;;  %v435_v33 = vpack.c.bf16 %v186_v30, %v185_v29  ;;  %v235_v37 = vld [vmem:[%s5278_s30 + $0x1f0] sm:$0xff]  ;;  %v236_v38 = vld [vmem:[%s5278_s30 + $0x1f8] sm:$0xff]  ;;  %v444_v40 = vpack.c.bf16 %v204_v36, %v203_v35 }
  0x2f   : > { %v451_v34 = vpack.c.bf16 %v218_v32, %v217_v31  ;;  %v560_v41 = vld [vmem:[%s6944_s2] sm:$0xff]  ;;  %v460_v43 = vpack.c.bf16 %v236_v38, %v235_v37  ;;  %v187_v44 = vld [vmem:[%s5278_s30 + $0x70] sm:$0xff]  ;;  %v254_v53 = vld [vmem:[%s5278_s30 + $0x288] sm:$0xff] }
  0x30   : > { %v612_v39 = vsel %vm586_vm0, %v435_v33, 0  ;;  %565 = vperm.xlu0 %4799, %v560_v41   ;;  %v253_v52 = vld [vmem:[%s5278_s30 + $0x280] sm:$0xff]  ;;  %v286_v55 = vld [vmem:[%s5278_s30 + $0x388] sm:$0xff]  ;;  %v255_v3 = vld [vmem:[%s5278_s30 + $0x290] sm:$0xff] }
  0x31   : > { %4538 = vmatpush3.bf16.xpose.msra.mxu0 %v600_v46  ;;  %v660_v42 = vsel %vm586_vm0, %v451_v34, 0  ;;  %v188_v46 = vld [vmem:[%s5278_s30 + $0x78] sm:$0xff]  ;;  %v285_v54 = vld [vmem:[%s5278_s30 + $0x380] sm:$0xff]  ;;  %v469_v57 = vpack.c.bf16 %v254_v53, %v253_v52  ;;  %v287_v5 = vld [vmem:[%s5278_s30 + $0x390] sm:$0xff] }
  0x32   : > { %4558 = vmatpush3.bf16.xpose.msra.mxu1 %v648_v48  ;;  %4696 = vmatprep.subr.msk.bf16.mxu0 %vm586_vm0, %v440_v47  ;;  %v219_v47 = vld [vmem:[%s5278_s30 + $0x170] sm:$0xff]  ;;  %v220_v48 = vld [vmem:[%s5278_s30 + $0x178] sm:$0xff]  ;;  %v436_v50 = vpack.c.bf16 %v188_v46, %v187_v44  ;;  %v485_v59 = vpack.c.bf16 %v286_v55, %v285_v54  ;;  %v257_v19 = vld [vmem:[%s5278_s30 + $0x2a0] sm:$0xff] }
  0x33   : > { %4704 = vmatprep.subr.msk.bf16.mxu1 %vm586_vm0, %v456_v49  ;;  %v561_v49 = vld [vmem:[%s6944_s2 + $0x8] sm:$0xff]  ;;  %v452_v51 = vpack.c.bf16 %v220_v48, %v219_v47  ;;  %v256_v4 = vld [vmem:[%s5278_s30 + $0x298] sm:$0xff]  ;;  %v562_v7 = vld [vmem:[%s6944_s2 + $0x10] sm:$0xff] }
  0x34   : > { %570 = vperm.xlu0 %4799, %v561_v49   ;;  %v615_v56 = vsel %vm586_vm0, %v436_v50, 0  ;;  %v288_v6 = vld [vmem:[%s5278_s30 + $0x398] sm:$0xff]  ;;  %575 = vperm.xlu1 %4800, %v562_v7   ;;  %v470_v9 = vpack.c.bf16 %v256_v4, %v255_v3  ;;  %v271_v15 = vld [vmem:[%s5278_s30 + $0x310] sm:$0xff]  ;;  %v258_v20 = vld [vmem:[%s5278_s30 + $0x2a8] sm:$0xff] }
  0x35   : > { %v663_v58 = vsel %vm586_vm0, %v452_v51, 0  ;;  %v272_v16 = vld [vmem:[%s5278_s30 + $0x318] sm:$0xff]  ;;  %v289_v21 = vld [vmem:[%s5278_s30 + $0x3a0] sm:$0xff]  ;;  %v290_v22 = vld [vmem:[%s5278_s30 + $0x3a8] sm:$0xff]  ;;  %v471_v24 = vpack.c.bf16 %v258_v20, %v257_v19 }
  0x36   : > { %v478_v18 = vpack.c.bf16 %v272_v16, %v271_v15  ;;  %v273_v29 = vld [vmem:[%s5278_s30 + $0x320] sm:$0xff]  ;;  %v274_v30 = vld [vmem:[%s5278_s30 + $0x328] sm:$0xff]  ;;  %v259_v33 = vld [vmem:[%s5278_s30 + $0x2b0] sm:$0xff] }
  0x37   : > { %v479_v32 = vpack.c.bf16 %v274_v30, %v273_v29  ;;  %v260_v34 = vld [vmem:[%s5278_s30 + $0x2b8] sm:$0xff]  ;;  %v291_v35 = vld [vmem:[%s5278_s30 + $0x3b0] sm:$0xff]  ;;  %v261_v48 = vld [vmem:[%s5278_s30 + $0x2c0] sm:$0xff] }
  0x38   : > { %v292_v36 = vld [vmem:[%s5278_s30 + $0x3b8] sm:$0xff]  ;;  %v472_v38 = vpack.c.bf16 %v260_v34, %v259_v33  ;;  %v243_v41 = vld [vmem:[%s5278_s30 + $0x230] sm:$0xff]  ;;  %v262_v49 = vld [vmem:[%s5278_s30 + $0x2c8] sm:$0xff] }
  0x39   : > { %4540 = vmatpush3.bf16.xpose.msra.mxu0 %v603_v60  ;;  %v237_v60 = vld [vmem:[%s5278_s30 + $0x200] sm:$0xff]  ;;  %v276_v44 = vld [vmem:[%s5278_s30 + $0x338] sm:$0xff]  ;;  %v294_v51 = vld [vmem:[%s5278_s30 + $0x3c8] sm:$0xff]  ;;  %v473_v53 = vpack.c.bf16 %v262_v49, %v261_v48 }
  0x3a   : > { %4560 = vmatpush3.bf16.xpose.msra.mxu1 %v651_v62  ;;  %4697 = vmatprep.subr.msk.bf16.mxu0 %vm586_vm0, %v441_v61  ;;  %v238_v61 = vld [vmem:[%s5278_s30 + $0x208] sm:$0xff]  ;;  %v269_v62 = vld [vmem:[%s5278_s30 + $0x300] sm:$0xff]  ;;  %v247_v7 = vld [vmem:[%s5278_s30 + $0x250] sm:$0xff] }
  0x3b   : > { %4705 = vmatprep.subr.msk.bf16.mxu1 %vm586_vm0, %v457_v63  ;;  %v270_v63 = vld [vmem:[%s5278_s30 + $0x308] sm:$0xff]  ;;  %v461_v1 = vpack.c.bf16 %v238_v61, %v237_v60  ;;  %v293_v50 = vld [vmem:[%s5278_s30 + $0x3c0] sm:$0xff]  ;;  %v268_v29 = vld [vmem:[%s5278_s30 + $0x2f8] sm:$0xff] }
  0x3c   : > { %v477_v2 = vpack.c.bf16 %v270_v63, %v269_v62  ;;  %v489_v55 = vpack.c.bf16 %v294_v51, %v293_v50  ;;  %v263_v62 = vld [vmem:[%s5278_s30 + $0x2d0] sm:$0xff]  ;;  %v264_v63 = vld [vmem:[%s5278_s30 + $0x2d8] sm:$0xff]  ;;  %v266_v15 = vld [vmem:[%s5278_s30 + $0x2e8] sm:$0xff] }
  0x3d   : > { %v690_v8 = vsel %vm586_vm0, %v461_v1, 0  ;;  %v295_v1 = vld [vmem:[%s5278_s30 + $0x3d0] sm:$0xff]  ;;  %v474_v4 = vpack.c.bf16 %v264_v63, %v263_v62  ;;  %v297_v16 = vld [vmem:[%s5278_s30 + $0x3e0] sm:$0xff] }
  0x3e   : > { %v738_v10 = vsel %vm586_vm0, %v477_v2, 0  ;;  %v296_v2 = vld [vmem:[%s5278_s30 + $0x3d8] sm:$0xff]  ;;  %v299_v30 = vld [vmem:[%s5278_s30 + $0x3f0] sm:$0xff]  ;;  %v301_v51 = vld [vmem:[%s5278_s30 + $0x400] sm:$0xff] }
  0x41   : > { %4542 = vmatpush3.bf16.xpose.msra.mxu0 %v606_v11  ;;  %v486_v11 = vpack.c.bf16 %v288_v6, %v287_v5  ;;  %v490_v6 = vpack.c.bf16 %v296_v2, %v295_v1  ;;  %v303_v2 = vld [vmem:[%s5278_s30 + $0x410] sm:$0xff] }
  0x42   : > { %4562 = vmatpush3.bf16.xpose.msra.mxu1 %v654_v13  ;;  %4698 = vmatprep.subr.msk.bf16.mxu0 %vm586_vm0, %v442_v12  ;;  %v239_v12 = vld [vmem:[%s5278_s30 + $0x210] sm:$0xff]  ;;  %v240_v13 = vld [vmem:[%s5278_s30 + $0x218] sm:$0xff] }
  0x43   : > { %4706 = vmatprep.subr.msk.bf16.mxu1 %vm586_vm0, %v458_v14  ;;  %v5408_v14 = vld [vmem:[%s6943_s1 + $0x8] ss:$0 sps:$4 sm:$0xff]   ;;  %v462_v17 = vpack.c.bf16 %v240_v13, %v239_v12  ;;  %v265_v13 = vld [vmem:[%s5278_s30 + $0x2e0] sm:$0xff] }
  0x44   : > { %v475_v19 = vpack.c.bf16 %v266_v15, %v265_v13 }
  0x45   : > { %v693_v23 = vsel %vm586_vm0, %v462_v17, 0  ;;  %v298_v17 = vld [vmem:[%s5278_s30 + $0x3e8] sm:$0xff] }
  0x49   : > { %4544 = vmatpush3.bf16.xpose.msra.mxu0 %v609_v25  ;;  %v741_v25 = vsel %vm586_vm0, %v478_v18, 0 }
  0x4a   : > { %4564 = vmatpush3.bf16.xpose.msra.mxu1 %v657_v27  ;;  %4699 = vmatprep.subr.msk.bf16.mxu0 %vm586_vm0, %v443_v26  ;;  %v487_v26 = vpack.c.bf16 %v290_v22, %v289_v21  ;;  %v241_v27 = vld [vmem:[%s5278_s30 + $0x220] sm:$0xff]  ;;  %v491_v21 = vpack.c.bf16 %v298_v17, %v297_v16 }
  0x4b   : > { %4707 = vmatprep.subr.msk.bf16.mxu1 %vm586_vm0, %v459_v28  ;;  %v242_v28 = vld [vmem:[%s5278_s30 + $0x228] sm:$0xff]  ;;  %v249_v22 = vld [vmem:[%s5278_s30 + $0x260] sm:$0xff] }
  0x4c   : > { %v463_v31 = vpack.c.bf16 %v242_v28, %v241_v27  ;;  %v267_v28 = vld [vmem:[%s5278_s30 + $0x2f0] sm:$0xff]  ;;  %v305_v17 = vld [vmem:[%s5278_s30 + $0x420] sm:$0xff] }
  0x4d   : > { %v476_v33 = vpack.c.bf16 %v268_v29, %v267_v28 }
  0x4e   : > { %v696_v37 = vsel %vm586_vm0, %v463_v31, 0  ;;  %v300_v31 = vld [vmem:[%s5278_s30 + $0x3f8] sm:$0xff] }
  0x51   : > { %4546 = vmatpush3.bf16.xpose.msra.mxu0 %v612_v39  ;;  %v744_v39 = vsel %vm586_vm0, %v479_v32, 0 }
  0x52   : > { %4566 = vmatpush3.bf16.xpose.msra.mxu1 %v660_v42  ;;  %4700 = vmatprep.subr.msk.bf16.mxu0 %vm586_vm0, %v444_v40  ;;  %v488_v40 = vpack.c.bf16 %v292_v36, %v291_v35  ;;  %v244_v42 = vld [vmem:[%s5278_s30 + $0x238] sm:$0xff]  ;;  %v492_v35 = vpack.c.bf16 %v300_v31, %v299_v30  ;;  %v251_v36 = vld [vmem:[%s5278_s30 + $0x270] sm:$0xff] }
  0x53   : > { %4708 = vmatprep.subr.msk.bf16.mxu1 %vm586_vm0, %v460_v43  ;;  %v275_v43 = vld [vmem:[%s5278_s30 + $0x330] sm:$0xff]  ;;  %v464_v46 = vpack.c.bf16 %v244_v42, %v243_v41  ;;  %v317_v42 = vld [vmem:[%s5278_s30 + $0x480] sm:$0xff] }
  0x54   : > { %v480_v47 = vpack.c.bf16 %v276_v44, %v275_v43  ;;  %v318_v43 = vld [vmem:[%s5278_s30 + $0x488] sm:$0xff]  ;;  %v349_v44 = vld [vmem:[%s5278_s30 + $0x580] sm:$0xff]  ;;  %v307_v31 = vld [vmem:[%s5278_s30 + $0x430] sm:$0xff] }
  0x55   : > { %v699_v52 = vsel %vm586_vm0, %v464_v46, 0  ;;  %v350_v46 = vld [vmem:[%s5278_s30 + $0x588] sm:$0xff]  ;;  %v501_v48 = vpack.c.bf16 %v318_v43, %v317_v42 }
  0x56   : > { %v747_v54 = vsel %vm586_vm0, %v480_v47, 0  ;;  %v517_v50 = vpack.c.bf16 %v350_v46, %v349_v44  ;;  %v309_v46 = vld [vmem:[%s5278_s30 + $0x440] sm:$0xff] }
  0x59   : > { %4548 = vmatpush3.bf16.xpose.msra.mxu0 %v615_v56  ;;  %v245_v56 = vld [vmem:[%s5278_s30 + $0x240] sm:$0xff] }
  0x5a   : > { %4568 = vmatpush3.bf16.xpose.msra.mxu1 %v663_v58  ;;  %4709 = vmatprep.subr.msk.bf16.mxu0 %vm586_vm0, %v469_v57  ;;  %v246_v57 = vld [vmem:[%s5278_s30 + $0x248] sm:$0xff]  ;;  %v277_v58 = vld [vmem:[%s5278_s30 + $0x340] sm:$0xff] }
  0x5b   : > { %4717 = vmatprep.subr.msk.bf16.mxu1 %vm586_vm0, %v485_v59  ;;  %v278_v59 = vld [vmem:[%s5278_s30 + $0x348] sm:$0xff]  ;;  %v465_v60 = vpack.c.bf16 %v246_v57, %v245_v56  ;;  %v319_v57 = vld [vmem:[%s5278_s30 + $0x490] sm:$0xff] }
  0x5c   : > { %v481_v61 = vpack.c.bf16 %v278_v59, %v277_v58  ;;  %v320_v58 = vld [vmem:[%s5278_s30 + $0x498] sm:$0xff]  ;;  %v351_v59 = vld [vmem:[%s5278_s30 + $0x590] sm:$0xff] }
  0x5d   : > { %v702_v3 = vsel %vm586_vm0, %v465_v60, 0  ;;  %v352_v60 = vld [vmem:[%s5278_s30 + $0x598] sm:$0xff]  ;;  %v502_v62 = vpack.c.bf16 %v320_v58, %v319_v57 }
  0x5e   : > { %v750_v5 = vsel %vm586_vm0, %v481_v61, 0  ;;  %v518_v1 = vpack.c.bf16 %v352_v60, %v351_v59 }
  0x60   : > { %4550 = vmatmul.mubr.msk.bf16.vlgmr.msra.gmra.mrb[0].mxu0 %vm586_vm0, %v5269_v0 }
  0x61   : > { %4570 = vmatmul.mubr.msk.bf16.vlgmr.msra.gmra.mrb[0].mxu1 %vm586_vm0, %v5269_v0  ;;  %4574 = vmatpush3.bf16.xpose.msra.mxu0 %v690_v8  ;;  %v248_v8 = vld [vmem:[%s5278_s30 + $0x258] sm:$0xff] }
  0x62   : > { %4594 = vmatpush3.bf16.xpose.msra.mxu1 %v738_v10  ;;  %4710 = vmatprep.subr.msk.bf16.mxu0 %vm586_vm0, %v470_v9  ;;  %v279_v9 = vld [vmem:[%s5278_s30 + $0x350] sm:$0xff]  ;;  %v280_v10 = vld [vmem:[%s5278_s30 + $0x358] sm:$0xff] }
  0x63   : > { %4718 = vmatprep.subr.msk.bf16.mxu1 %vm586_vm0, %v486_v11  ;;  %4551 = vmatprep.mubr.msk.bf16.mxu0 %vm586_vm0, %v5408_v14  ;;  %v466_v11 = vpack.c.bf16 %v248_v8, %v247_v7  ;;  %v482_v12 = vpack.c.bf16 %v280_v10, %v279_v9  ;;  %v321_v8 = vld [vmem:[%s5278_s30 + $0x4a0] sm:$0xff]  ;;  %v322_v9 = vld [vmem:[%s5278_s30 + $0x4a8] sm:$0xff] }
  0x64   : > { %4571 = vmatprep.mubr.msk.bf16.mxu1 %vm586_vm0, %v5408_v14  ;;  %v353_v10 = vld [vmem:[%s5278_s30 + $0x5a0] sm:$0xff]  ;;  %v503_v13 = vpack.c.bf16 %v322_v9, %v321_v8 }
  0x65   : > { %v705_v18 = vsel %vm586_vm0, %v466_v11, 0  ;;  %v753_v20 = vsel %vm586_vm0, %v482_v12, 0  ;;  %v354_v11 = vld [vmem:[%s5278_s30 + $0x5a8] sm:$0xff] }
  0x66   : > { %v519_v16 = vpack.c.bf16 %v354_v11, %v353_v10 }
  0x68   : > { %4552 = vmatmul.mubr.msk.bf16.gmra.mrb[4].mxu0 %vm586_vm0, %v5408_v14 }
  0x69   : > { %4576 = vmatpush3.bf16.xpose.msra.mxu0 %v693_v23  ;;  %4572 = vmatmul.mubr.msk.bf16.gmra.mrb[4].mxu1 %vm586_vm0, %v5408_v14  ;;  %v250_v23 = vld [vmem:[%s5278_s30 + $0x268] sm:$0xff] }
  0x6a   : > { %4596 = vmatpush3.bf16.xpose.msra.mxu1 %v741_v25  ;;  %4711 = vmatprep.subr.msk.bf16.mxu0 %vm586_vm0, %v471_v24  ;;  %v281_v24 = vld [vmem:[%s5278_s30 + $0x360] sm:$0xff]  ;;  %v282_v25 = vld [vmem:[%s5278_s30 + $0x368] sm:$0xff] }
  0x6b   : > { %4719 = vmatprep.subr.msk.bf16.mxu1 %vm586_vm0, %v487_v26  ;;  %4589 = vmatprep.mubr.msk.bf16.mxu0 %vm586_vm0, %v5269_v0  ;;  %v467_v26 = vpack.c.bf16 %v250_v23, %v249_v22  ;;  %v483_v27 = vpack.c.bf16 %v282_v25, %v281_v24  ;;  %v323_v23 = vld [vmem:[%s5278_s30 + $0x4b0] sm:$0xff]  ;;  %v324_v24 = vld [vmem:[%s5278_s30 + $0x4b8] sm:$0xff] }
  0x6c   : > { %4609 = vmatprep.mubr.msk.bf16.mxu1 %vm586_vm0, %v5269_v0  ;;  %v355_v25 = vld [vmem:[%s5278_s30 + $0x5b0] sm:$0xff]  ;;  %v504_v28 = vpack.c.bf16 %v324_v24, %v323_v23 }
  0x6d   : > { %v708_v32 = vsel %vm586_vm0, %v467_v26, 0  ;;  %v756_v34 = vsel %vm586_vm0, %v483_v27, 0  ;;  %v356_v26 = vld [vmem:[%s5278_s30 + $0x5b8] sm:$0xff] }
  0x6e   : > { %v520_v30 = vpack.c.bf16 %v356_v26, %v355_v25 }
  0x71   : > { %4578 = vmatpush3.bf16.xpose.msra.mxu0 %v696_v37  ;;  %v252_v37 = vld [vmem:[%s5278_s30 + $0x278] sm:$0xff] }
  0x72   : > { %4598 = vmatpush3.bf16.xpose.msra.mxu1 %v744_v39  ;;  %4712 = vmatprep.subr.msk.bf16.mxu0 %vm586_vm0, %v472_v38  ;;  %v283_v38 = vld [vmem:[%s5278_s30 + $0x370] sm:$0xff]  ;;  %v284_v39 = vld [vmem:[%s5278_s30 + $0x378] sm:$0xff] }
  0x73   : > { %4720 = vmatprep.subr.msk.bf16.mxu1 %vm586_vm0, %v488_v40  ;;  %v468_v40 = vpack.c.bf16 %v252_v37, %v251_v36  ;;  %v484_v41 = vpack.c.bf16 %v284_v39, %v283_v38  ;;  %v325_v37 = vld [vmem:[%s5278_s30 + $0x4c0] sm:$0xff]  ;;  %v326_v38 = vld [vmem:[%s5278_s30 + $0x4c8] sm:$0xff] }
  0x74   : > { %v357_v39 = vld [vmem:[%s5278_s30 + $0x5c0] sm:$0xff]  ;;  %v505_v42 = vpack.c.bf16 %v326_v38, %v325_v37 }
  0x75   : > { %v711_v47 = vsel %vm586_vm0, %v468_v40, 0  ;;  %v759_v49 = vsel %vm586_vm0, %v484_v41, 0  ;;  %v358_v40 = vld [vmem:[%s5278_s30 + $0x5c8] sm:$0xff] }
  0x76   : > { %v521_v44 = vpack.c.bf16 %v358_v40, %v357_v39 }
  0x79   : > { %4580 = vmatpush3.bf16.xpose.msra.mxu0 %v699_v52  ;;  %v302_v52 = vld [vmem:[%s5278_s30 + $0x408] sm:$0xff] }
  0x7a   : > { %4600 = vmatpush3.bf16.xpose.msra.mxu1 %v747_v54  ;;  %4713 = vmatprep.subr.msk.bf16.mxu0 %vm586_vm0, %v473_v53  ;;  %v333_v53 = vld [vmem:[%s5278_s30 + $0x500] sm:$0xff]  ;;  %v334_v54 = vld [vmem:[%s5278_s30 + $0x508] sm:$0xff] }
  0x7b   : > { %4721 = vmatprep.subr.msk.bf16.mxu1 %vm586_vm0, %v489_v55  ;;  %v493_v55 = vpack.c.bf16 %v302_v52, %v301_v51  ;;  %v509_v56 = vpack.c.bf16 %v334_v54, %v333_v53  ;;  %v327_v53 = vld [vmem:[%s5278_s30 + $0x4d0] sm:$0xff]  ;;  %v328_v54 = vld [vmem:[%s5278_s30 + $0x4d8] sm:$0xff] }
  0x7c   : > { %v506_v58 = vpack.c.bf16 %v328_v54, %v327_v53 }
  0x7d   : > { %v786_v61 = vsel %vm586_vm0, %v493_v55, 0  ;;  %v834_v63 = vsel %vm586_vm0, %v509_v56, 0  ;;  %v359_v55 = vld [vmem:[%s5278_s30 + $0x5d0] sm:$0xff]  ;;  %v360_v56 = vld [vmem:[%s5278_s30 + $0x5d8] sm:$0xff] }
  0x7e   : > { %v522_v60 = vpack.c.bf16 %v360_v56, %v359_v55  ;;  %v367_v55 = vld [vmem:[%s5278_s30 + $0x610] sm:$0xff]  ;;  %v368_v56 = vld [vmem:[%s5278_s30 + $0x618] sm:$0xff] }
  0x81   : > { %4582 = vmatpush3.bf16.xpose.msra.mxu0 %v702_v3  ;;  %v304_v3 = vld [vmem:[%s5278_s30 + $0x418] sm:$0xff] }
  0x82   : > { %4602 = vmatpush3.bf16.xpose.msra.mxu1 %v750_v5  ;;  %4714 = vmatprep.subr.msk.bf16.mxu0 %vm586_vm0, %v474_v4  ;;  %v335_v4 = vld [vmem:[%s5278_s30 + $0x510] sm:$0xff]  ;;  %v336_v5 = vld [vmem:[%s5278_s30 + $0x518] sm:$0xff] }
  0x83   : > { %4722 = vmatprep.subr.msk.bf16.mxu1 %vm586_vm0, %v490_v6  ;;  %v494_v6 = vpack.c.bf16 %v304_v3, %v303_v2  ;;  %v510_v7 = vpack.c.bf16 %v336_v5, %v335_v4  ;;  %v329_v4 = vld [vmem:[%s5278_s30 + $0x4e0] sm:$0xff]  ;;  %v330_v5 = vld [vmem:[%s5278_s30 + $0x4e8] sm:$0xff] }
  0x84   : > { %v507_v9 = vpack.c.bf16 %v330_v5, %v329_v4 }
  0x85   : > { %v789_v12 = vsel %vm586_vm0, %v494_v6, 0  ;;  %v837_v15 = vsel %vm586_vm0, %v510_v7, 0  ;;  %v361_v6 = vld [vmem:[%s5278_s30 + $0x5e0] sm:$0xff]  ;;  %v362_v7 = vld [vmem:[%s5278_s30 + $0x5e8] sm:$0xff] }
  0x86   : > { %v523_v11 = vpack.c.bf16 %v362_v7, %v361_v6  ;;  %v369_v6 = vld [vmem:[%s5278_s30 + $0x620] sm:$0xff]  ;;  %v370_v7 = vld [vmem:[%s5278_s30 + $0x628] sm:$0xff] }
  0x89   : > { %4584 = vmatpush3.bf16.xpose.msra.mxu0 %v705_v18  ;;  %v306_v18 = vld [vmem:[%s5278_s30 + $0x428] sm:$0xff] }
  0x8a   : > { %4604 = vmatpush3.bf16.xpose.msra.mxu1 %v753_v20  ;;  %4715 = vmatprep.subr.msk.bf16.mxu0 %vm586_vm0, %v475_v19  ;;  %v337_v19 = vld [vmem:[%s5278_s30 + $0x520] sm:$0xff]  ;;  %v338_v20 = vld [vmem:[%s5278_s30 + $0x528] sm:$0xff] }
  0x8b   : > { %4723 = vmatprep.subr.msk.bf16.mxu1 %vm586_vm0, %v491_v21  ;;  %v495_v21 = vpack.c.bf16 %v306_v18, %v305_v17  ;;  %v511_v22 = vpack.c.bf16 %v338_v20, %v337_v19  ;;  %v331_v19 = vld [vmem:[%s5278_s30 + $0x4f0] sm:$0xff]  ;;  %v332_v20 = vld [vmem:[%s5278_s30 + $0x4f8] sm:$0xff] }
  0x8c   : > { %v508_v24 = vpack.c.bf16 %v332_v20, %v331_v19 }
  0x8d   : > { %v792_v27 = vsel %vm586_vm0, %v495_v21, 0  ;;  %v840_v29 = vsel %vm586_vm0, %v511_v22, 0  ;;  %v363_v21 = vld [vmem:[%s5278_s30 + $0x5f0] sm:$0xff]  ;;  %v364_v22 = vld [vmem:[%s5278_s30 + $0x5f8] sm:$0xff] }
  0x8e   : > { %v524_v26 = vpack.c.bf16 %v364_v22, %v363_v21  ;;  %v371_v22 = vld [vmem:[%s5278_s30 + $0x630] sm:$0xff] }
  0x91   : > { %4586 = vmatpush3.bf16.xpose.msra.mxu0 %v708_v32  ;;  %v308_v32 = vld [vmem:[%s5278_s30 + $0x438] sm:$0xff] }
  0x92   : > { %4606 = vmatpush3.bf16.xpose.msra.mxu1 %v756_v34  ;;  %4716 = vmatprep.subr.msk.bf16.mxu0 %vm586_vm0, %v476_v33  ;;  %v339_v33 = vld [vmem:[%s5278_s30 + $0x530] sm:$0xff]  ;;  %v340_v34 = vld [vmem:[%s5278_s30 + $0x538] sm:$0xff] }
  0x93   : > { %4724 = vmatprep.subr.msk.bf16.mxu1 %vm586_vm0, %v492_v35  ;;  %v496_v35 = vpack.c.bf16 %v308_v32, %v307_v31  ;;  %v512_v36 = vpack.c.bf16 %v340_v34, %v339_v33  ;;  %v381_v33 = vld [vmem:[%s5278_s30 + $0x680] sm:$0xff]  ;;  %v382_v34 = vld [vmem:[%s5278_s30 + $0x688] sm:$0xff] }
  0x94   : > { %v533_v38 = vpack.c.bf16 %v382_v34, %v381_v33 }
  0x95   : > { %v795_v41 = vsel %vm586_vm0, %v496_v35, 0  ;;  %v843_v43 = vsel %vm586_vm0, %v512_v36, 0  ;;  %v413_v35 = vld [vmem:[%s5278_s30 + $0x780] sm:$0xff]  ;;  %v414_v36 = vld [vmem:[%s5278_s30 + $0x788] sm:$0xff] }
  0x96   : > { %v549_v40 = vpack.c.bf16 %v414_v36, %v413_v35  ;;  %v373_v36 = vld [vmem:[%s5278_s30 + $0x640] sm:$0xff] }
  0x99   : > { %4588 = vmatpush3.bf16.xpose.msra.mxu0 %v711_v47  ;;  %v310_v47 = vld [vmem:[%s5278_s30 + $0x448] sm:$0xff] }
  0x9a   : > { %4608 = vmatpush3.bf16.xpose.msra.mxu1 %v759_v49  ;;  %4725 = vmatprep.subr.msk.bf16.mxu0 %vm586_vm0, %v501_v48  ;;  %v341_v48 = vld [vmem:[%s5278_s30 + $0x540] sm:$0xff]  ;;  %v342_v49 = vld [vmem:[%s5278_s30 + $0x548] sm:$0xff]  ;;  %v497_v51 = vpack.c.bf16 %v310_v47, %v309_v46 }
  0x9b   : > { %4733 = vmatprep.subr.msk.bf16.mxu1 %vm586_vm0, %v517_v50  ;;  %v3280_v50 = vld [vmem:[%s6944_s2 + $0x18] sm:$0x1]  ;;  %v513_v52 = vpack.c.bf16 %v342_v49, %v341_v48  ;;  %v383_v48 = vld [vmem:[%s5278_s30 + $0x690] sm:$0xff] }
  0x9c   : > { %4051 = vperm.xlu1 %4800, %v3280_v50   ;;  %v798_v57 = vsel %vm586_vm0, %v497_v51, 0  ;;  %v384_v49 = vld [vmem:[%s5278_s30 + $0x698] sm:$0xff]  ;;  %v415_v50 = vld [vmem:[%s5278_s30 + $0x790] sm:$0xff] }
  0x9d   : > { %v846_v59 = vsel %vm586_vm0, %v513_v52, 0  ;;  %v416_v51 = vld [vmem:[%s5278_s30 + $0x798] sm:$0xff]  ;;  %v534_v54 = vpack.c.bf16 %v384_v49, %v383_v48 }
  0xa0   : > { %4590 = vmatmul.mubr.msk.bf16.vlgmr.msra.gmra.mrb[8].mxu0 %vm586_vm0, %v5269_v0 }
  0xa1   : > { %4610 = vmatmul.mubr.msk.bf16.vlgmr.msra.gmra.mrb[8].mxu1 %vm586_vm0, %v5269_v0  ;;  %4614 = vmatpush3.bf16.xpose.msra.mxu0 %v786_v61  ;;  %v311_v61 = vld [vmem:[%s5278_s30 + $0x450] sm:$0xff] }
  0xa2   : > { %4634 = vmatpush3.bf16.xpose.msra.mxu1 %v834_v63  ;;  %4726 = vmatprep.subr.msk.bf16.mxu0 %vm586_vm0, %v502_v62  ;;  %v312_v62 = vld [vmem:[%s5278_s30 + $0x458] sm:$0xff]  ;;  %v343_v63 = vld [vmem:[%s5278_s30 + $0x550] sm:$0xff] }
  0xa3   : > { %4734 = vmatprep.subr.msk.bf16.mxu1 %vm586_vm0, %v518_v1  ;;  %4591 = vmatprep.mubr.msk.bf16.mxu0 %vm586_vm0, %v5408_v14  ;;  %v344_v1 = vld [vmem:[%s5278_s30 + $0x558] sm:$0xff]  ;;  %v498_v2 = vpack.c.bf16 %v312_v62, %v311_v61  ;;  %v385_v62 = vld [vmem:[%s5278_s30 + $0x6a0] sm:$0xff] }
  0xa4   : > { %4611 = vmatprep.mubr.msk.bf16.mxu1 %vm586_vm0, %v5408_v14  ;;  %v514_v3 = vpack.c.bf16 %v344_v1, %v343_v63  ;;  %v386_v63 = vld [vmem:[%s5278_s30 + $0x6a8] sm:$0xff] }
  0xa5   : > { %v801_v8 = vsel %vm586_vm0, %v498_v2, 0  ;;  %v418_v1 = vld [vmem:[%s5278_s30 + $0x7a8] sm:$0xff] }
  0xa6   : > { %v849_v10 = vsel %vm586_vm0, %v514_v3, 0  ;;  %v535_v3 = vpack.c.bf16 %v386_v63, %v385_v62 }
  0xa8   : > { %4592 = vmatmul.mubr.msk.bf16.gmra.mrb[12].mxu0 %vm586_vm0, %v5408_v14 }
  0xa9   : > { %4616 = vmatpush3.bf16.xpose.msra.mxu0 %v789_v12  ;;  %4612 = vmatmul.mubr.msk.bf16.gmra.mrb[12].mxu1 %vm586_vm0, %v5408_v14  ;;  %v313_v12 = vld [vmem:[%s5278_s30 + $0x460] sm:$0xff] }
  0xaa   : > { %4636 = vmatpush3.bf16.xpose.msra.mxu1 %v837_v15  ;;  %4727 = vmatprep.subr.msk.bf16.mxu0 %vm586_vm0, %v503_v13  ;;  %v314_v13 = vld [vmem:[%s5278_s30 + $0x468] sm:$0xff]  ;;  %v345_v15 = vld [vmem:[%s5278_s30 + $0x560] sm:$0xff] }
  0xab   : > { %4735 = vmatprep.subr.msk.bf16.mxu1 %vm586_vm0, %v519_v16  ;;  %4629 = vmatprep.mubr.msk.bf16.mxu0 %vm586_vm0, %v5269_v0  ;;  %v346_v16 = vld [vmem:[%s5278_s30 + $0x568] sm:$0xff]  ;;  %v499_v17 = vpack.c.bf16 %v314_v13, %v313_v12  ;;  %v387_v12 = vld [vmem:[%s5278_s30 + $0x6b0] sm:$0xff]  ;;  %v388_v13 = vld [vmem:[%s5278_s30 + $0x6b8] sm:$0xff] }
  0xac   : > { %4649 = vmatprep.mubr.msk.bf16.mxu1 %vm586_vm0, %v5269_v0  ;;  %v515_v18 = vpack.c.bf16 %v346_v16, %v345_v15  ;;  %v5670_v15 = vld [vmem:[%s6943_s1] sm:$0xff]   ;;  %v419_v16 = vld [vmem:[%s5278_s30 + $0x7b0] sm:$0xff]  ;;  %v536_v19 = vpack.c.bf16 %v388_v13, %v387_v12 }
  0xad   : > { %v804_v23 = vsel %vm586_vm0, %v499_v17, 0  ;;  %v420_v17 = vld [vmem:[%s5278_s30 + $0x7b8] sm:$0xff] }
  0xae   : > { %v852_v25 = vsel %vm586_vm0, %v515_v18, 0  ;;  %v552_v21 = vpack.c.bf16 %v420_v17, %v419_v16  ;;  %v379_v17 = vld [vmem:[%s5278_s30 + $0x670] sm:$0xff] }
  0xb1   : > { %4618 = vmatpush3.bf16.xpose.msra.mxu0 %v792_v27  ;;  %v315_v27 = vld [vmem:[%s5278_s30 + $0x470] sm:$0xff] }
  0xb2   : > { %4638 = vmatpush3.bf16.xpose.msra.mxu1 %v840_v29  ;;  %4728 = vmatprep.subr.msk.bf16.mxu0 %vm586_vm0, %v504_v28  ;;  %v316_v28 = vld [vmem:[%s5278_s30 + $0x478] sm:$0xff]  ;;  %v347_v29 = vld [vmem:[%s5278_s30 + $0x570] sm:$0xff] }
  0xb3   : > { %4736 = vmatprep.subr.msk.bf16.mxu1 %vm586_vm0, %v520_v30  ;;  %v348_v30 = vld [vmem:[%s5278_s30 + $0x578] sm:$0xff]  ;;  %v500_v31 = vpack.c.bf16 %v316_v28, %v315_v27  ;;  %v389_v28 = vld [vmem:[%s5278_s30 + $0x6c0] sm:$0xff] }
  0xb4   : > { %v516_v32 = vpack.c.bf16 %v348_v30, %v347_v29  ;;  %v390_v29 = vld [vmem:[%s5278_s30 + $0x6c8] sm:$0xff]  ;;  %v421_v30 = vld [vmem:[%s5278_s30 + $0x7c0] sm:$0xff] }
  0xb5   : > { %v807_v37 = vsel %vm586_vm0, %v500_v31, 0  ;;  %v422_v31 = vld [vmem:[%s5278_s30 + $0x7c8] sm:$0xff]  ;;  %v537_v33 = vpack.c.bf16 %v390_v29, %v389_v28 }
  0xb6   : > { %v855_v39 = vsel %vm586_vm0, %v516_v32, 0  ;;  %v553_v35 = vpack.c.bf16 %v422_v31, %v421_v30 }
  0xb9   : > { %4620 = vmatpush3.bf16.xpose.msra.mxu0 %v795_v41  ;;  %v365_v41 = vld [vmem:[%s5278_s30 + $0x600] sm:$0xff] }
  0xba   : > { %4640 = vmatpush3.bf16.xpose.msra.mxu1 %v843_v43  ;;  %4729 = vmatprep.subr.msk.bf16.mxu0 %vm586_vm0, %v505_v42  ;;  %v366_v42 = vld [vmem:[%s5278_s30 + $0x608] sm:$0xff]  ;;  %v397_v43 = vld [vmem:[%s5278_s30 + $0x700] sm:$0xff] }
  0xbb   : > { %4737 = vmatprep.subr.msk.bf16.mxu1 %vm586_vm0, %v521_v44  ;;  %v398_v44 = vld [vmem:[%s5278_s30 + $0x708] sm:$0xff]  ;;  %v525_v46 = vpack.c.bf16 %v366_v42, %v365_v41  ;;  %v391_v42 = vld [vmem:[%s5278_s30 + $0x6d0] sm:$0xff] }
  0xbc   : > { %v541_v47 = vpack.c.bf16 %v398_v44, %v397_v43  ;;  %v392_v43 = vld [vmem:[%s5278_s30 + $0x6d8] sm:$0xff]  ;;  %v423_v44 = vld [vmem:[%s5278_s30 + $0x7d0] sm:$0xff] }
  0xbd   : > { %v882_v52 = vsel %vm586_vm0, %v525_v46, 0  ;;  %v424_v46 = vld [vmem:[%s5278_s30 + $0x7d8] sm:$0xff]  ;;  %v538_v48 = vpack.c.bf16 %v392_v43, %v391_v42 }
  0xbe   : > { %v930_v53 = vsel %vm586_vm0, %v541_v47, 0 }
  0xc1   : > { %4622 = vmatpush3.bf16.xpose.msra.mxu0 %v798_v57  ;;  %v550_v57 = vpack.c.bf16 %v416_v51, %v415_v50  ;;  %v554_v50 = vpack.c.bf16 %v424_v46, %v423_v44  ;;  %v375_v51 = vld [vmem:[%s5278_s30 + $0x650] sm:$0xff] }
  0xc2   : > { %4642 = vmatpush3.bf16.xpose.msra.mxu1 %v846_v59  ;;  %4730 = vmatprep.subr.msk.bf16.mxu0 %vm586_vm0, %v506_v58  ;;  %v399_v58 = vld [vmem:[%s5278_s30 + $0x710] sm:$0xff]  ;;  %v400_v59 = vld [vmem:[%s5278_s30 + $0x718] sm:$0xff] }
  0xc3   : > { %4738 = vmatprep.subr.msk.bf16.mxu1 %vm586_vm0, %v522_v60  ;;  %v526_v60 = vpack.c.bf16 %v368_v56, %v367_v55  ;;  %v542_v61 = vpack.c.bf16 %v400_v59, %v399_v58  ;;  %v394_v58 = vld [vmem:[%s5278_s30 + $0x6e8] sm:$0xff]  ;;  %v425_v59 = vld [vmem:[%s5278_s30 + $0x7e0] sm:$0xff] }
  0xc5   : > { %v885_v2 = vsel %vm586_vm0, %v526_v60, 0  ;;  %v933_v4 = vsel %vm586_vm0, %v542_v61, 0  ;;  %v426_v60 = vld [vmem:[%s5278_s30 + $0x7e8] sm:$0xff] }
  0xc9   : > { %4624 = vmatpush3.bf16.xpose.msra.mxu0 %v801_v8  ;;  %v401_v8 = vld [vmem:[%s5278_s30 + $0x720] sm:$0xff] }
  0xca   : > { %4644 = vmatpush3.bf16.xpose.msra.mxu1 %v849_v10  ;;  %4731 = vmatprep.subr.msk.bf16.mxu0 %vm586_vm0, %v507_v9  ;;  %v402_v9 = vld [vmem:[%s5278_s30 + $0x728] sm:$0xff]  ;;  %v527_v10 = vpack.c.bf16 %v370_v7, %v369_v6  ;;  %v395_v7 = vld [vmem:[%s5278_s30 + $0x6f0] sm:$0xff] }
  0xcb   : > { %4739 = vmatprep.subr.msk.bf16.mxu1 %vm586_vm0, %v523_v11  ;;  %v543_v11 = vpack.c.bf16 %v402_v9, %v401_v8  ;;  %v396_v8 = vld [vmem:[%s5278_s30 + $0x6f8] sm:$0xff]  ;;  %v427_v9 = vld [vmem:[%s5278_s30 + $0x7f0] sm:$0xff] }
  0xcc   : > { %v888_v18 = vsel %vm586_vm0, %v527_v10, 0  ;;  %v428_v10 = vld [vmem:[%s5278_s30 + $0x7f8] sm:$0xff]  ;;  %v540_v12 = vpack.c.bf16 %v396_v8, %v395_v7 }
  0xcd   : > { %v936_v20 = vsel %vm586_vm0, %v543_v11, 0  ;;  %v556_v16 = vpack.c.bf16 %v428_v10, %v427_v9 }
  0xd1   : > { %4626 = vmatpush3.bf16.xpose.msra.mxu0 %v804_v23  ;;  %v372_v23 = vld [vmem:[%s5278_s30 + $0x638] sm:$0xff] }
  0xd2   : > { %4646 = vmatpush3.bf16.xpose.msra.mxu1 %v852_v25  ;;  %4732 = vmatprep.subr.msk.bf16.mxu0 %vm586_vm0, %v508_v24  ;;  %v403_v24 = vld [vmem:[%s5278_s30 + $0x730] sm:$0xff]  ;;  %v404_v25 = vld [vmem:[%s5278_s30 + $0x738] sm:$0xff] }
  0xd3   : > { %4740 = vmatprep.subr.msk.bf16.mxu1 %vm586_vm0, %v524_v26  ;;  %v528_v26 = vpack.c.bf16 %v372_v23, %v371_v22  ;;  %v544_v27 = vpack.c.bf16 %v404_v25, %v403_v24  ;;  %v5750_v25 = vpop.permute.xlu0 %565 }
  0xd5   : > { %v891_v32 = vsel %vm586_vm0, %v528_v26, 0  ;;  %v939_v34 = vsel %vm586_vm0, %v544_v27, 0 }
  0xd9   : > { %4628 = vmatpush3.bf16.xpose.msra.mxu0 %v807_v37  ;;  %v374_v37 = vld [vmem:[%s5278_s30 + $0x648] sm:$0xff] }
  0xda   : > { %4648 = vmatpush3.bf16.xpose.msra.mxu1 %v855_v39  ;;  %4741 = vmatprep.subr.msk.bf16.mxu0 %vm586_vm0, %v533_v38  ;;  %v405_v38 = vld [vmem:[%s5278_s30 + $0x740] sm:$0xff]  ;;  %v406_v39 = vld [vmem:[%s5278_s30 + $0x748] sm:$0xff] }
  0xdb   : > { %4749 = vmatprep.subr.msk.bf16.mxu1 %vm586_vm0, %v549_v40  ;;  %v529_v40 = vpack.c.bf16 %v374_v37, %v373_v36  ;;  %v545_v41 = vpack.c.bf16 %v406_v39, %v405_v38 }
  0xdd   : > { %v894_v47 = vsel %vm586_vm0, %v529_v40, 0  ;;  %v942_v49 = vsel %vm586_vm0, %v545_v41, 0 }
  0xe0   : > { %4630 = vmatmul.mubr.msk.bf16.vlgmr.msra.gmra.mrb[16].mxu0 %vm586_vm0, %v5269_v0 }
  0xe1   : > { %4650 = vmatmul.mubr.msk.bf16.vlgmr.msra.gmra.mrb[16].mxu1 %vm586_vm0, %v5269_v0  ;;  %4654 = vmatpush3.bf16.xpose.msra.mxu0 %v882_v52  ;;  %v417_v0 = vld [vmem:[%s5278_s30 + $0x7a0] sm:$0xff]  ;;  %v376_v52 = vld [vmem:[%s5278_s30 + $0x658] sm:$0xff] }
  0xe2   : > { %4674 = vmatpush3.bf16.xpose.msra.mxu1 %v930_v53  ;;  %4631 = vmatprep.mubr.msk.bf16.mxu0 %vm586_vm0, %v5408_v14  ;;  %v551_v5 = vpack.c.bf16 %v418_v1, %v417_v0  ;;  %v407_v53 = vld [vmem:[%s5278_s30 + $0x750] sm:$0xff]  ;;  %v530_v55 = vpack.c.bf16 %v376_v52, %v375_v51  ;;  %v555_v0 = vpack.c.bf16 %v426_v60, %v425_v59  ;;  %v377_v1 = vld [vmem:[%s5278_s30 + $0x660] sm:$0xff] }
  0xe3   : > { %4651 = vmatprep.mubr.msk.bf16.mxu1 %vm586_vm0, %v5408_v14  ;;  %4742 = vmatprep.subr.msk.bf16.mxu0 %vm586_vm0, %v534_v54  ;;  %v408_v54 = vld [vmem:[%s5278_s30 + $0x758] sm:$0xff] }
  0xe4   : > { %4750 = vmatprep.subr.msk.bf16.mxu1 %vm586_vm0, %v550_v57  ;;  %v546_v56 = vpack.c.bf16 %v408_v54, %v407_v53  ;;  %v393_v57 = vld [vmem:[%s5278_s30 + $0x6e0] sm:$0xff]  ;;  %v897_v61 = vsel %vm586_vm0, %v530_v55, 0 }
  0xe5   : > { %v539_v62 = vpack.c.bf16 %v394_v58, %v393_v57 }
  0xe6   : > { %v945_v63 = vsel %vm586_vm0, %v546_v56, 0 }
  0xe8   : > { %4632 = vmatmul.mubr.msk.bf16.gmra.mrb[20].mxu0 %vm586_vm0, %v5408_v14 }
  0xe9   : > { %4652 = vmatmul.mubr.msk.bf16.gmra.mrb[20].mxu1 %vm586_vm0, %v5408_v14  ;;  %4656 = vmatpush3.bf16.xpose.msra.mxu0 %v885_v2  ;;  %v378_v2 = vld [vmem:[%s5278_s30 + $0x668] sm:$0xff] }
  0xea   : > { %4676 = vmatpush3.bf16.xpose.msra.mxu1 %v933_v4  ;;  %4743 = vmatprep.subr.msk.bf16.mxu0 %vm586_vm0, %v535_v3  ;;  %v409_v3 = vld [vmem:[%s5278_s30 + $0x760] sm:$0xff]  ;;  %v410_v4 = vld [vmem:[%s5278_s30 + $0x768] sm:$0xff] }
  0xeb   : > { %4751 = vmatprep.subr.msk.bf16.mxu1 %vm586_vm0, %v551_v5  ;;  %4669 = vmatprep.mubr.msk.bf16.mxu0 %vm586_vm0, %v5670_v15  ;;  %v531_v5 = vpack.c.bf16 %v378_v2, %v377_v1  ;;  %v547_v6 = vpack.c.bf16 %v410_v4, %v409_v3 }
  0xec   : > { %4689 = vmatprep.mubr.msk.bf16.mxu1 %vm586_vm0, %v5670_v15 }
  0xed   : > { %v900_v11 = vsel %vm586_vm0, %v531_v5, 0  ;;  %v948_v13 = vsel %vm586_vm0, %v547_v6, 0 }
  0xf1   : > { %4658 = vmatpush3.bf16.xpose.msra.mxu0 %v888_v18  ;;  %v380_v18 = vld [vmem:[%s5278_s30 + $0x678] sm:$0xff] }
  0xf2   : > { %4678 = vmatpush3.bf16.xpose.msra.mxu1 %v936_v20  ;;  %4744 = vmatprep.subr.msk.bf16.mxu0 %vm586_vm0, %v536_v19  ;;  %v411_v19 = vld [vmem:[%s5278_s30 + $0x770] sm:$0xff]  ;;  %v412_v20 = vld [vmem:[%s5278_s30 + $0x778] sm:$0xff] }
  0xf3   : > { %4752 = vmatprep.subr.msk.bf16.mxu1 %vm586_vm0, %v552_v21  ;;  %v532_v21 = vpack.c.bf16 %v380_v18, %v379_v17  ;;  %v548_v22 = vpack.c.bf16 %v412_v20, %v411_v19 }
  0xf5   : > { %v903_v23 = vsel %vm586_vm0, %v532_v21, 0  ;;  %v951_v24 = vsel %vm586_vm0, %v548_v22, 0 }
  0xf9   : > { %4660 = vmatpush3.bf16.xpose.msra.mxu0 %v891_v32 }
  0xfa   : > { %4680 = vmatpush3.bf16.xpose.msra.mxu1 %v939_v34  ;;  %4745 = vmatprep.subr.msk.bf16.mxu0 %vm586_vm0, %v537_v33 }
  0xfb   : > { %4753 = vmatprep.subr.msk.bf16.mxu1 %vm586_vm0, %v553_v35 }
 0x101   : > { %4662 = vmatpush3.bf16.xpose.msra.mxu0 %v894_v47  ;;  %v5762_v47 = vpop.permute.xlu1 %575 }
 0x102   : > { %4682 = vmatpush3.bf16.xpose.msra.mxu1 %v942_v49  ;;  %4746 = vmatprep.subr.msk.bf16.mxu0 %vm586_vm0, %v538_v48 }
 0x103   : > { %4754 = vmatprep.subr.msk.bf16.mxu1 %vm586_vm0, %v554_v50 }
 0x109   : > { %4664 = vmatpush3.bf16.xpose.msra.mxu0 %v897_v61 }
 0x10a   : > { %4684 = vmatpush3.bf16.xpose.msra.mxu1 %v945_v63  ;;  %4747 = vmatprep.subr.msk.bf16.mxu0 %vm586_vm0, %v539_v62 }
 0x10b   : > { %4755 = vmatprep.subr.msk.bf16.mxu1 %vm586_vm0, %v555_v0 }
 0x111   : > { %4666 = vmatpush3.bf16.xpose.msra.mxu0 %v900_v11 }
 0x112   : > { %4686 = vmatpush3.bf16.xpose.msra.mxu1 %v948_v13  ;;  %4748 = vmatprep.subr.msk.bf16.mxu0 %vm586_vm0, %v540_v12 }
 0x113   : > { %4756 = vmatprep.subr.msk.bf16.mxu1 %vm586_vm0, %v556_v16 }
 0x119   : > { %4668 = vmatpush3.bf16.xpose.msra.mxu0 %v903_v23 }
 0x11a   : > { %4688 = vmatpush3.bf16.xpose.msra.mxu1 %v951_v24 }
 0x120   : > { %4670 = vmatmul.mubr.msk.bf16.vlgmr.msra.gmra.mrb[24].mxu0 %vm586_vm0, %v5670_v15 }
 0x121   : > { %4690 = vmatmul.mubr.msk.bf16.vlgmr.msra.gmra.mrb[24].mxu1 %vm586_vm0, %v5670_v15  ;;  %4671 = vmatprep.mubr.msk.bf16.mxu0 %vm586_vm0, %v5408_v14  ;;  %v5752_v15 = vpop.permute.xlu0 %570 }
 0x122   : > { %4691 = vmatprep.mubr.msk.bf16.mxu1 %vm586_vm0, %v5408_v14 }
 0x128   : > { %4672 = vmatmul.mubr.msk.bf16.gmra.mrb[28].mxu0 %vm586_vm0, %v5408_v14 }
 0x129   : > { %4692 = vmatmul.mubr.msk.bf16.gmra.mrb[28].mxu1 %vm586_vm0, %v5408_v14  ;;  %1766 = vmatprep.mubr.bf16.mxu0 %v6946_v45 }
 0x12a   : > { %1827 = vmatprep.mubr.bf16.mxu1 %v6946_v45 }
 0x133   : > { %v1011_v26 = vpop.f32.mrb[0].mxu0 }
 0x134   : > { %v1012_v27 = vadd.f32 %v1011_v26, %v5750_v25  ;;  %v1062_v28 = vpop.f32.mrb[0].mxu1  ;;  %v1013_v29 = vpop.f32.mrb[1].mxu0 }
 0x135   : > { %v1063_v30 = vadd.f32 %v1062_v28, %v5750_v25  ;;  %v1014_v31 = vadd.f32 %v1013_v29, %v5750_v25  ;;  %v1064_v32 = vpop.f32.mrb[1].mxu1  ;;  %v1015_v33 = vpop.f32.mrb[2].mxu0 }
 0x136   : > { %v1433_v14 = vmul.f32 0.70710677, %v1012_v27  ;;  %v1065_v34 = vadd.f32 %v1064_v32, %v5750_v25  ;;  %v1016_v35 = vadd.f32 %v1015_v33, %v5752_v15  ;;  %v1066_v36 = vpop.f32.mrb[2].mxu1  ;;  %v1017_v37 = vpop.f32.mrb[3].mxu0  ;;  %v1385_v7 = vmul.f32 0.5, %v1012_v27 }
 0x137   : > { %v1435_v38 = vmul.f32 0.70710677, %v1063_v30  ;;  %v1434_v39 = vmul.f32 0.70710677, %v1014_v31  ;;  %v1068_v41 = vpop.f32.mrb[3].mxu1  ;;  %v1067_v43 = vadd.f32 %v1066_v36, %v5752_v15  ;;  %v1018_v44 = vadd.f32 %v1017_v37, %v5752_v15 }
 0x138   : > { %4807 = verf.f32 %v1433_v14  ;;  %v1436_v40 = vmul.f32 0.70710677, %v1065_v34  ;;  %v1449_v42 = vmul.f32 0.70710677, %v1016_v35  ;;  %v1069_v46 = vadd.f32 %v1068_v41, %v5752_v15 }
 0x139   : > { %4809 = verf.f32 %v1435_v38  ;;  %v1451_v48 = vmul.f32 0.70710677, %v1067_v43  ;;  %v1450_v50 = vmul.f32 0.70710677, %v1018_v44  ;;  %v1387_v10 = vmul.f32 0.5, %v1063_v30 }
 0x13a   : > { %4811 = verf.f32 %v1434_v39  ;;  %v1452_v51 = vmul.f32 0.70710677, %v1069_v46  ;;  %v1386_v12 = vmul.f32 0.5, %v1014_v31  ;;  %v1388_v13 = vmul.f32 0.5, %v1065_v34 }
 0x13b   : > { %4813 = verf.f32 %v1436_v40  ;;  %v1021_v49 = vpop.f32.mrb[4].mxu0  ;;  %v1401_v18 = vmul.f32 0.5, %v1016_v35  ;;  %v1403_v20 = vmul.f32 0.5, %v1067_v43  ;;  %v1402_v24 = vmul.f32 0.5, %v1018_v44 }
 0x13c   : > { %4815 = verf.f32 %v1449_v42  ;;  %v1072_v52 = vpop.f32.mrb[4].mxu1  ;;  %v1023_v53 = vpop.f32.mrb[5].mxu0  ;;  %v1022_v55 = vadd.f32 %v1021_v49, %v5762_v47  ;;  %v1404_v26 = vmul.f32 0.5, %v1069_v46 }
 0x13d   : > { %4817 = verf.f32 %v1451_v48  ;;  %v1074_v54 = vpop.f32.mrb[5].mxu1  ;;  %v1073_v56 = vadd.f32 %v1072_v52, %v5762_v47  ;;  %v1024_v57 = vadd.f32 %v1023_v53, %v5762_v47  ;;  %v1025_v59 = vpop.f32.mrb[6].mxu0 }
 0x13e   : > { %4819 = verf.f32 %v1450_v50  ;;  %v1075_v58 = vadd.f32 %v1074_v54, %v5762_v47  ;;  %v1076_v60 = vpop.f32.mrb[6].mxu1  ;;  %v1026_v61 = vpop.f32.mrb[7].mxu0  ;;  %v1465_v63 = vmul.f32 0.70710677, %v1022_v55  ;;  %v1417_v33 = vmul.f32 0.5, %v1022_v55 }
 0x13f   : > { %4821 = verf.f32 %v1452_v51  ;;  %v1077_v62 = vpop.f32.mrb[7].mxu1  ;;  %v1466_v0 = vmul.f32 0.70710677, %v1024_v57  ;;  %v1467_v2 = vmul.f32 0.70710677, %v1073_v56  ;;  %v1418_v31 = vmul.f32 0.5, %v1024_v57 }
 0x140   : > { %v1468_v1 = vmul.f32 0.70710677, %v1075_v58  ;;  %4823 = verf.f32 %v1465_v63  ;;  %v1420_v39 = vmul.f32 0.5, %v1075_v58  ;;  %v1419_v50 = vmul.f32 0.5, %v1073_v56 }
 0x141   : > { %4825 = verf.f32 %v1466_v0  ;;  %v5773_v0 = vld [vmem:[%s6943_s1 + $0xc] sm:$0xff]  }
 0x142   : > { %v4808_v3 = vpop.eup %4807  ;;  %4827 = verf.f32 %v1468_v1 }
 0x143   : > { %v4810_v4 = vpop.eup %4809  ;;  %4829 = verf.f32 %v1467_v2  ;;  %v1529_v8 = vadd.f32 1.0, %v4808_v3  ;;  %v5786_v2 = vld [vmem:[%s6943_s1 + $0x14] sm:$0xff]   ;;  %v5797_v3 = vld [vmem:[%s6943_s1 + $0x1c] ss:$0 sps:$4 sm:$0xff]  }
 0x144   : > { %v4812_v5 = vpop.eup %4811  ;;  %v1531_v11 = vadd.f32 1.0, %v4810_v4 }
 0x145   : > { %v4814_v6 = vpop.eup %4813  ;;  %v1530_v17 = vadd.f32 1.0, %v4812_v5  ;;  %v1577_v29 = vmul.f32 %v1529_v8, %v1385_v7 }
 0x146   : > { %v4816_v9 = vpop.eup %4815  ;;  %v1532_v22 = vadd.f32 1.0, %v4814_v6  ;;  %v1579_v14 = vmul.f32 %v1531_v11, %v1387_v10 }
 0x147   : > { %v4818_v16 = vpop.eup %4817  ;;  %v1545_v19 = vadd.f32 1.0, %v4816_v9  ;;  %v1578_v37 = vmul.f32 %v1530_v17, %v1386_v12 }
 0x148   : > { %v4820_v21 = vpop.eup %4819  ;;  %v1547_v23 = vadd.f32 1.0, %v4818_v16  ;;  %v1580_v41 = vmul.f32 %v1532_v22, %v1388_v13 }
 0x149   : > { %v4822_v28 = vpop.eup %4821  ;;  %v1593_v32 = vmul.f32 %v1545_v19, %v1401_v18  ;;  %v1546_v27 = vadd.f32 1.0, %v4820_v21 }
 0x14a   : > { %v1595_v30 = vmul.f32 %v1547_v23, %v1403_v20  ;;  %v1548_v36 = vadd.f32 1.0, %v4822_v28  ;;  %v4824_v34 = vpop.eup %4823 }
 0x14b   : > { %v1630_v38 = vpack.c.bf16 %v1593_v32, %v1577_v29  ;;  %v1594_v35 = vmul.f32 %v1546_v27, %v1402_v24  ;;  %v4826_v40 = vpop.eup %4825  ;;  %v1561_v44 = vadd.f32 1.0, %v4824_v34 }
 0x14c   : > { %v1632_v42 = vpack.c.bf16 %v1595_v30, %v1579_v14  ;;  %v1596_v43 = vmul.f32 %v1548_v36, %v1404_v26  ;;  %v4828_v46 = vpop.eup %4827  ;;  %v1562_v49 = vadd.f32 1.0, %v4826_v40 }
 0x14d   : > { %v1631_v48 = vpack.c.bf16 %v1594_v35, %v1578_v37  ;;  %v4830_v51 = vpop.eup %4829  ;;  %v1564_v53 = vadd.f32 1.0, %v4828_v46  ;;  %v1609_v54 = vmul.f32 %v1561_v44, %v1417_v33 }
 0x14e   : > { %v1633_v52 = vpack.c.bf16 %v1596_v43, %v1580_v41  ;;  %v1610_v55 = vmul.f32 %v1562_v49, %v1418_v31  ;;  %v1563_v57 = vadd.f32 1.0, %v4830_v51 }
 0x14f   : > { %1734 = vmatprep.subr.bf16.mxu0 %v1631_v48  ;;  %v1612_v58 = vmul.f32 %v1564_v53, %v1420_v39  ;;  %v1646_v59 = vpack.c.bf16 %v1609_v54, %v1609_v54 }
 0x150   : > { %1795 = vmatprep.subr.bf16.mxu1 %v1633_v52  ;;  %1735 = vmatpush1.bf16.msra.mxu0 %v1630_v38  ;;  %v1647_v60 = vpack.c.bf16 %v1610_v55, %v1610_v55  ;;  %v1611_v61 = vmul.f32 %v1563_v57, %v1419_v50 }
 0x151   : > { %1796 = vmatpush1.bf16.msra.mxu1 %v1632_v42  ;;  %v1649_v62 = vpack.c.bf16 %v1612_v58, %v1612_v58  ;;  %v1687_v63 = vsel %vm1685_vm1, %v1646_v59, 0 }
 0x152   : > { %4475 = vmatprep.subr.msk.bf16.mxu0 %vm1685_vm1, %v1647_v60  ;;  %v1648_v56 = vpack.c.bf16 %v1611_v61, %v1611_v61 }
 0x153   : > { %4479 = vmatprep.subr.msk.bf16.mxu1 %vm1685_vm1, %v1649_v62 }
 0x154   : > { %1737 = vmatpush1.bf16.msra.mxu0 %v1687_v63  ;;  %v1693_v1 = vsel %vm1685_vm1, %v1648_v56, 0 }
 0x155   : > { %1798 = vmatpush1.bf16.msra.mxu1 %v1693_v1 }
 0x157   : > { %4476 = vmatmul.mubr.msk.bf16.vlgmr.msra.gmra.mrb[32].mxu0 %vm1675_vm2, %v5773_v0 }
 0x158   : > { %1776 = vmatprep.mubr.bf16.mxu0 %v6946_v45  ;;  %4480 = vmatmul.mubr.msk.bf16.vlgmr.msra.gmra.mrb[32].mxu1 %vm1675_vm2, %v5773_v0 }
 0x159   : > { %1837 = vmatprep.mubr.bf16.mxu1 %v6946_v45 }
 0x15f   : > { %4477 = vmatmul.mubr.msk.bf16.gmra.mrb[36].mxu0 %vm1675_vm2, %v5786_v2 }
 0x160   : > { %1786 = vmatprep.mubr.bf16.mxu0 %v6946_v45  ;;  %4481 = vmatmul.mubr.msk.bf16.gmra.mrb[36].mxu1 %vm1675_vm2, %v5786_v2 }
 0x161   : > { %1847 = vmatprep.mubr.bf16.mxu1 %v6946_v45 }
 0x167   : > { %4478 = vmatmul.mubr.msk.bf16.gmra.mrb[40].mxu0 %vm1675_vm2, %v5797_v3 }
 0x168   : > { %1888 = vmatprep.mubr.bf16.mxu0 %v6946_v45  ;;  %4482 = vmatmul.mubr.msk.bf16.gmra.mrb[40].mxu1 %vm1675_vm2, %v5797_v3 }
 0x169   : > { %1949 = vmatprep.mubr.bf16.mxu1 %v6946_v45 }
 0x173   : > { %v1113_v4 = vpop.f32.mrb[8].mxu0 }
 0x174   : > { %v1114_v5 = vadd.f32 %v1113_v4, %v5750_v25  ;;  %v1164_v6 = vpop.f32.mrb[8].mxu1  ;;  %v1115_v7 = vpop.f32.mrb[9].mxu0 }
 0x175   : > { %v1165_v8 = vadd.f32 %v1164_v6, %v5750_v25  ;;  %v1116_v9 = vadd.f32 %v1115_v7, %v5750_v25  ;;  %v1166_v10 = vpop.f32.mrb[9].mxu1  ;;  %v1117_v11 = vpop.f32.mrb[10].mxu0 }
 0x176   : > { %v1437_v12 = vmul.f32 0.70710677, %v1114_v5  ;;  %v1167_v13 = vadd.f32 %v1166_v10, %v5750_v25  ;;  %v1118_v16 = vadd.f32 %v1117_v11, %v5752_v15  ;;  %v1168_v17 = vpop.f32.mrb[10].mxu1  ;;  %v1119_v18 = vpop.f32.mrb[11].mxu0  ;;  %v1389_v52 = vmul.f32 0.5, %v1114_v5 }
 0x177   : > { %v1439_v19 = vmul.f32 0.70710677, %v1165_v8  ;;  %v1438_v20 = vmul.f32 0.70710677, %v1116_v9  ;;  %v1170_v22 = vpop.f32.mrb[11].mxu1  ;;  %v1169_v24 = vadd.f32 %v1168_v17, %v5752_v15  ;;  %v1120_v26 = vadd.f32 %v1119_v18, %v5752_v15 }
 0x178   : > { %4831 = verf.f32 %v1437_v12  ;;  %v1440_v21 = vmul.f32 0.70710677, %v1167_v13  ;;  %v1453_v23 = vmul.f32 0.70710677, %v1118_v16  ;;  %v1171_v28 = vadd.f32 %v1170_v22, %v5752_v15 }
 0x179   : > { %4833 = verf.f32 %v1439_v19  ;;  %v1455_v29 = vmul.f32 0.70710677, %v1169_v24  ;;  %v1454_v27 = vmul.f32 0.70710677, %v1120_v26  ;;  %v1391_v55 = vmul.f32 0.5, %v1165_v8 }
 0x17a   : > { %4835 = verf.f32 %v1438_v20  ;;  %v1456_v33 = vmul.f32 0.70710677, %v1171_v28  ;;  %v1390_v58 = vmul.f32 0.5, %v1116_v9  ;;  %v1392_v59 = vmul.f32 0.5, %v1167_v13 }
 0x17b   : > { %4837 = verf.f32 %v1440_v21  ;;  %v1123_v32 = vpop.f32.mrb[12].mxu0  ;;  %v1405_v62 = vmul.f32 0.5, %v1118_v16  ;;  %v1407_v56 = vmul.f32 0.5, %v1169_v24  ;;  %v1406_v7 = vmul.f32 0.5, %v1120_v26 }
 0x17c   : > { %4839 = verf.f32 %v1453_v23  ;;  %v1174_v14 = vpop.f32.mrb[12].mxu1  ;;  %v1124_v30 = vadd.f32 %v1123_v32, %v5762_v47  ;;  %v1125_v31 = vpop.f32.mrb[13].mxu0  ;;  %v1408_v10 = vmul.f32 0.5, %v1171_v28 }
 0x17d   : > { %4841 = verf.f32 %v1455_v29  ;;  %v1175_v36 = vadd.f32 %v1174_v14, %v5762_v47  ;;  %v1176_v34 = vpop.f32.mrb[13].mxu1  ;;  %v1126_v37 = vadd.f32 %v1125_v31, %v5762_v47  ;;  %v1127_v35 = vpop.f32.mrb[14].mxu0 }
 0x17e   : > { %4843 = verf.f32 %v1454_v27  ;;  %v1177_v38 = vadd.f32 %v1176_v34, %v5762_v47  ;;  %v1178_v39 = vpop.f32.mrb[14].mxu1  ;;  %v1469_v40 = vmul.f32 0.70710677, %v1124_v30  ;;  %v1128_v41 = vpop.f32.mrb[15].mxu0  ;;  %v1421_v18 = vmul.f32 0.5, %v1124_v30 }
 0x17f   : > { %4845 = verf.f32 %v1456_v33  ;;  %v1179_v42 = vpop.f32.mrb[15].mxu1  ;;  %v1471_v43 = vmul.f32 0.70710677, %v1175_v36  ;;  %v1470_v44 = vmul.f32 0.70710677, %v1126_v37  ;;  %v1423_v9 = vmul.f32 0.5, %v1175_v36 }
 0x180   : > { %4847 = verf.f32 %v1469_v40  ;;  %v1472_v46 = vmul.f32 0.70710677, %v1177_v38  ;;  %v1422_v23 = vmul.f32 0.5, %v1126_v37  ;;  %v1424_v31 = vmul.f32 0.5, %v1177_v38 }
 0x181   : > { %4849 = verf.f32 %v1471_v43 }
 0x182   : > { %v4832_v48 = vpop.eup %4831  ;;  %4851 = verf.f32 %v1470_v44 }
 0x183   : > { %v4834_v49 = vpop.eup %4833  ;;  %4853 = verf.f32 %v1472_v46  ;;  %v1533_v53 = vadd.f32 1.0, %v4832_v48 }
 0x184   : > { %v4836_v50 = vpop.eup %4835  ;;  %v1535_v57 = vadd.f32 1.0, %v4834_v49 }
 0x185   : > { %v4838_v51 = vpop.eup %4837  ;;  %v1534_v61 = vadd.f32 1.0, %v4836_v50  ;;  %v1581_v12 = vmul.f32 %v1533_v53, %v1389_v52 }
 0x186   : > { %v4840_v54 = vpop.eup %4839  ;;  %v1536_v4 = vadd.f32 1.0, %v4838_v51  ;;  %v1583_v19 = vmul.f32 %v1535_v57, %v1391_v55 }
 0x187   : > { %v4842_v60 = vpop.eup %4841  ;;  %v1549_v63 = vadd.f32 1.0, %v4840_v54  ;;  %v1582_v21 = vmul.f32 %v1534_v61, %v1390_v58 }
 0x188   : > { %v4844_v1 = vpop.eup %4843  ;;  %v1551_v6 = vadd.f32 1.0, %v4842_v60  ;;  %v1584_v29 = vmul.f32 %v1536_v4, %v1392_v59 }
 0x189   : > { %v4846_v11 = vpop.eup %4845  ;;  %v1597_v17 = vmul.f32 %v1549_v63, %v1405_v62  ;;  %v1550_v5 = vadd.f32 1.0, %v4844_v1 }
 0x18a   : > { %v1599_v8 = vmul.f32 %v1551_v6, %v1407_v56  ;;  %v1552_v20 = vadd.f32 1.0, %v4846_v11  ;;  %v4848_v13 = vpop.eup %4847 }
 0x18b   : > { %v1634_v22 = vpack.c.bf16 %v1597_v17, %v1581_v12  ;;  %v1598_v16 = vmul.f32 %v1550_v5, %v1406_v7  ;;  %v4850_v24 = vpop.eup %4849  ;;  %v1565_v26 = vadd.f32 1.0, %v4848_v13 }
 0x18c   : > { %v1636_v32 = vpack.c.bf16 %v1599_v8, %v1583_v19  ;;  %v1600_v27 = vmul.f32 %v1552_v20, %v1408_v10  ;;  %v4852_v28 = vpop.eup %4851  ;;  %v1567_v14 = vadd.f32 1.0, %v4850_v24 }
 0x18d   : > { %v1635_v33 = vpack.c.bf16 %v1598_v16, %v1582_v21  ;;  %v4854_v34 = vpop.eup %4853  ;;  %v1613_v35 = vmul.f32 %v1565_v26, %v1421_v18  ;;  %v1566_v39 = vadd.f32 1.0, %v4852_v28 }
 0x18e   : > { %v1637_v30 = vpack.c.bf16 %v1600_v27, %v1584_v29  ;;  %v1615_v36 = vmul.f32 %v1567_v14, %v1423_v9  ;;  %v1568_v40 = vadd.f32 1.0, %v4854_v34 }
 0x18f   : > { %1856 = vmatprep.subr.bf16.mxu0 %v1635_v33  ;;  %v1650_v41 = vpack.c.bf16 %v1613_v35, %v1613_v35  ;;  %v1614_v37 = vmul.f32 %v1566_v39, %v1422_v23 }
 0x190   : > { %1917 = vmatprep.subr.bf16.mxu1 %v1637_v30  ;;  %1857 = vmatpush1.bf16.msra.mxu0 %v1634_v22  ;;  %v1652_v42 = vpack.c.bf16 %v1615_v36, %v1615_v36  ;;  %v1616_v43 = vmul.f32 %v1568_v40, %v1424_v31 }
 0x191   : > { %1918 = vmatpush1.bf16.msra.mxu1 %v1636_v32  ;;  %v1651_v44 = vpack.c.bf16 %v1614_v37, %v1614_v37  ;;  %v1699_v46 = vsel %vm1685_vm1, %v1650_v41, 0 }
 0x192   : > { %v1653_v48 = vpack.c.bf16 %v1616_v43, %v1616_v43  ;;  %v1705_v38 = vsel %vm1685_vm1, %v1652_v42, 0 }
 0x193   : > { %4483 = vmatprep.subr.msk.bf16.mxu0 %vm1685_vm1, %v1651_v44 }
 0x194   : > { %4487 = vmatprep.subr.msk.bf16.mxu1 %vm1685_vm1, %v1653_v48  ;;  %1859 = vmatpush1.bf16.msra.mxu0 %v1699_v46 }
 0x195   : > { %1920 = vmatpush1.bf16.msra.mxu1 %v1705_v38 }
 0x197   : > { %4484 = vmatmul.mubr.msk.bf16.vlgmr.msra.gmra.mrb[44].mxu0 %vm1675_vm2, %v5773_v0 }
 0x198   : > { %4488 = vmatmul.mubr.msk.bf16.vlgmr.msra.gmra.mrb[44].mxu1 %vm1675_vm2, %v5773_v0  ;;  %1898 = vmatprep.mubr.bf16.mxu0 %v6946_v45 }
 0x199   : > { %1959 = vmatprep.mubr.bf16.mxu1 %v6946_v45 }
 0x19f   : > { %4485 = vmatmul.mubr.msk.bf16.gmra.mrb[48].mxu0 %vm1675_vm2, %v5786_v2 }
 0x1a0   : > { %4489 = vmatmul.mubr.msk.bf16.gmra.mrb[48].mxu1 %vm1675_vm2, %v5786_v2  ;;  %1908 = vmatprep.mubr.bf16.mxu0 %v6946_v45 }
 0x1a1   : > { %1969 = vmatprep.mubr.bf16.mxu1 %v6946_v45 }
 0x1a7   : > { %4486 = vmatmul.mubr.msk.bf16.gmra.mrb[52].mxu0 %vm1675_vm2, %v5797_v3 }
 0x1a8   : > { %4490 = vmatmul.mubr.msk.bf16.gmra.mrb[52].mxu1 %vm1675_vm2, %v5797_v3  ;;  %2010 = vmatprep.mubr.bf16.mxu0 %v6946_v45 }
 0x1a9   : > { %2071 = vmatprep.mubr.bf16.mxu1 %v6946_v45 }
 0x1b3   : > { %v1215_v49 = vpop.f32.mrb[16].mxu0 }
 0x1b4   : > { %v1216_v50 = vadd.f32 %v1215_v49, %v5750_v25  ;;  %v1266_v51 = vpop.f32.mrb[16].mxu1  ;;  %v1217_v52 = vpop.f32.mrb[17].mxu0 }
 0x1b5   : > { %v1267_v53 = vadd.f32 %v1266_v51, %v5750_v25  ;;  %v1218_v54 = vadd.f32 %v1217_v52, %v5750_v25  ;;  %v1268_v55 = vpop.f32.mrb[17].mxu1  ;;  %v1219_v57 = vpop.f32.mrb[18].mxu0 }
 0x1b6   : > { %v1441_v58 = vmul.f32 0.70710677, %v1216_v50  ;;  %v1269_v59 = vadd.f32 %v1268_v55, %v5750_v25  ;;  %v1220_v60 = vadd.f32 %v1219_v57, %v5752_v15  ;;  %v1270_v61 = vpop.f32.mrb[18].mxu1  ;;  %v1221_v62 = vpop.f32.mrb[19].mxu0  ;;  %v1393_v39 = vmul.f32 0.5, %v1216_v50 }
 0x1b7   : > { %v1443_v63 = vmul.f32 0.70710677, %v1267_v53  ;;  %v1442_v56 = vmul.f32 0.70710677, %v1218_v54  ;;  %v1272_v4 = vpop.f32.mrb[19].mxu1  ;;  %v1271_v7 = vadd.f32 %v1270_v61, %v5752_v15  ;;  %v1222_v10 = vadd.f32 %v1221_v62, %v5752_v15 }
 0x1b8   : > { %4855 = verf.f32 %v1441_v58  ;;  %v1444_v1 = vmul.f32 0.70710677, %v1269_v59  ;;  %v1457_v6 = vmul.f32 0.70710677, %v1220_v60  ;;  %v1273_v11 = vadd.f32 %v1272_v4, %v5752_v15 }
 0x1b9   : > { %4857 = verf.f32 %v1443_v63  ;;  %v1459_v12 = vmul.f32 0.70710677, %v1271_v7  ;;  %v1458_v5 = vmul.f32 0.70710677, %v1222_v10  ;;  %v1395_v36 = vmul.f32 0.5, %v1267_v53 }
 0x1ba   : > { %4859 = verf.f32 %v1442_v56  ;;  %v1460_v18 = vmul.f32 0.70710677, %v1273_v11  ;;  %v1394_v37 = vmul.f32 0.5, %v1218_v54  ;;  %v1409_v43 = vmul.f32 0.5, %v1220_v60 }
 0x1bb   : > { %4861 = verf.f32 %v1444_v1  ;;  %v1225_v17 = vpop.f32.mrb[20].mxu0  ;;  %v1396_v48 = vmul.f32 0.5, %v1269_v59  ;;  %v1411_v49 = vmul.f32 0.5, %v1271_v7  ;;  %v1410_v58 = vmul.f32 0.5, %v1222_v10 }
 0x1bc   : > { %4863 = verf.f32 %v1457_v6  ;;  %v1276_v19 = vpop.f32.mrb[20].mxu1  ;;  %v1226_v8 = vadd.f32 %v1225_v17, %v5762_v47  ;;  %v1227_v9 = vpop.f32.mrb[21].mxu0  ;;  %v1412_v50 = vmul.f32 0.5, %v1273_v11 }
 0x1bd   : > { %4865 = verf.f32 %v1459_v12  ;;  %v1277_v20 = vadd.f32 %v1276_v19, %v5762_v47  ;;  %v1278_v13 = vpop.f32.mrb[21].mxu1  ;;  %v1228_v21 = vadd.f32 %v1227_v9, %v5762_v47  ;;  %v1229_v16 = vpop.f32.mrb[22].mxu0 }
 0x1be   : > { %4867 = verf.f32 %v1458_v5  ;;  %v1279_v22 = vadd.f32 %v1278_v13, %v5762_v47  ;;  %v1280_v23 = vpop.f32.mrb[22].mxu1  ;;  %v1473_v24 = vmul.f32 0.70710677, %v1226_v8  ;;  %v1230_v29 = vpop.f32.mrb[23].mxu0  ;;  %v1425_v60 = vmul.f32 0.5, %v1226_v8 }
 0x1bf   : > { %4869 = verf.f32 %v1460_v18  ;;  %v1281_v32 = vpop.f32.mrb[23].mxu1  ;;  %v1475_v27 = vmul.f32 0.70710677, %v1277_v20  ;;  %v1474_v26 = vmul.f32 0.70710677, %v1228_v21  ;;  %v1427_v18 = vmul.f32 0.5, %v1277_v20 }
 0x1c0   : > { %4871 = verf.f32 %v1473_v24  ;;  %v1476_v28 = vmul.f32 0.70710677, %v1279_v22  ;;  %v1426_v16 = vmul.f32 0.5, %v1228_v21  ;;  %v1428_v29 = vmul.f32 0.5, %v1279_v22 }
 0x1c1   : > { %4873 = verf.f32 %v1475_v27 }
 0x1c2   : > { %v4856_v33 = vpop.eup %4855  ;;  %4875 = verf.f32 %v1474_v26 }
 0x1c3   : > { %v4858_v14 = vpop.eup %4857  ;;  %4877 = verf.f32 %v1476_v28  ;;  %v1537_v30 = vadd.f32 1.0, %v4856_v33 }
 0x1c4   : > { %v4860_v31 = vpop.eup %4859  ;;  %v1539_v40 = vadd.f32 1.0, %v4858_v14 }
 0x1c5   : > { %v4862_v34 = vpop.eup %4861  ;;  %v1538_v42 = vadd.f32 1.0, %v4860_v31  ;;  %v1585_v55 = vmul.f32 %v1537_v30, %v1393_v39 }
 0x1c6   : > { %v4864_v35 = vpop.eup %4863  ;;  %v1540_v38 = vadd.f32 1.0, %v4862_v34  ;;  %v1587_v62 = vmul.f32 %v1539_v40, %v1395_v36 }
 0x1c7   : > { %v4866_v41 = vpop.eup %4865  ;;  %v1553_v44 = vadd.f32 1.0, %v4864_v35  ;;  %v1586_v1 = vmul.f32 %v1538_v42, %v1394_v37 }
 0x1c8   : > { %v4868_v46 = vpop.eup %4867  ;;  %v1555_v51 = vadd.f32 1.0, %v4866_v41  ;;  %v1588_v12 = vmul.f32 %v1540_v38, %v1396_v48 }
 0x1c9   : > { %v4870_v52 = vpop.eup %4869  ;;  %v1601_v57 = vmul.f32 %v1553_v44, %v1409_v43  ;;  %v1554_v61 = vadd.f32 1.0, %v4868_v46 }
 0x1ca   : > { %v1603_v63 = vmul.f32 %v1555_v51, %v1411_v49  ;;  %v1556_v53 = vadd.f32 1.0, %v4870_v52  ;;  %v4872_v56 = vpop.eup %4871 }
 0x1cb   : > { %v1638_v54 = vpack.c.bf16 %v1601_v57, %v1585_v55  ;;  %v1602_v4 = vmul.f32 %v1554_v61, %v1410_v58  ;;  %v4874_v6 = vpop.eup %4873  ;;  %v1569_v7 = vadd.f32 1.0, %v4872_v56 }
 0x1cc   : > { %v1640_v59 = vpack.c.bf16 %v1603_v63, %v1587_v62  ;;  %v1604_v17 = vmul.f32 %v1556_v53, %v1412_v50  ;;  %v4876_v5 = vpop.eup %4875  ;;  %v1571_v19 = vadd.f32 1.0, %v4874_v6 }
 0x1cd   : > { %v1639_v9 = vpack.c.bf16 %v1602_v4, %v1586_v1  ;;  %v4878_v10 = vpop.eup %4877  ;;  %v1617_v13 = vmul.f32 %v1569_v7, %v1425_v60  ;;  %v1570_v23 = vadd.f32 1.0, %v4876_v5 }
 0x1ce   : > { %v1641_v11 = vpack.c.bf16 %v1604_v17, %v1588_v12  ;;  %v1619_v24 = vmul.f32 %v1571_v19, %v1427_v18  ;;  %v1572_v32 = vadd.f32 1.0, %v4878_v10 }
 0x1cf   : > { %1978 = vmatprep.subr.bf16.mxu0 %v1639_v9  ;;  %v1654_v27 = vpack.c.bf16 %v1617_v13, %v1617_v13  ;;  %v1618_v8 = vmul.f32 %v1570_v23, %v1426_v16 }
 0x1d0   : > { %2039 = vmatprep.subr.bf16.mxu1 %v1641_v11  ;;  %1979 = vmatpush1.bf16.msra.mxu0 %v1638_v54  ;;  %v1656_v26 = vpack.c.bf16 %v1619_v24, %v1619_v24  ;;  %v1620_v28 = vmul.f32 %v1572_v32, %v1428_v29 }
 0x1d1   : > { %2040 = vmatpush1.bf16.msra.mxu1 %v1640_v59  ;;  %v1655_v33 = vpack.c.bf16 %v1618_v8, %v1618_v8  ;;  %v1711_v20 = vsel %vm1685_vm1, %v1654_v27, 0 }
 0x1d2   : > { %v1657_v14 = vpack.c.bf16 %v1620_v28, %v1620_v28  ;;  %v1717_v31 = vsel %vm1685_vm1, %v1656_v26, 0 }
 0x1d3   : > { %4491 = vmatprep.subr.msk.bf16.mxu0 %vm1685_vm1, %v1655_v33 }
 0x1d4   : > { %4495 = vmatprep.subr.msk.bf16.mxu1 %vm1685_vm1, %v1657_v14  ;;  %1981 = vmatpush1.bf16.msra.mxu0 %v1711_v20 }
 0x1d5   : > { %2042 = vmatpush1.bf16.msra.mxu1 %v1717_v31 }
 0x1d7   : > { %4492 = vmatmul.mubr.msk.bf16.vlgmr.msra.gmra.mrb[56].mxu0 %vm1675_vm2, %v5773_v0 }
 0x1d8   : > { %4496 = vmatmul.mubr.msk.bf16.vlgmr.msra.gmra.mrb[56].mxu1 %vm1675_vm2, %v5773_v0  ;;  %2020 = vmatprep.mubr.bf16.mxu0 %v6946_v45 }
 0x1d9   : > { %2081 = vmatprep.mubr.bf16.mxu1 %v6946_v45 }
 0x1df   : > { %4493 = vmatmul.mubr.msk.bf16.gmra.mrb[60].mxu0 %vm1675_vm2, %v5786_v2 }
 0x1e0   : > { %4497 = vmatmul.mubr.msk.bf16.gmra.mrb[60].mxu1 %vm1675_vm2, %v5786_v2  ;;  %2030 = vmatprep.mubr.bf16.mxu0 %v6946_v45 }
 0x1e1   : > { %2091 = vmatprep.mubr.bf16.mxu1 %v6946_v45 }
 0x1e7   : > { %4494 = vmatmul.mubr.msk.bf16.gmra.mrb[64].mxu0 %vm1675_vm2, %v5797_v3 }
 0x1e8   : > { %4498 = vmatmul.mubr.msk.bf16.gmra.mrb[64].mxu1 %vm1675_vm2, %v5797_v3  ;;  %2132 = vmatprep.mubr.bf16.mxu0 %v6946_v45 }
 0x1e9   : > { %2193 = vmatprep.mubr.bf16.mxu1 %v6946_v45 }
 0x1f3   : > { %v1317_v21 = vpop.f32.mrb[24].mxu0 }
 0x1f4   : > { %v1318_v22 = vadd.f32 %v1317_v21, %v5750_v25  ;;  %v1368_v34 = vpop.f32.mrb[24].mxu1  ;;  %v1319_v30 = vpop.f32.mrb[25].mxu0 }
 0x1f5   : > { %v1369_v35 = vadd.f32 %v1368_v34, %v5750_v25  ;;  %v1320_v39 = vadd.f32 %v1319_v30, %v5750_v25  ;;  %v1370_v36 = vpop.f32.mrb[25].mxu1  ;;  %v1321_v40 = vpop.f32.mrb[26].mxu0 }
 0x1f6   : > { %v1445_v41 = vmul.f32 0.70710677, %v1318_v22  ;;  %v1371_v37 = vadd.f32 %v1370_v36, %v5750_v25  ;;  %v1322_v42 = vadd.f32 %v1321_v40, %v5752_v15  ;;  %v1372_v43 = vpop.f32.mrb[26].mxu1  ;;  %v1323_v44 = vpop.f32.mrb[27].mxu0 }
 0x1f7   : > { %v1447_v46 = vmul.f32 0.70710677, %v1369_v35  ;;  %v1446_v48 = vmul.f32 0.70710677, %v1320_v39  ;;  %v1374_v49 = vpop.f32.mrb[27].mxu1  ;;  %v1373_v52 = vadd.f32 %v1372_v43, %v5752_v15  ;;  %v1324_v55 = vadd.f32 %v1323_v44, %v5752_v15 }
 0x1f8   : > { %4879 = verf.f32 %v1445_v41  ;;  %v1448_v38 = vmul.f32 0.70710677, %v1371_v37  ;;  %v1461_v51 = vmul.f32 0.70710677, %v1322_v42  ;;  %v1375_v57 = vadd.f32 %v1374_v49, %v5752_v15 }
 0x1f9   : > { %4881 = verf.f32 %v1447_v46  ;;  %v1463_v25 = vmul.f32 0.70710677, %v1373_v52  ;;  %v1462_v61 = vmul.f32 0.70710677, %v1324_v55  ;;  %v1399_v23 = vmul.f32 0.5, %v1369_v35 }
 0x1fa   : > { %4883 = verf.f32 %v1446_v48  ;;  %v1464_v62 = vmul.f32 0.70710677, %v1375_v57  ;;  %v1398_v29 = vmul.f32 0.5, %v1320_v39  ;;  %v1413_v27 = vmul.f32 0.5, %v1322_v42 }
 0x1fb   : > { %4885 = verf.f32 %v1448_v38  ;;  %v1327_v58 = vpop.f32.mrb[28].mxu0  ;;  %v1400_v28 = vmul.f32 0.5, %v1371_v37  ;;  %v1415_v20 = vmul.f32 0.5, %v1373_v52  ;;  %v1414_v30 = vmul.f32 0.5, %v1324_v55 }
 0x1fc   : > { %4887 = verf.f32 %v1461_v51  ;;  %v1378_v63 = vpop.f32.mrb[28].mxu1  ;;  %v1328_v50 = vadd.f32 %v1327_v58, %v5762_v47  ;;  %v1329_v56 = vpop.f32.mrb[29].mxu0 }
 0x1fd   : > { %4889 = verf.f32 %v1463_v25  ;;  %v1379_v53 = vadd.f32 %v1378_v63, %v5762_v47  ;;  %v1380_v1 = vpop.f32.mrb[29].mxu1  ;;  %v1330_v54 = vadd.f32 %v1329_v56, %v5762_v47  ;;  %v1331_v15 = vpop.f32.mrb[30].mxu0 }
 0x1fe   : > { %4891 = verf.f32 %v1462_v61  ;;  %v1381_v4 = vadd.f32 %v1380_v1, %v5762_v47  ;;  %v1382_v60 = vpop.f32.mrb[30].mxu1  ;;  %v1477_v6 = vmul.f32 0.70710677, %v1328_v50  ;;  %v1332_v12 = vpop.f32.mrb[31].mxu0  ;;  %v1397_v47 = vmul.f32 0.5, %v1318_v22 }
 0x1ff   : > { %4893 = verf.f32 %v1464_v62  ;;  %v1383_v59 = vpop.f32.mrb[31].mxu1  ;;  %v1479_v17 = vmul.f32 0.70710677, %v1379_v53  ;;  %v1478_v7 = vmul.f32 0.70710677, %v1330_v54  ;;  %v1416_v22 = vmul.f32 0.5, %v1375_v57 }
 0x200   : > { %4895 = verf.f32 %v1477_v6  ;;  %v1480_v5 = vmul.f32 0.70710677, %v1381_v4  ;;  %v1429_v42 = vmul.f32 0.5, %v1328_v50  ;;  %v1431_v25 = vmul.f32 0.5, %v1379_v53 }
 0x201   : > { %4897 = verf.f32 %v1479_v17  ;;  %v1430_v63 = vmul.f32 0.5, %v1330_v54  ;;  %v1432_v15 = vmul.f32 0.5, %v1381_v4 }
 0x202   : > { %v4880_v18 = vpop.eup %4879  ;;  %4899 = verf.f32 %v1478_v7 }
 0x203   : > { %v4882_v19 = vpop.eup %4881  ;;  %4901 = verf.f32 %v1480_v5  ;;  %v1541_v13 = vadd.f32 1.0, %v4880_v18 }
 0x204   : > { %v4884_v9 = vpop.eup %4883  ;;  %v1543_v11 = vadd.f32 1.0, %v4882_v19 }
 0x205   : > { %v4886_v10 = vpop.eup %4885  ;;  %v1542_v32 = vadd.f32 1.0, %v4884_v9  ;;  %v1589_v21 = vmul.f32 %v1541_v13, %v1397_v47 }
 0x206   : > { %v4888_v16 = vpop.eup %4887  ;;  %v1544_v33 = vadd.f32 1.0, %v4886_v10  ;;  %v1591_v40 = vmul.f32 %v1543_v11, %v1399_v23 }
 0x207   : > { %v4890_v24 = vpop.eup %4889  ;;  %v1557_v8 = vadd.f32 1.0, %v4888_v16  ;;  %v1590_v44 = vmul.f32 %v1542_v32, %v1398_v29 }
 0x208   : > { %v4892_v26 = vpop.eup %4891  ;;  %v1559_v14 = vadd.f32 1.0, %v4890_v24  ;;  %v1592_v38 = vmul.f32 %v1544_v33, %v1400_v28 }
 0x209   : > { %v4894_v31 = vpop.eup %4893  ;;  %v1605_v34 = vmul.f32 %v1557_v8, %v1413_v27  ;;  %v1558_v36 = vadd.f32 1.0, %v4892_v26 }
 0x20a   : > { %v1607_v41 = vmul.f32 %v1559_v14, %v1415_v20  ;;  %v1560_v35 = vadd.f32 1.0, %v4894_v31  ;;  %v4896_v43 = vpop.eup %4895 }
 0x20b   : > { %v1642_v39 = vpack.c.bf16 %v1605_v34, %v1589_v21  ;;  %v1606_v46 = vmul.f32 %v1558_v36, %v1414_v30  ;;  %v4898_v48 = vpop.eup %4897  ;;  %v1573_v51 = vadd.f32 1.0, %v4896_v43 }
 0x20c   : > { %v1644_v37 = vpack.c.bf16 %v1607_v41, %v1591_v40  ;;  %v1608_v49 = vmul.f32 %v1560_v35, %v1416_v22  ;;  %v4900_v52 = vpop.eup %4899  ;;  %v1575_v58 = vadd.f32 1.0, %v4898_v48 }
 0x20d   : > { %v1643_v61 = vpack.c.bf16 %v1606_v46, %v1590_v44  ;;  %v4902_v55 = vpop.eup %4901  ;;  %v1621_v62 = vmul.f32 %v1573_v51, %v1429_v42  ;;  %v1574_v56 = vadd.f32 1.0, %v4900_v52 }
 0x20e   : > { %v1645_v57 = vpack.c.bf16 %v1608_v49, %v1592_v38  ;;  %v1623_v1 = vmul.f32 %v1575_v58, %v1431_v25  ;;  %v1576_v60 = vadd.f32 1.0, %v4902_v55 }
 0x20f   : > { %2100 = vmatprep.subr.bf16.mxu0 %v1643_v61  ;;  %v1658_v6 = vpack.c.bf16 %v1621_v62, %v1621_v62  ;;  %v1622_v50 = vmul.f32 %v1574_v56, %v1430_v63 }
 0x210   : > { %2161 = vmatprep.subr.bf16.mxu1 %v1645_v57  ;;  %2101 = vmatpush1.bf16.msra.mxu0 %v1642_v39  ;;  %v1660_v12 = vpack.c.bf16 %v1623_v1, %v1623_v1  ;;  %v1624_v59 = vmul.f32 %v1576_v60, %v1432_v15 }
 0x211   : > { %2162 = vmatpush1.bf16.msra.mxu1 %v1644_v37  ;;  %v1659_v17 = vpack.c.bf16 %v1622_v50, %v1622_v50  ;;  %v1723_v53 = vsel %vm1685_vm1, %v1658_v6, 0 }
 0x212   : > { %v1661_v7 = vpack.c.bf16 %v1624_v59, %v1624_v59  ;;  %v1729_v5 = vsel %vm1685_vm1, %v1660_v12, 0 }
 0x213   : > { %4499 = vmatprep.subr.msk.bf16.mxu0 %vm1685_vm1, %v1659_v17 }
 0x214   : > { %4503 = vmatprep.subr.msk.bf16.mxu1 %vm1685_vm1, %v1661_v7  ;;  %2103 = vmatpush1.bf16.msra.mxu0 %v1723_v53 }
 0x215   : > { %2164 = vmatpush1.bf16.msra.mxu1 %v1729_v5 }
 0x217   : > { %4500 = vmatmul.mubr.msk.bf16.vlgmr.msra.gmra.mrb[68].mxu0 %vm1675_vm2, %v5773_v0 }
 0x218   : > { %4504 = vmatmul.mubr.msk.bf16.vlgmr.msra.gmra.mrb[68].mxu1 %vm1675_vm2, %v5773_v0  ;;  %2142 = vmatprep.mubr.bf16.mxu0 %v6946_v45 }
 0x219   : > { %2203 = vmatprep.mubr.bf16.mxu1 %v6946_v45 }
 0x21f   : > { %4501 = vmatmul.mubr.msk.bf16.gmra.mrb[72].mxu0 %vm1675_vm2, %v5786_v2 }
 0x220   : > { %4505 = vmatmul.mubr.msk.bf16.gmra.mrb[72].mxu1 %vm1675_vm2, %v5786_v2  ;;  %2152 = vmatprep.mubr.bf16.mxu0 %v6946_v45 }
 0x221   : > { %2213 = vmatprep.mubr.bf16.mxu1 %v6946_v45 }
 0x227   : > { %4502 = vmatmul.mubr.msk.bf16.gmra.mrb[76].mxu0 %vm1675_vm2, %v5797_v3 }
 0x228   : > { %4506 = vmatmul.mubr.msk.bf16.gmra.mrb[76].mxu1 %vm1675_vm2, %v5797_v3  ;;  %3374 = vmatprep.mubr.bf16.mxu0 %v6946_v45 }
 0x229   : > { %3415 = vmatprep.mubr.bf16.mxu1 %v6946_v45 }
 0x22a   : > { %v1768_v0 = vpop.f32.mrb[32].mxu0 }
 0x22b   : > { %v2238_v54 = vrot.slane %v1768_v0, 4  ;;  %v2447_v4 = vrot.slane %v1768_v0, 2  ;;  %v1770_v18 = vpop.f32.mrb[33].mxu0  ;;  %v1829_v2 = vpop.f32.mrb[32].mxu1 }
 0x22c   : > { %v2239_v19 = vrot.slane %v1770_v18, 4  ;;  %v2448_v9 = vrot.slane %v1770_v18, 2  ;;  %v5907_v10 = vpop.f32.mrb[34].mxu0  ;;  %v2240_v47 = vrot.slane %v1829_v2, 4  ;;  %v2449_v23 = vrot.slane %v1829_v2, 2  ;;  %v1831_v11 = vpop.f32.mrb[33].mxu1 }
 0x22d   : > { %v2270_v13 = vmul.f32 %v2238_v54, %v1768_v0  ;;  %v2479_v16 = vmul.f32 %v2447_v4, %v1768_v0  ;;  %v5909_v3 = vpop.f32.mrb[35].mxu0  ;;  %v2241_v32 = vrot.slane %v1831_v11, 4  ;;  %v2450_v27 = vrot.slane %v1831_v11, 2  ;;  %v5911_v8 = vpop.f32.mrb[34].mxu1 }
 0x22e   : > { %v2271_v24 = vmul.f32 %v2239_v19, %v1770_v18  ;;  %v2480_v29 = vmul.f32 %v2448_v9, %v1770_v18  ;;  %v2272_v33 = vmul.f32 %v2240_v47, %v1829_v2  ;;  %v2481_v20 = vmul.f32 %v2449_v23, %v1829_v2  ;;  %v5914_v14 = vpop.f32.mrb[35].mxu1 }
 0x22f   : > { %v2287_v26 = vsel %vm2286_vm3, %v2270_v13, 0.0  ;;  %v2511_v28 = vrot.slane %v2479_v16, 2  ;;  %v2273_v30 = vmul.f32 %v2241_v32, %v1831_v11  ;;  %v2482_v57 = vmul.f32 %v2450_v27, %v1831_v11 }
 0x230   : > { %v2288_v31 = vrot.slane %v2287_v26, 4  ;;  %v2294_v21 = vsel %vm2286_vm3, %v2271_v24, 0.0  ;;  %v2512_v34 = vrot.slane %v2480_v29, 2  ;;  %v2301_v40 = vsel %vm2286_vm3, %v2272_v33, 0.0 }
 0x231   : > { %v2543_v36 = vsel %vm2286_vm3, %v2511_v28, 0.0  ;;  %v2513_v41 = vrot.slane %v2481_v20, 2  ;;  %v2295_v22 = vrot.slane %v2294_v21, 4  ;;  %v2302_v44 = vrot.slane %v2301_v40, 4 }
 0x232   : > { %v2289_v35 = vadd.f32 %v2288_v31, %v2287_v26  ;;  %v2544_v43 = vrot.slane %v2543_v36, 4  ;;  %v2550_v39 = vsel %vm2286_vm3, %v2512_v34, 0.0  ;;  %v5920_v46 = vpop.f32.mrb[36].mxu0  ;;  %v2308_v37 = vsel %vm2286_vm3, %v2273_v30, 0.0 }
 0x233   : > { %v2557_v42 = vsel %vm2286_vm3, %v2513_v41, 0.0  ;;  %v2296_v48 = vadd.f32 %v2295_v22, %v2294_v21  ;;  %v2551_v38 = vrot.slane %v2550_v39, 4  ;;  %v5924_v49 = vpop.f32.mrb[37].mxu0  ;;  %v2303_v25 = vadd.f32 %v2302_v44, %v2301_v40  ;;  %v5926_v61 = vpop.f32.mrb[36].mxu1 }
 0x234   : > { %v2290_v51 = vrot.slane %v2289_v35, 2  ;;  %v2545_v52 = vadd.f32 %v2544_v43, %v2543_v36  ;;  %v2558_v58 = vrot.slane %v2557_v42, 4  ;;  %v5928_v55 = vpop.f32.mrb[38].mxu0  ;;  %v2309_v56 = vrot.slane %v2308_v37, 4  ;;  %v5930_v1 = vpop.f32.mrb[37].mxu1 }
 0x235   : > { %v2297_v62 = vrot.slane %v2296_v48, 2  ;;  %v2552_v63 = vadd.f32 %v2551_v38, %v2550_v39  ;;  %v5932_v15 = vpop.f32.mrb[39].mxu0  ;;  %v2304_v50 = vrot.slane %v2303_v25, 2  ;;  %v5934_v59 = vpop.f32.mrb[38].mxu1  ;;  %v2514_v5 = vrot.slane %v2482_v57, 2 }
 0x236   : > { %v2291_v60 = vadd.f32 %v2290_v51, %v2289_v35  ;;  %v2546_v6 = vrot.slane %v2545_v52, 2  ;;  %v2559_v12 = vadd.f32 %v2558_v58, %v2557_v42  ;;  %v2310_v7 = vadd.f32 %v2309_v56, %v2308_v37  ;;  %v5936_v0 = vpop.f32.mrb[39].mxu1 }
 0x237   : > { %v2298_v17 = vadd.f32 %v2297_v62, %v2296_v48  ;;  %v2553_v53 = vrot.slane %v2552_v63, 2  ;;  %v2305_v4 = vadd.f32 %v2304_v50, %v2303_v25  ;;  %v2564_v13 = vsel %vm2286_vm3, %v2514_v5, 0.0 }
 0x238   : > { %v2547_v54 = vadd.f32 %v2546_v6, %v2545_v52  ;;  %v2560_v18 = vrot.slane %v2559_v12, 2  ;;  %v2292_v2 = vrot.slane %v2291_v60, 1  ;;  %v2311_v9 = vrot.slane %v2310_v7, 2 }
 0x239   : > { %v2554_v19 = vadd.f32 %v2553_v53, %v2552_v63  ;;  %v2299_v16 = vrot.slane %v2298_v17, 1  ;;  %v2565_v23 = vrot.slane %v2564_v13, 4  ;;  %v2306_v27 = vrot.slane %v2305_v4, 1 }
 0x23a   : > { %v2561_v47 = vadd.f32 %v2560_v18, %v2559_v12  ;;  %v2293_v11 = vadd.f32 %v2292_v2, %v2291_v60  ;;  %v2548_v24 = vrot.slane %v2547_v54, 1  ;;  %v5939_v29 = vpop.f32.mrb[40].mxu0  ;;  %v2312_v32 = vadd.f32 %v2311_v9, %v2310_v7 }
 0x23b   : > { %v2300_v26 = vadd.f32 %v2299_v16, %v2298_v17  ;;  %v2555_v28 = vrot.slane %v2554_v19, 1  ;;  %v5941_v33 = vpop.f32.mrb[41].mxu0  ;;  %v2566_v20 = vadd.f32 %v2565_v23, %v2564_v13  ;;  %v5943_v34 = vpop.f32.mrb[40].mxu1  ;;  %v2307_v36 = vadd.f32 %v2306_v27, %v2305_v4 }
 0x23c   : > { %4903 = vtanh.f32 %v2293_v11  ;;  %v2549_v31 = vadd.f32 %v2548_v24, %v2547_v54  ;;  %v2562_v21 = vrot.slane %v2561_v47, 1  ;;  %v1792_v30 = vpop.f32.mrb[42].mxu0  ;;  %v2313_v41 = vrot.slane %v2312_v32, 1  ;;  %v5945_v22 = vpop.f32.mrb[41].mxu1 }
 0x23d   : > { %4905 = vtanh.f32 %v2300_v26  ;;  %v2556_v40 = vadd.f32 %v2555_v28, %v2554_v19  ;;  %v1793_v35 = vpop.f32.mrb[43].mxu0  ;;  %v2567_v43 = vrot.slane %v2566_v20, 2  ;;  %v1853_v39 = vpop.f32.mrb[42].mxu1 }
 0x23e   : > { %4907 = vtanh.f32 %v2549_v31  ;;  %v2563_v44 = vadd.f32 %v2562_v21, %v2561_v47  ;;  %v2314_v42 = vadd.f32 %v2313_v41, %v2312_v32  ;;  %v1854_v48 = vpop.f32.mrb[43].mxu1 }
 0x23f   : > { %4909 = vtanh.f32 %v2307_v36  ;;  %v2568_v38 = vadd.f32 %v2567_v43, %v2566_v20 }
 0x240   : > { %4911 = vtanh.f32 %v2563_v44 }
 0x241   : > { %4913 = vtanh.f32 %v2556_v40  ;;  %v2569_v37 = vrot.slane %v2568_v38, 1 }
 0x242   : > { %4915 = vtanh.f32 %v2314_v42 }
 0x243   : > { %v2570_v51 = vadd.f32 %v2569_v37, %v2568_v38 }
 0x245   : > { %4917 = vtanh.f32 %v2570_v51 }
 0x246   : > { %v4904_v52 = vpop.eup %4903 }
 0x247   : > { %v4906_v25 = vpop.eup %4905  ;;  %v2415_v58 = vadd.f32 1.0, %v4904_v52 }
 0x248   : > { %v4908_v62 = vpop.eup %4907  ;;  %v2416_v63 = vadd.f32 1.0, %v4906_v25 }
 0x249   : > { %v4910_v56 = vpop.eup %4909  ;;  %v5947_v57 = vmul.f32 0.5, %v2415_v58  ;;  %v2671_v60 = vadd.f32 1.0, %v4908_v62 }
 0x24a   : > { %v4912_v6 = vpop.eup %4911  ;;  %v2417_v50 = vadd.f32 1.0, %v4910_v56  ;;  %v5949_v12 = vmul.f32 0.5, %v2416_v63 }
 0x24b   : > { %v4914_v17 = vpop.eup %4913  ;;  %v5951_v53 = vmul.f32 0.5, %v2671_v60  ;;  %v2703_v7 = vmul.f32 %v5947_v57, %v5907_v10  ;;  %v2673_v5 = vadd.f32 1.0, %v4912_v6  ;;  %v5957_v54 = vmul.f32 %v5947_v57, %v5920_v46 }
 0x24c   : > { %v4916_v4 = vpop.eup %4915  ;;  %v2433_v18 = vmul.f32 0.5, %v2417_v50  ;;  %v2672_v2 = vadd.f32 1.0, %v4914_v17  ;;  %v2704_v19 = vmul.f32 %v5949_v12, %v5909_v3  ;;  %v5963_v9 = vmul.f32 %v5949_v12, %v5924_v49 }
 0x24d   : > { %v2815_v13 = vmul.f32 %v5951_v53, %v5907_v10  ;;  %v5967_v16 = vmul.f32 0.5, %v2673_v5  ;;  %v2418_v47 = vadd.f32 1.0, %v4916_v4  ;;  %v5971_v23 = vmul.f32 %v5951_v53, %v5920_v46 }
 0x24e   : > { %v2705_v11 = vmul.f32 %v2433_v18, %v5911_v8  ;;  %v5974_v24 = vmul.f32 0.5, %v2672_v2  ;;  %v2721_v32 = vmul.f32 %v2433_v18, %v5926_v61  ;;  %v2735_v27 = vsub.f32 1.0, %v5947_v57 }
 0x24f   : > { %v2817_v26 = vmul.f32 %v5967_v16, %v5911_v8  ;;  %v5980_v28 = vmul.f32 0.5, %v2418_v47  ;;  %v5984_v10 = vmul.f32 %v5967_v16, %v5926_v61  ;;  %v2847_v46 = vsub.f32 1.0, %v5951_v53  ;;  %v4918_v20 = vpop.eup %4917 }
 0x250   : > { %v2816_v31 = vmul.f32 %v5974_v24, %v5909_v3  ;;  %v5991_v21 = vmul.f32 %v5974_v24, %v5924_v49  ;;  %v2751_v30 = vmul.f32 %v2735_v27, %v5928_v55  ;;  %v2737_v36 = vsub.f32 1.0, %v2433_v18 }
 0x251   : > { %v2674_v8 = vadd.f32 1.0, %v4918_v20  ;;  %v2706_v40 = vmul.f32 %v5980_v28, %v5914_v14  ;;  %v5998_v61 = vmul.f32 %v5980_v28, %v5930_v1  ;;  %v2863_v41 = vmul.f32 %v2847_v46, %v5928_v55 }
 0x252   : > { %v2783_v35 = vadd.f32 %v2751_v30, %v2703_v7  ;;  %v2753_v3 = vmul.f32 %v2737_v36, %v5934_v59  ;;  %v2849_v43 = vsub.f32 1.0, %v5967_v16  ;;  %v2736_v49 = vsub.f32 1.0, %v5949_v12 }
 0x253   : > { %v6004_v44 = vmul.f32 0.5, %v2674_v8  ;;  %v2895_v39 = vadd.f32 %v2863_v41, %v2815_v13  ;;  %v2848_v42 = vsub.f32 1.0, %v5974_v24  ;;  %v2738_v48 = vsub.f32 1.0, %v5980_v28 }
 0x254   : > { %v2959_v38 = vmul.f32 0.70710677, %v2783_v35  ;;  %v2785_v37 = vadd.f32 %v2753_v3, %v2705_v11  ;;  %v2865_v51 = vmul.f32 %v2849_v43, %v5934_v59  ;;  %v5194_v55 = vmov 65535  }
 0x255   : > { %v3292_v52 = vsel %vm1685_vm1, 4294967295, %v5194_v55  ;;  %v2818_v25 = vmul.f32 %v6004_v44, %v5914_v14  ;;  %v6014_v58 = vmul.f32 %v6004_v44, %v5930_v1  ;;  %v3135_v62 = vmul.f32 0.70710677, %v2895_v39 }
 0x256   : > { %4919 = verf.f32 %v2959_v38  ;;  %v2897_v63 = vadd.f32 %v2865_v51, %v2817_v26  ;;  %v2961_v56 = vmul.f32 0.70710677, %v2785_v37  ;;  %v2752_v57 = vmul.f32 %v2736_v49, %v5932_v15 }
 0x257   : > { %4921 = verf.f32 %v3135_v62  ;;  %v2864_v60 = vmul.f32 %v2848_v42, %v5932_v15  ;;  %v2754_v59 = vmul.f32 %v2738_v48, %v5936_v0  ;;  %v6022_v6 = vsel %vm3291_vm4, %v3292_v52, 0 }
 0x258   : > { %4923 = verf.f32 %v2961_v56  ;;  %v3137_v14 = vmul.f32 0.70710677, %v2897_v63  ;;  %v2850_v1 = vsub.f32 1.0, %v6004_v44  ;;  %v2784_v50 = vadd.f32 %v2752_v57, %v2704_v19 }
 0x259   : > { %v2896_v12 = vadd.f32 %v2864_v60, %v2816_v31  ;;  %v2786_v17 = vadd.f32 %v2754_v59, %v2706_v40  ;;  %v2767_v53 = vmul.f32 %v2735_v27, %v5939_v29  ;;  %v2879_v15 = vmul.f32 %v2847_v46, %v5939_v29 }
 0x25a   : > { %4925 = verf.f32 %v3137_v14  ;;  %v2866_v7 = vmul.f32 %v2850_v1, %v5936_v0  ;;  %v2769_v5 = vmul.f32 %v2737_v36, %v5943_v34  ;;  %v2927_v4 = vmul.f32 0.5, %v2783_v35 }
 0x25b   : > { %v3103_v18 = vmul.f32 0.5, %v2895_v39  ;;  %v2960_v2 = vmul.f32 0.70710677, %v2784_v50  ;;  %v3136_v13 = vmul.f32 0.70710677, %v2896_v12  ;;  %v2929_v16 = vmul.f32 0.5, %v2785_v37 }
 0x25c   : > { %v2898_v47 = vadd.f32 %v2866_v7, %v2818_v25  ;;  %v2962_v11 = vmul.f32 0.70710677, %v2786_v17  ;;  %v2799_v19 = vadd.f32 %v2767_v53, %v5957_v54  ;;  %v2911_v24 = vadd.f32 %v2879_v15, %v5971_v23 }
 0x25d   : > { %4927 = verf.f32 %v2960_v2  ;;  %v2801_v27 = vadd.f32 %v2769_v5, %v2721_v32  ;;  %v2881_v26 = vmul.f32 %v2849_v43, %v5943_v34  ;;  %v3105_v0 = vmul.f32 0.5, %v2897_v63 }
 0x25e   : > { %v2928_v20 = vmul.f32 0.5, %v2784_v50  ;;  %4929 = verf.f32 %v3136_v13  ;;  %v3138_v29 = vmul.f32 0.70710677, %v2898_v47  ;;  %v3104_v46 = vmul.f32 0.5, %v2896_v12 }
 0x25f   : > { %4931 = verf.f32 %v2962_v11  ;;  %v2975_v31 = vmul.f32 0.70710677, %v2799_v19  ;;  %v3151_v30 = vmul.f32 0.70710677, %v2911_v24  ;;  %v2930_v8 = vmul.f32 0.5, %v2786_v17 }
 0x260   : > { %v4920_v36 = vpop.eup %4919  ;;  %4933 = verf.f32 %v3138_v29  ;;  %v2913_v40 = vadd.f32 %v2881_v26, %v5984_v10  ;;  %v2977_v54 = vmul.f32 0.70710677, %v2801_v27  ;;  %v3106_v35 = vmul.f32 0.5, %v2898_v47 }
 0x261   : > { %v4922_v41 = vpop.eup %4921  ;;  %4935 = verf.f32 %v2975_v31  ;;  %v2768_v23 = vmul.f32 %v2736_v49, %v5941_v33  ;;  %v2880_v34 = vmul.f32 %v2848_v42, %v5941_v33  ;;  %v3023_v3 = vadd.f32 1.0, %v4920_v36 }
 0x262   : > { %v4924_v32 = vpop.eup %4923  ;;  %v2943_v43 = vmul.f32 0.5, %v2799_v19  ;;  %4937 = verf.f32 %v3151_v30  ;;  %v3153_v44 = vmul.f32 0.70710677, %v2913_v40  ;;  %v3199_v39 = vadd.f32 1.0, %v4922_v41 }
 0x263   : > { %v3025_v38 = vadd.f32 1.0, %v4924_v32  ;;  %4939 = verf.f32 %v2977_v54  ;;  %v2800_v37 = vadd.f32 %v2768_v23, %v5963_v9  ;;  %v3119_v10 = vmul.f32 0.5, %v2911_v24 }
 0x264   : > { %v4926_v51 = vpop.eup %4925  ;;  %4941 = verf.f32 %v3153_v44  ;;  %v2912_v55 = vadd.f32 %v2880_v34, %v5991_v21  ;;  %v2770_v49 = vmul.f32 %v2738_v48, %v5945_v22  ;;  %v2945_v42 = vmul.f32 0.5, %v2801_v27  ;;  %v6049_v21 = vld [vmem:[%s6943_s1 + $0x20] sm:$0x1] }
 0x265   : > { %v3201_v33 = vadd.f32 1.0, %v4926_v51  ;;  %v6040_v52 = vmul.f32 0.5, %v2913_v40  ;;  %v2976_v25 = vmul.f32 0.70710677, %v2800_v37  ;;  %v6042_v62 = vmul.f32 %v3023_v3, %v2927_v4 }
 0x266   : > { %v3152_v63 = vmul.f32 0.70710677, %v2912_v55  ;;  %v2802_v56 = vadd.f32 %v2770_v49, %v5998_v61  ;;  %v2882_v9 = vmul.f32 %v2850_v1, %v5945_v22  ;;  %v6051_v28 = vmul.f32 %v3199_v39, %v3103_v18 }
 0x267   : > { %6961 = vst [vmem:[#allocation5_spill] sm:$0xff] %v6042_v62  ;;  %v4928_v57 = vpop.eup %4927  ;;  %v6053_v48 = vmul.f32 %v3025_v38, %v2929_v16  ;;  %v6055_v60 = vmul.f32 0.5, %v2800_v37  ;;  %4943 = verf.f32 %v2976_v25  ;;  %v6057_v50 = vmul.f32 0.5, %v2912_v55 }
 0x268   : > { %v4930_v59 = vpop.eup %4929  ;;  %v3024_v14 = vadd.f32 1.0, %v4928_v57  ;;  %4945 = verf.f32 %v3152_v63  ;;  %v2914_v22 = vadd.f32 %v2882_v9, %v6014_v58  ;;  %v6060_v1 = vmul.f32 %v3201_v33, %v3105_v0 }
 0x269   : > { %6962 = vst [vmem:[#allocation6_spill] sm:$0xff] %v6053_v48  ;;  %v4932_v61 = vpop.eup %4931  ;;  %v3200_v12 = vadd.f32 1.0, %v4930_v59  ;;  %v2978_v17 = vmul.f32 0.70710677, %v2802_v56  ;;  %v4507_v53 = vcombine.low %v6049_v21, %v6049_v21  ;;  %v6066_v4 = vmul.f32 0.5, %v2802_v56 }
 0x26a   : > { %v4934_v7 = vpop.eup %4933  ;;  %v6064_v15 = vmul.f32 %v3024_v14, %v2928_v20  ;;  %v3026_v5 = vadd.f32 1.0, %v4932_v61  ;;  %v3154_v18 = vmul.f32 0.70710677, %v2914_v22  ;;  %v6070_v58 = vmul.f32 0.5, %v2914_v22  ;;  %v1890_v47 = vpop.f32.mrb[44].mxu0 }
 0x26b   : > { %v4936_v2 = vpop.eup %4935  ;;  %v6068_v13 = vmul.f32 %v3200_v12, %v3104_v46  ;;  %v3202_v16 = vadd.f32 1.0, %v4934_v7  ;;  %4947 = verf.f32 %v2978_v17  ;;  %v2242_v27 = vrot.slane %v1890_v47, 4  ;;  %v1951_v26 = vpop.f32.mrb[44].mxu1 }
 0x26c   : > { %v4938_v11 = vpop.eup %4937  ;;  %v6072_v19 = vmul.f32 %v3026_v5, %v2930_v8  ;;  %v3039_v24 = vadd.f32 1.0, %v4936_v2  ;;  %4949 = verf.f32 %v3154_v18  ;;  %v1892_v0 = vpop.f32.mrb[45].mxu0  ;;  %v2451_v30 = vrot.slane %v1890_v47, 2 }
 0x26d   : > { %v4940_v20 = vpop.eup %4939  ;;  %v6074_v29 = vmul.f32 %v3202_v16, %v3106_v35  ;;  %v3215_v31 = vadd.f32 1.0, %v4938_v11  ;;  %v2244_v46 = vrot.slane %v1951_v26, 4  ;;  %v6076_v36 = vpop.f32.mrb[45].mxu1  ;;  %v2274_v23 = vmul.f32 %v2242_v27, %v1890_v47 }
 0x26e   : > { %6963 = vst [vmem:[#allocation7_spill] sm:$0xff] %v6072_v19  ;;  %v6078_v40 = vpop.f32.mrb[46].mxu0  ;;  %v4942_v54 = vpop.eup %4941  ;;  %v6080_v41 = vmul.f32 %v3039_v24, %v2943_v43  ;;  %v3041_v8 = vadd.f32 1.0, %v4940_v20  ;;  %v2453_v34 = vrot.slane %v1951_v26, 2  ;;  %v2483_v39 = vmul.f32 %v2451_v30, %v1890_v47 }
 0x26f   : > { %v6082_v32 = vpop.f32.mrb[46].mxu1  ;;  %v6084_v3 = vpop.f32.mrb[47].mxu0  ;;  %v6086_v44 = vmul.f32 %v3215_v31, %v3119_v10  ;;  %v3217_v35 = vadd.f32 1.0, %v4942_v54  ;;  %v2276_v38 = vmul.f32 %v2244_v46, %v1951_v26  ;;  %v2315_v55 = vsel %vm2286_vm3, %v2274_v23, 0.0 }
 0x270   : > { %6964 = vst [vmem:[#allocation8_spill] sm:$0xff] %v6080_v41  ;;  %v6088_v37 = vpop.f32.mrb[47].mxu1  ;;  %v6090_v51 = vmul.f32 %v3041_v8, %v2945_v42  ;;  %v2485_v43 = vmul.f32 %v2453_v34, %v1951_v26  ;;  %v2243_v49 = vrot.slane %v1892_v0, 4  ;;  %v2316_v63 = vrot.slane %v2315_v55, 4 }
 0x271   : > { %v4944_v33 = vpop.eup %4943  ;;  %v6094_v25 = vmul.f32 %v3217_v35, %v6040_v52  ;;  %v2515_v56 = vrot.slane %v2483_v39, 2  ;;  %v2329_v10 = vsel %vm2286_vm3, %v2276_v38, 0.0  ;;  %v2452_v17 = vrot.slane %v1892_v0, 2 }
 0x272   : > { %6965 = vst [vmem:[#allocation9_spill] sm:$0xff] %v6090_v51  ;;  %v4946_v9 = vpop.eup %4945  ;;  %v3040_v57 = vadd.f32 1.0, %v4944_v33  ;;  %v2330_v59 = vrot.slane %v2329_v10, 4  ;;  %v2517_v14 = vrot.slane %v2485_v43, 2  ;;  %v2275_v22 = vmul.f32 %v2243_v49, %v1892_v0  ;;  %v6098_v7 = vpop.f32.mrb[48].mxu0 }
 0x273   : > { %v3216_v61 = vadd.f32 1.0, %v4946_v9  ;;  %v2317_v42 = vadd.f32 %v2316_v63, %v2315_v55  ;;  %v2571_v12 = vsel %vm2286_vm3, %v2515_v56, 0.0  ;;  %v6104_v16 = vpop.f32.mrb[48].mxu1  ;;  %v6106_v47 = vpop.f32.mrb[49].mxu0  ;;  %v2484_v55 = vmul.f32 %v2452_v17, %v1892_v0 }
 0x274   : > { %v6101_v5 = vmul.f32 %v3040_v57, %v6055_v60  ;;  %v2572_v52 = vrot.slane %v2571_v12, 4  ;;  %v2331_v18 = vadd.f32 %v2330_v59, %v2329_v10  ;;  %v2585_v2 = vsel %vm2286_vm3, %v2517_v14, 0.0  ;;  %v6112_v31 = vpop.f32.mrb[49].mxu1  ;;  %v6114_v60 = vpop.f32.mrb[50].mxu0 }
 0x275   : > { %v4948_v11 = vpop.eup %4947  ;;  %v6109_v24 = vmul.f32 %v3216_v61, %v6057_v50  ;;  %v2318_v27 = vrot.slane %v2317_v42, 2  ;;  %v2586_v26 = vrot.slane %v2585_v2, 4  ;;  %v2322_v20 = vsel %vm2286_vm3, %v2275_v22, 0.0  ;;  %v6116_v34 = vpop.f32.mrb[50].mxu1 }
 0x276   : > { %v4950_v30 = vpop.eup %4949  ;;  %v3042_v46 = vadd.f32 1.0, %v4948_v11  ;;  %v2573_v54 = vadd.f32 %v2572_v52, %v2571_v12  ;;  %v2332_v8 = vrot.slane %v2331_v18, 2  ;;  %v2323_v23 = vrot.slane %v2322_v20, 4  ;;  %v6118_v35 = vpop.f32.mrb[51].mxu0 }
 0x277   : > { %v3218_v39 = vadd.f32 1.0, %v4950_v30  ;;  %v2319_v50 = vadd.f32 %v2318_v27, %v2317_v42  ;;  %v2587_v38 = vadd.f32 %v2586_v26, %v2585_v2  ;;  %v6120_v43 = vpop.f32.mrb[51].mxu1  ;;  %v2516_v57 = vrot.slane %v2484_v55, 2 }
 0x278   : > { %v6123_v49 = vmul.f32 %v3042_v46, %v6066_v4  ;;  %v2574_v33 = vrot.slane %v2573_v54, 2  ;;  %v2333_v63 = vadd.f32 %v2332_v8, %v2331_v18  ;;  %v2324_v56 = vadd.f32 %v2323_v23, %v2322_v20 }
 0x279   : > { %v3250_v10 = vmul.f32 %v3218_v39, %v6070_v58  ;;  %v2588_v9 = vrot.slane %v2587_v38, 2  ;;  %v2245_v59 = vrot.slane %v6076_v36, 4  ;;  %v2454_v61 = vrot.slane %v6076_v36, 2 }
 0x27a   : > { %6966 = vst [vmem:[#allocation10_spill] sm:$0xff] %v6123_v49  ;;  %v2575_v14 = vadd.f32 %v2574_v33, %v2573_v54  ;;  %v2325_v22 = vrot.slane %v2324_v56, 2  ;;  %v2320_v42 = vrot.slane %v2319_v50, 1  ;;  %v2578_v12 = vsel %vm2286_vm3, %v2516_v57, 0.0  ;;  %v6130_v52 = vpop.f32.mrb[52].mxu0 }
 0x27b   : > { %v2589_v0 = vadd.f32 %v2588_v9, %v2587_v38  ;;  %v2277_v4 = vmul.f32 %v2245_v59, %v6076_v36  ;;  %v2334_v17 = vrot.slane %v2333_v63, 1  ;;  %v2579_v2 = vrot.slane %v2578_v12, 4  ;;  %v6133_v27 = vpop.f32.mrb[52].mxu1  ;;  %v6135_v26 = vpop.f32.mrb[53].mxu0 }
 0x27c   : > { %v2326_v18 = vadd.f32 %v2325_v22, %v2324_v56  ;;  %v2486_v58 = vmul.f32 %v2454_v61, %v6076_v36  ;;  %v2321_v11 = vadd.f32 %v2320_v42, %v2319_v50  ;;  %v2576_v30 = vrot.slane %v2575_v14, 1  ;;  %v6138_v8 = vpop.f32.mrb[53].mxu1  ;;  %v1914_v23 = vpop.f32.mrb[54].mxu0 }
 0x27d   : > { %v2336_v20 = vsel %vm2286_vm3, %v2277_v4, 0.0  ;;  %v2335_v46 = vadd.f32 %v2334_v17, %v2333_v63  ;;  %v2590_v54 = vrot.slane %v2589_v0, 1  ;;  %v2580_v39 = vadd.f32 %v2579_v2, %v2578_v12  ;;  %v1975_v33 = vpop.f32.mrb[54].mxu1  ;;  %v1915_v56 = vpop.f32.mrb[55].mxu0 }
 0x27e   : > { %v2337_v38 = vrot.slane %v2336_v20, 4  ;;  %v2518_v55 = vrot.slane %v2486_v58, 2  ;;  %4951 = vtanh.f32 %v2321_v11  ;;  %v2577_v36 = vadd.f32 %v2576_v30, %v2575_v14  ;;  %v1976_v57 = vpop.f32.mrb[55].mxu1 }
 0x27f   : > { %4953 = vtanh.f32 %v2335_v46  ;;  %v2591_v50 = vadd.f32 %v2590_v54, %v2589_v0  ;;  %v2327_v9 = vrot.slane %v2326_v18, 1  ;;  %v2581_v59 = vrot.slane %v2580_v39, 2 }
 0x280   : > { %v2338_v22 = vadd.f32 %v2337_v38, %v2336_v20  ;;  %v2592_v61 = vsel %vm2286_vm3, %v2518_v55, 0.0  ;;  %v3264_v63 = vpack.c.bf16 %v6109_v24, %v6068_v13  ;;  %4955 = vtanh.f32 %v2577_v36 }
 0x281   : > { %v2593_v42 = vrot.slane %v2592_v61, 4  ;;  %v2328_v12 = vadd.f32 %v2327_v9, %v2326_v18  ;;  %v3266_v4 = vpack.c.bf16 %v3250_v10, %v6074_v29  ;;  %v2582_v17 = vadd.f32 %v2581_v59, %v2580_v39 }
 0x282   : > { %v2339_v2 = vrot.slane %v2338_v22, 2  ;;  %4957 = vtanh.f32 %v2591_v50  ;;  %v3298_v14 = vand.u32 %v6022_v6, %v3264_v63  ;;  %v3263_v11 = vpack.c.bf16 %v6086_v44, %v6051_v28 }
 0x283   : > { %v2594_v0 = vadd.f32 %v2593_v42, %v2592_v61  ;;  %4959 = vtanh.f32 %v2328_v12  ;;  %v3304_v58 = vand.u32 %v6022_v6, %v3266_v4  ;;  %v2583_v30 = vrot.slane %v2582_v17, 1 }
 0x284   : > { %v2340_v20 = vadd.f32 %v2339_v2, %v2338_v22  ;;  %3342 = vmatprep.subr.bf16.mxu0 %v3298_v14  ;;  %v3265_v13 = vpack.c.bf16 %v6094_v25, %v6060_v1  ;;  %v3295_v10 = vand.u32 %v6022_v6, %v3263_v11  ;;  %v6161_v1 = vshrl.u32 %v4507_v53, 16 }
 0x285   : > { %v2595_v24 = vrot.slane %v2594_v0, 2  ;;  %3383 = vmatprep.subr.bf16.mxu1 %v3304_v58  ;;  %v2584_v28 = vadd.f32 %v2583_v30, %v2582_v17 }
 0x286   : > { %v2341_v44 = vrot.slane %v2340_v20, 1  ;;  %v3301_v54 = vand.u32 %v6022_v6, %v3265_v13  ;;  %3343 = vmatpush1.bf16.msra.mxu0 %v3295_v10 }
 0x287   : > { %v2596_v25 = vadd.f32 %v2595_v24, %v2594_v0  ;;  %4961 = vtanh.f32 %v2584_v28 }
 0x288   : > { %v4952_v39 = vpop.eup %4951  ;;  %v2342_v38 = vadd.f32 %v2341_v44, %v2340_v20  ;;  %3384 = vmatpush1.bf16.msra.mxu1 %v3301_v54 }
 0x289   : > { %v4954_v55 = vpop.eup %4953  ;;  %v2419_v33 = vadd.f32 1.0, %v4952_v39  ;;  %v2597_v56 = vrot.slane %v2596_v25, 1  ;;  %4508 = vmatmul.mubr.msk.bf16.vlgmr.msra.gmra.mrb[80].mxu0 %vm3287_vm5, %v6161_v1 }
 0x28a   : > { %v2421_v36 = vadd.f32 1.0, %v4954_v55  ;;  %4963 = vtanh.f32 %v2342_v38  ;;  %v4956_v21 = vpop.eup %4955  ;;  %3456 = vmatprep.mubr.bf16.mxu0 %v6946_v45 }
 0x28b   : > { %v2435_v53 = vmul.f32 0.5, %v2419_v33  ;;  %v2598_v50 = vadd.f32 %v2597_v56, %v2596_v25  ;;  %4509 = vmatmul.mubr.msk.bf16.vlgmr.msra.gmra.mrb[80].mxu1 %vm3287_vm5, %v6161_v1  ;;  %v2675_v57 = vadd.f32 1.0, %v4956_v21 }
 0x28c   : > { %v4958_v9 = vpop.eup %4957  ;;  %v6170_v59 = vmul.f32 0.5, %v2421_v36  ;;  %3497 = vmatprep.mubr.bf16.mxu1 %v6946_v45 }
 0x28d   : > { %v4960_v22 = vpop.eup %4959  ;;  %v2707_v61 = vmul.f32 %v2435_v53, %v6078_v40  ;;  %v2677_v63 = vadd.f32 1.0, %v4958_v9  ;;  %4965 = vtanh.f32 %v2598_v50  ;;  %v2723_v42 = vmul.f32 %v2435_v53, %v6098_v7 }
 0x28e   : > { %v2691_v12 = vmul.f32 0.5, %v2675_v57  ;;  %v2709_v4 = vmul.f32 %v6170_v59, %v6082_v32  ;;  %v2420_v17 = vadd.f32 1.0, %v4960_v22  ;;  %v6179_v2 = vmul.f32 %v6170_v59, %v6104_v16 }
 0x28f   : > { %v6181_v14 = vmul.f32 0.5, %v2677_v63  ;;  %v2739_v0 = vsub.f32 1.0, %v2435_v53  ;;  %v2741_v58 = vsub.f32 1.0, %v6170_v59 }
 0x290   : > { %v2819_v11 = vmul.f32 %v2691_v12, %v6078_v40  ;;  %v6185_v20 = vmul.f32 0.5, %v2420_v17  ;;  %v2835_v30 = vmul.f32 %v2691_v12, %v6098_v7  ;;  %v2851_v13 = vsub.f32 1.0, %v2691_v12 }
 0x291   : > { %v2821_v24 = vmul.f32 %v6181_v14, %v6082_v32  ;;  %v6192_v10 = vmul.f32 %v6181_v14, %v6104_v16  ;;  %v2755_v28 = vmul.f32 %v2739_v0, %v6114_v60  ;;  %v2757_v44 = vmul.f32 %v2741_v58, %v6116_v34  ;;  %v4962_v54 = vpop.eup %4961 }
 0x292   : > { %v2708_v40 = vmul.f32 %v6185_v20, %v6084_v3  ;;  %v6202_v7 = vmul.f32 %v6185_v20, %v6106_v47  ;;  %v2867_v32 = vmul.f32 %v2851_v13, %v6114_v60  ;;  %v2853_v25 = vsub.f32 1.0, %v6181_v14 }
 0x293   : > { %v2676_v16 = vadd.f32 1.0, %v4962_v54  ;;  %v2787_v39 = vadd.f32 %v2755_v28, %v2707_v61  ;;  %v2789_v38 = vadd.f32 %v2757_v44, %v2709_v4  ;;  %v2771_v36 = vmul.f32 %v2739_v0, %v6130_v52 }
 0x294   : > { %v4964_v55 = vpop.eup %4963  ;;  %v2899_v33 = vadd.f32 %v2867_v32, %v2819_v11  ;;  %v2869_v56 = vmul.f32 %v2853_v25, %v6116_v34  ;;  %v2883_v21 = vmul.f32 %v2851_v13, %v6130_v52  ;;  %v2740_v57 = vsub.f32 1.0, %v6185_v20 }
 0x295   : > { %v2692_v53 = vmul.f32 0.5, %v2676_v16  ;;  %v2422_v50 = vadd.f32 1.0, %v4964_v55  ;;  %v2963_v9 = vmul.f32 0.70710677, %v2787_v39  ;;  %v6210_v22 = vmul.f32 0.5, %v2787_v39 }
 0x296   : > { %v6212_v60 = vmul.f32 0.5, %v2899_v33  ;;  %v3139_v63 = vmul.f32 0.70710677, %v2899_v33  ;;  %v2901_v61 = vadd.f32 %v2869_v56, %v2821_v24  ;;  %v6220_v14 = vmul.f32 0.5, %v2789_v38 }
 0x297   : > { %v4966_v12 = vpop.eup %4965  ;;  %v2820_v4 = vmul.f32 %v2692_v53, %v6084_v3  ;;  %v6215_v17 = vmul.f32 0.5, %v2422_v50  ;;  %v6218_v34 = vmul.f32 %v2692_v53, %v6106_v47  ;;  %4967 = verf.f32 %v2963_v9 }
 0x298   : > { %v2678_v52 = vadd.f32 1.0, %v4966_v12  ;;  %4969 = verf.f32 %v3139_v63  ;;  %v2965_v0 = vmul.f32 0.70710677, %v2789_v38  ;;  %v3141_v13 = vmul.f32 0.70710677, %v2901_v61 }
 0x299   : > { %v2710_v11 = vmul.f32 %v6215_v17, %v6088_v37  ;;  %v6226_v20 = vmul.f32 %v6215_v17, %v6112_v31  ;;  %v2756_v3 = vmul.f32 %v2740_v57, %v6118_v35  ;;  %v2852_v47 = vsub.f32 1.0, %v2692_v53 }
 0x29a   : > { %v6229_v24 = vmul.f32 0.5, %v2678_v52  ;;  %4971 = verf.f32 %v2965_v0  ;;  %v2742_v28 = vsub.f32 1.0, %v6215_v17  ;;  %v2803_v54 = vadd.f32 %v2771_v36, %v2723_v42 }
 0x29b   : > { %4973 = verf.f32 %v3141_v13  ;;  %v2788_v44 = vadd.f32 %v2756_v3, %v2708_v40  ;;  %v2915_v32 = vadd.f32 %v2883_v21, %v2835_v30  ;;  %v2868_v38 = vmul.f32 %v2852_v47, %v6118_v35 }
 0x29c   : > { %v2822_v16 = vmul.f32 %v6229_v24, %v6088_v37  ;;  %v6236_v39 = vmul.f32 %v6229_v24, %v6112_v31  ;;  %v2758_v55 = vmul.f32 %v2742_v28, %v6120_v43  ;;  %v3109_v33 = vmul.f32 0.5, %v2901_v61 }
 0x29d   : > { %v6240_v56 = vmul.f32 0.5, %v2788_v44  ;;  %v2964_v53 = vmul.f32 0.70710677, %v2788_v44  ;;  %v2854_v50 = vsub.f32 1.0, %v6229_v24  ;;  %v2900_v40 = vadd.f32 %v2868_v38, %v2820_v4 }
 0x29e   : > { %v2790_v42 = vadd.f32 %v2758_v55, %v2710_v11  ;;  %v6243_v30 = vmul.f32 0.5, %v2803_v54  ;;  %v2979_v36 = vmul.f32 0.70710677, %v2803_v54  ;;  %v6246_v31 = vmul.f32 0.5, %v2915_v32 }
 0x29f   : > { %4975 = verf.f32 %v2964_v53  ;;  %v2870_v37 = vmul.f32 %v2854_v50, %v6120_v43  ;;  %v2773_v35 = vmul.f32 %v2741_v58, %v6133_v27  ;;  %v3140_v21 = vmul.f32 0.70710677, %v2900_v40 }
 0x2a0   : > { %v2966_v9 = vmul.f32 0.70710677, %v2790_v42  ;;  %v3155_v63 = vmul.f32 0.70710677, %v2915_v32  ;;  %4977 = verf.f32 %v2979_v36  ;;  %v2885_v17 = vmul.f32 %v2853_v25, %v6133_v27 }
 0x2a1   : > { %v4968_v61 = vpop.eup %4967  ;;  %v2902_v12 = vadd.f32 %v2870_v37, %v2822_v16  ;;  %v2805_v4 = vadd.f32 %v2773_v35, %v6179_v2  ;;  %4979 = verf.f32 %v3140_v21  ;;  %v2772_v43 = vmul.f32 %v2740_v57, %v6135_v26 }
 0x2a2   : > { %v4970_v52 = vpop.eup %4969  ;;  %v3027_v0 = vadd.f32 1.0, %v4968_v61  ;;  %v2884_v11 = vmul.f32 %v2852_v47, %v6135_v26  ;;  %v3108_v59 = vmul.f32 0.5, %v2900_v40  ;;  %4981 = verf.f32 %v2966_v9 }
 0x2a3   : > { %v3203_v13 = vadd.f32 1.0, %v4970_v52  ;;  %v3142_v58 = vmul.f32 0.70710677, %v2902_v12  ;;  %v6255_v24 = vmul.f32 0.5, %v2790_v42  ;;  %v6257_v44 = vmul.f32 0.5, %v2902_v12 }
 0x2a4   : > { %v4972_v3 = vpop.eup %4971  ;;  %4983 = verf.f32 %v3155_v63  ;;  %v2917_v2 = vadd.f32 %v2885_v17, %v6192_v10  ;;  %v6261_v25 = vmul.f32 %v3027_v0, %v6210_v22  ;;  %v2981_v57 = vmul.f32 0.70710677, %v2805_v4 }
 0x2a5   : > { %v4974_v27 = vpop.eup %4973  ;;  %v3029_v54 = vadd.f32 1.0, %v4972_v3  ;;  %4985 = verf.f32 %v3142_v58  ;;  %v6263_v47 = vmul.f32 0.5, %v2805_v4  ;;  %v2804_v16 = vadd.f32 %v2772_v43, %v6202_v7 }
 0x2a6   : > { %6967 = vst [vmem:[#allocation11_spill] sm:$0xff] %v6261_v25  ;;  %v3205_v26 = vadd.f32 1.0, %v4974_v27  ;;  %v3157_v32 = vmul.f32 0.70710677, %v2917_v2  ;;  %v6267_v38 = vmul.f32 %v3203_v13, %v6212_v60  ;;  %4987 = verf.f32 %v2981_v57 }
 0x2a7   : > { %v2916_v55 = vadd.f32 %v2884_v11, %v6218_v34  ;;  %v2774_v10 = vmul.f32 %v2742_v28, %v6138_v8  ;;  %v6272_v22 = vmul.f32 %v3029_v54, %v6220_v14  ;;  %v6274_v53 = vmul.f32 0.5, %v2917_v2 }
 0x2a8   : > { %4989 = verf.f32 %v3157_v32  ;;  %v2980_v40 = vmul.f32 0.70710677, %v2804_v16  ;;  %v6276_v36 = vmul.f32 %v3205_v26, %v3109_v33  ;;  %v2886_v60 = vmul.f32 %v2854_v50, %v6138_v8 }
 0x2a9   : > { %6968 = vst [vmem:[#allocation12_spill] sm:$0xff] %v6272_v22  ;;  %v4976_v42 = vpop.eup %4975  ;;  %v3156_v37 = vmul.f32 0.70710677, %v2916_v55  ;;  %v2806_v7 = vadd.f32 %v2774_v10, %v6226_v20  ;;  %v6280_v21 = vmul.f32 0.5, %v2804_v16  ;;  %v6282_v34 = vmul.f32 0.5, %v2916_v55 }
 0x2aa   : > { %v3028_v35 = vadd.f32 1.0, %v4976_v42  ;;  %4991 = verf.f32 %v2980_v40  ;;  %v4978_v14 = vpop.eup %4977  ;;  %v2918_v28 = vadd.f32 %v2886_v60, %v6236_v39  ;;  %v2012_v33 = vpop.f32.mrb[56].mxu0 }
 0x2ab   : > { %4993 = verf.f32 %v3156_v37  ;;  %v6285_v9 = vmul.f32 0.5, %v2806_v7  ;;  %v2982_v63 = vmul.f32 0.70710677, %v2806_v7  ;;  %v4980_v61 = vpop.eup %4979  ;;  %v3043_v20 = vadd.f32 1.0, %v4978_v14  ;;  %v2073_v4 = vpop.f32.mrb[56].mxu1 }
 0x2ac   : > { %v6288_v12 = vmul.f32 %v3028_v35, %v6240_v56  ;;  %v2246_v8 = vrot.slane %v2012_v33, 4  ;;  %v2455_v50 = vrot.slane %v2012_v33, 2  ;;  %v6290_v17 = vpop.f32.mrb[57].mxu0  ;;  %v4982_v52 = vpop.eup %4981  ;;  %v3204_v0 = vadd.f32 1.0, %v4980_v61 }
 0x2ad   : > { %4995 = verf.f32 %v2982_v63  ;;  %v6292_v43 = vmul.f32 0.5, %v2918_v28  ;;  %v3158_v39 = vmul.f32 0.70710677, %v2918_v28  ;;  %v6294_v11 = vpop.f32.mrb[57].mxu1  ;;  %v6296_v13 = vpop.f32.mrb[58].mxu0  ;;  %v3030_v3 = vadd.f32 1.0, %v4982_v52 }
 0x2ae   : > { %v4984_v58 = vpop.eup %4983  ;;  %v6299_v56 = vmul.f32 %v3043_v20, %v6243_v30  ;;  %v2278_v2 = vmul.f32 %v2246_v8, %v2012_v33  ;;  %v2487_v27 = vmul.f32 %v2455_v50, %v2012_v33  ;;  %v6301_v54 = vpop.f32.mrb[58].mxu1  ;;  %v6305_v32 = vmul.f32 %v3204_v0, %v3108_v59 }
 0x2af   : > { %v6303_v57 = vpop.f32.mrb[59].mxu0  ;;  %v4986_v26 = vpop.eup %4985  ;;  %v3219_v16 = vadd.f32 1.0, %v4984_v58  ;;  %4997 = verf.f32 %v3158_v39  ;;  %v2248_v55 = vrot.slane %v2073_v4, 4  ;;  %v6310_v40 = vmul.f32 %v3030_v3, %v6255_v24 }
 0x2b0   : > { %6969 = vst [vmem:[#allocation13_spill] sm:$0xff] %v6299_v56  ;;  %v6307_v10 = vpop.f32.mrb[59].mxu1  ;;  %v3206_v42 = vadd.f32 1.0, %v4986_v26  ;;  %v2343_v30 = vsel %vm2286_vm3, %v2278_v2, 0.0  ;;  %v2519_v37 = vrot.slane %v2487_v27, 2  ;;  %v4988_v7 = vpop.eup %4987  ;;  %v2457_v59 = vrot.slane %v2073_v4, 2 }
 0x2b1   : > { %6970 = vst [vmem:[#allocation14_spill] sm:$0xff] %v6310_v40  ;;  %v6314_v60 = vmul.f32 %v3219_v16, %v6246_v31  ;;  %v2344_v35 = vrot.slane %v2343_v30, 4  ;;  %v2280_v14 = vmul.f32 %v2248_v55, %v2073_v4  ;;  %v3045_v33 = vadd.f32 1.0, %v4988_v7 }
 0x2b2   : > { %v4990_v28 = vpop.eup %4989  ;;  %v6317_v63 = vmul.f32 %v3206_v42, %v6257_v44  ;;  %v2599_v61 = vsel %vm2286_vm3, %v2519_v37, 0.0  ;;  %v2247_v24 = vrot.slane %v6290_v17, 4  ;;  %v6322_v0 = vpop.f32.mrb[60].mxu0  ;;  %v2489_v3 = vmul.f32 %v2457_v59, %v2073_v4 }
 0x2b3   : > { %v3221_v20 = vadd.f32 1.0, %v4990_v28  ;;  %v2345_v8 = vadd.f32 %v2344_v35, %v2343_v30  ;;  %v2600_v50 = vrot.slane %v2599_v61, 4  ;;  %v2357_v52 = vsel %vm2286_vm3, %v2280_v14, 0.0  ;;  %v6328_v2 = vpop.f32.mrb[60].mxu1  ;;  %v6330_v27 = vpop.f32.mrb[61].mxu0 }
 0x2b4   : > { %v4992_v31 = vpop.eup %4991  ;;  %v6325_v39 = vmul.f32 %v3045_v33, %v6263_v47  ;;  %v2358_v58 = vrot.slane %v2357_v52, 4  ;;  %v2279_v44 = vmul.f32 %v2247_v24, %v6290_v17  ;;  %v6335_v37 = vpop.f32.mrb[61].mxu1  ;;  %v2521_v4 = vrot.slane %v2489_v3, 2 }
 0x2b5   : > { %v4994_v26 = vpop.eup %4993  ;;  %v6333_v16 = vmul.f32 %v3221_v20, %v6274_v53  ;;  %v3044_v55 = vadd.f32 1.0, %v4992_v31  ;;  %v2346_v42 = vrot.slane %v2345_v8, 2  ;;  %v2601_v30 = vadd.f32 %v2600_v50, %v2599_v61  ;;  %v6337_v7 = vpop.f32.mrb[62].mxu0 }
 0x2b6   : > { %6971 = vst [vmem:[#allocation15_spill] sm:$0xff] %v6325_v39  ;;  %v3220_v47 = vadd.f32 1.0, %v4994_v26  ;;  %v2359_v35 = vadd.f32 %v2358_v58, %v2357_v52  ;;  %v2350_v14 = vsel %vm2286_vm3, %v2279_v44, 0.0  ;;  %v6340_v59 = vpop.f32.mrb[62].mxu1  ;;  %v6342_v28 = vpop.f32.mrb[63].mxu0  ;;  %v2613_v3 = vsel %vm2286_vm3, %v2521_v4, 0.0 }
 0x2b7   : > { %v4996_v33 = vpop.eup %4995  ;;  %v6345_v53 = vmul.f32 %v3044_v55, %v6280_v21  ;;  %v2347_v24 = vadd.f32 %v2346_v42, %v2345_v8  ;;  %v2602_v20 = vrot.slane %v2601_v30, 2  ;;  %v2351_v61 = vrot.slane %v2350_v14, 4  ;;  %v6347_v50 = vpop.f32.mrb[63].mxu1 }
 0x2b8   : > { %v6350_v31 = vmul.f32 %v3220_v47, %v6282_v34  ;;  %v3046_v52 = vadd.f32 1.0, %v4996_v33  ;;  %v2360_v58 = vrot.slane %v2359_v35, 2  ;;  %v2614_v23 = vrot.slane %v2613_v3, 4 }
 0x2b9   : > { %v4998_v44 = vpop.eup %4997  ;;  %v2603_v26 = vadd.f32 %v2602_v20, %v2601_v30  ;;  %v2352_v46 = vadd.f32 %v2351_v61, %v2350_v14  ;;  %v2456_v18 = vrot.slane %v6290_v17, 2  ;;  %v2249_v42 = vrot.slane %v6294_v11, 4 }
 0x2ba   : > { %v6355_v21 = vmul.f32 %v3046_v52, %v6285_v9  ;;  %v3222_v8 = vadd.f32 1.0, %v4998_v44  ;;  %v2361_v55 = vadd.f32 %v2360_v58, %v2359_v35  ;;  %v2615_v29 = vadd.f32 %v2614_v23, %v2613_v3  ;;  %v6360_v4 = vpop.f32.mrb[64].mxu0 }
 0x2bb   : > { %v2353_v34 = vrot.slane %v2352_v46, 2  ;;  %v2488_v47 = vmul.f32 %v2456_v18, %v6290_v17  ;;  %v2458_v33 = vrot.slane %v6294_v11, 2  ;;  %v2281_v14 = vmul.f32 %v2249_v42, %v6294_v11  ;;  %v6364_v9 = vpop.f32.mrb[64].mxu1  ;;  %v6366_v52 = vpop.f32.mrb[65].mxu0 }
 0x2bc   : > { %v3254_v30 = vmul.f32 %v3222_v8, %v6292_v43  ;;  %v2348_v20 = vrot.slane %v2347_v24, 1  ;;  %v2604_v61 = vrot.slane %v2603_v26, 1  ;;  %v2616_v35 = vrot.slane %v2615_v29, 2  ;;  %v6369_v18 = vpop.f32.mrb[65].mxu1  ;;  %v2036_v17 = vpop.f32.mrb[66].mxu0 }
 0x2bd   : > { %v2354_v58 = vadd.f32 %v2353_v34, %v2352_v46  ;;  %v2520_v23 = vrot.slane %v2488_v47, 2  ;;  %v2490_v3 = vmul.f32 %v2458_v33, %v6294_v11  ;;  %v2364_v44 = vsel %vm2286_vm3, %v2281_v14, 0.0  ;;  %v2097_v42 = vpop.f32.mrb[66].mxu1  ;;  %v2037_v48 = vpop.f32.mrb[67].mxu0 }
 0x2be   : > { %v2349_v45 = vadd.f32 %v2348_v20, %v2347_v24  ;;  %v2605_v43 = vadd.f32 %v2604_v61, %v2603_v26  ;;  %v2362_v8 = vrot.slane %v2361_v55, 1  ;;  %v2617_v51 = vadd.f32 %v2616_v35, %v2615_v29  ;;  %v2098_v49 = vpop.f32.mrb[67].mxu1 }
 0x2bf   : > { %v2606_v62 = vsel %vm2286_vm3, %v2520_v23, 0.0  ;;  %v2365_v41 = vrot.slane %v2364_v44, 4  ;;  %v2522_v19 = vrot.slane %v2490_v3, 2  ;;  %v2355_v11 = vrot.slane %v2354_v58, 1 }
 0x2c0   : > { %v2607_v46 = vrot.slane %v2606_v62, 4  ;;  %4999 = vtanh.f32 %v2349_v45  ;;  %v2363_v34 = vadd.f32 %v2362_v8, %v2361_v55  ;;  %v2618_v14 = vrot.slane %v2617_v51, 1 }
 0x2c1   : > { %v2366_v47 = vadd.f32 %v2365_v41, %v2364_v44  ;;  %v2620_v33 = vsel %vm2286_vm3, %v2522_v19, 0.0  ;;  %5001 = vtanh.f32 %v2605_v43  ;;  %v2356_v20 = vadd.f32 %v2355_v11, %v2354_v58 }
 0x2c2   : > { %v2608_v24 = vadd.f32 %v2607_v46, %v2606_v62  ;;  %v2621_v26 = vrot.slane %v2620_v33, 4  ;;  %5003 = vtanh.f32 %v2363_v34  ;;  %v2619_v29 = vadd.f32 %v2618_v14, %v2617_v51 }
 0x2c3   : > { %v2367_v48 = vrot.slane %v2366_v47, 2  ;;  %v3268_v61 = vpack.c.bf16 %v6350_v31, %v6305_v32  ;;  %v3270_v49 = vpack.c.bf16 %v3254_v30, %v6317_v63  ;;  %5005 = vtanh.f32 %v2356_v20 }
 0x2c4   : > { %v2609_v35 = vrot.slane %v2608_v24, 2  ;;  %v2622_v45 = vadd.f32 %v2621_v26, %v2620_v33  ;;  %v3267_v41 = vpack.c.bf16 %v6314_v60, %v6267_v38  ;;  %5007 = vtanh.f32 %v2619_v29 }
 0x2c5   : > { %v2368_v19 = vadd.f32 %v2367_v48, %v2366_v47  ;;  %v3310_v62 = vand.u32 %v6022_v6, %v3268_v61  ;;  %v3316_v55 = vand.u32 %v6022_v6, %v3270_v49  ;;  %v3269_v32 = vpack.c.bf16 %v6333_v16, %v6276_v36 }
 0x2c6   : > { %v2610_v58 = vadd.f32 %v2609_v35, %v2608_v24  ;;  %v2623_v23 = vrot.slane %v2622_v45, 2  ;;  %v3307_v51 = vand.u32 %v6022_v6, %v3267_v41  ;;  %v6972_v33 = vmov 0  }
 0x2c7   : > { %v2369_v63 = vrot.slane %v2368_v19, 1  ;;  %3424 = vmatprep.subr.bf16.mxu0 %v3310_v62  ;;  %3465 = vmatprep.subr.bf16.mxu1 %v3316_v55  ;;  %v3313_v17 = vand.u32 %v6022_v6, %v3269_v32 }
 0x2c8   : > { %v2624_v30 = vadd.f32 %v2623_v23, %v2622_v45  ;;  %v2611_v3 = vrot.slane %v2610_v58, 1  ;;  %3425 = vmatpush1.bf16.msra.mxu0 %v3307_v51 }
 0x2c9   : > { %v2370_v16 = vadd.f32 %v2369_v63, %v2368_v19  ;;  %3466 = vmatpush1.bf16.msra.mxu1 %v3313_v17 }
 0x2ca   : > { %v5000_v44 = vpop.eup %4999  ;;  %v2612_v43 = vadd.f32 %v2611_v3, %v2610_v58  ;;  %v2625_v8 = vrot.slane %v2624_v30, 1 }
 0x2cb   : > { %v5002_v42 = vpop.eup %5001  ;;  %v2423_v46 = vadd.f32 1.0, %v5000_v44  ;;  %5009 = vtanh.f32 %v2370_v16  ;;  %4510 = vmatmul.mubr.msk.bf16.vlgmr.msra.gmra.mrb[84].mxu0 %vm3287_vm5, %v6161_v1 }
 0x2cc   : > { %v5004_v34 = vpop.eup %5003  ;;  %v2679_v11 = vadd.f32 1.0, %v5002_v42  ;;  %5011 = vtanh.f32 %v2612_v43  ;;  %v2626_v47 = vadd.f32 %v2625_v8, %v2624_v30  ;;  %3538 = vmatprep.mubr.bf16.mxu0 %v6972_v33  ;;  %4511 = vmatmul.mubr.msk.bf16.vlgmr.msra.gmra.mrb[84].mxu1 %vm3287_vm5, %v6161_v1 }
 0x2cd   : > { %v2439_v14 = vmul.f32 0.5, %v2423_v46  ;;  %v2425_v24 = vadd.f32 1.0, %v5004_v34  ;;  %v5006_v26 = vpop.eup %5005  ;;  %3579 = vmatprep.mubr.bf16.mxu1 %v6972_v33 }
 0x2ce   : > { %v6398_v20 = vmul.f32 0.5, %v2679_v11  ;;  %5013 = vtanh.f32 %v2626_v47  ;;  %v5008_v48 = vpop.eup %5007  ;;  %v2424_v49 = vadd.f32 1.0, %v5006_v26 }
 0x2cf   : > { %v2711_v29 = vmul.f32 %v2439_v14, %v6296_v13  ;;  %v6402_v61 = vmul.f32 0.5, %v2425_v24  ;;  %v2727_v35 = vmul.f32 %v2439_v14, %v6322_v0  ;;  %v2681_v41 = vadd.f32 1.0, %v5008_v48 }
 0x2d0   : > { %v2823_v45 = vmul.f32 %v6398_v20, %v6296_v13  ;;  %v6409_v19 = vmul.f32 %v6398_v20, %v6322_v0  ;;  %v2743_v62 = vsub.f32 1.0, %v2439_v14  ;;  %v6413_v58 = vmul.f32 0.5, %v2424_v49 }
 0x2d1   : > { %v2713_v55 = vmul.f32 %v6402_v61, %v6301_v54  ;;  %v6417_v23 = vmul.f32 %v6402_v61, %v6328_v2  ;;  %v2855_v51 = vsub.f32 1.0, %v6398_v20  ;;  %v2697_v32 = vmul.f32 0.5, %v2681_v41 }
 0x2d2   : > { %v2759_v13 = vmul.f32 %v2743_v62, %v6337_v7  ;;  %v2745_v63 = vsub.f32 1.0, %v6402_v61  ;;  %v2775_v0 = vmul.f32 %v2743_v62, %v6360_v4  ;;  %v2712_v30 = vmul.f32 %v6413_v58, %v6303_v57 }
 0x2d3   : > { %v6427_v3 = vmul.f32 %v6413_v58, %v6330_v27  ;;  %v2871_v17 = vmul.f32 %v2855_v51, %v6337_v7  ;;  %v2744_v16 = vsub.f32 1.0, %v6413_v58  ;;  %v2825_v44 = vmul.f32 %v2697_v32, %v6301_v54 }
 0x2d4   : > { %v6433_v43 = vmul.f32 %v2697_v32, %v6328_v2  ;;  %v2791_v8 = vadd.f32 %v2759_v13, %v2711_v29  ;;  %v2761_v42 = vmul.f32 %v2745_v63, %v6340_v59  ;;  %v2857_v11 = vsub.f32 1.0, %v2697_v32 }
 0x2d5   : > { %v5010_v46 = vpop.eup %5009  ;;  %v2903_v34 = vadd.f32 %v2871_v17, %v2823_v45  ;;  %v2760_v47 = vmul.f32 %v2744_v16, %v6342_v28  ;;  %v2807_v14 = vadd.f32 %v2775_v0, %v2727_v35 }
 0x2d6   : > { %v5012_v24 = vpop.eup %5011  ;;  %v2426_v26 = vadd.f32 1.0, %v5010_v46  ;;  %v2967_v20 = vmul.f32 0.70710677, %v2791_v8  ;;  %v2793_v7 = vadd.f32 %v2761_v42, %v2713_v55  ;;  %v2873_v54 = vmul.f32 %v2857_v11, %v6340_v59 }
 0x2d7   : > { %v2680_v48 = vadd.f32 1.0, %v5012_v24  ;;  %v3143_v61 = vmul.f32 0.70710677, %v2903_v34  ;;  %v2935_v29 = vmul.f32 0.5, %v2791_v8  ;;  %v2792_v59 = vadd.f32 %v2760_v47, %v2712_v30 }
 0x2d8   : > { %v5014_v49 = vpop.eup %5013  ;;  %v6438_v2 = vmul.f32 0.5, %v2426_v26  ;;  %5015 = verf.f32 %v2967_v20  ;;  %v2969_v41 = vmul.f32 0.70710677, %v2793_v7  ;;  %v2905_v58 = vadd.f32 %v2873_v54, %v2825_v44 }
 0x2d9   : > { %v6440_v62 = vmul.f32 0.5, %v2680_v48  ;;  %v2682_v45 = vadd.f32 1.0, %v5014_v49  ;;  %5017 = verf.f32 %v3143_v61  ;;  %v3111_v17 = vmul.f32 0.5, %v2903_v34 }
 0x2da   : > { %v2714_v35 = vmul.f32 %v6438_v2, %v6307_v10  ;;  %v6446_v55 = vmul.f32 %v6438_v2, %v6335_v37  ;;  %5019 = verf.f32 %v2969_v41  ;;  %v2937_v44 = vmul.f32 0.5, %v2793_v7 }
 0x2db   : > { %v2824_v32 = vmul.f32 %v6440_v62, %v6303_v57  ;;  %v6450_v13 = vmul.f32 0.5, %v2682_v45  ;;  %v6454_v0 = vmul.f32 %v6440_v62, %v6330_v27  ;;  %v3145_v8 = vmul.f32 0.70710677, %v2905_v58 }
 0x2dc   : > { %v2856_v42 = vsub.f32 1.0, %v6440_v62  ;;  %v2968_v46 = vmul.f32 0.70710677, %v2792_v59  ;;  %v2746_v57 = vsub.f32 1.0, %v6438_v2  ;;  %v3113_v26 = vmul.f32 0.5, %v2905_v58 }
 0x2dd   : > { %v2826_v24 = vmul.f32 %v6450_v13, %v6307_v10  ;;  %v6461_v30 = vmul.f32 %v6450_v13, %v6335_v37  ;;  %v2858_v47 = vsub.f32 1.0, %v6450_v13  ;;  %5021 = verf.f32 %v3145_v8 }
 0x2de   : > { %v2872_v27 = vmul.f32 %v2856_v42, %v6342_v28  ;;  %v2887_v34 = vmul.f32 %v2855_v51, %v6360_v4  ;;  %5023 = verf.f32 %v2968_v46  ;;  %v2762_v20 = vmul.f32 %v2746_v57, %v6347_v50 }
 0x2df   : > { %v2874_v7 = vmul.f32 %v2858_v47, %v6347_v50  ;;  %v2983_v10 = vmul.f32 0.70710677, %v2807_v14  ;;  %v2777_v61 = vmul.f32 %v2745_v63, %v6364_v9  ;;  %v2889_v54 = vmul.f32 %v2857_v11, %v6364_v9 }
 0x2e0   : > { %v2904_v48 = vadd.f32 %v2872_v27, %v2824_v32  ;;  %v2919_v37 = vadd.f32 %v2887_v34, %v6409_v19  ;;  %v2794_v49 = vadd.f32 %v2762_v20, %v2714_v35  ;;  %v2776_v28 = vmul.f32 %v2744_v16, %v6366_v52 }
 0x2e1   : > { %v2906_v2 = vadd.f32 %v2874_v7, %v2826_v24  ;;  %5025 = verf.f32 %v2983_v10  ;;  %v2936_v4 = vmul.f32 0.5, %v2792_v59  ;;  %v2951_v45 = vmul.f32 0.5, %v2807_v14 }
 0x2e2   : > { %v5016_v41 = vpop.eup %5015  ;;  %v6473_v51 = vmul.f32 0.5, %v2904_v48  ;;  %v3144_v62 = vmul.f32 0.70710677, %v2904_v48  ;;  %v2970_v32 = vmul.f32 0.70710677, %v2794_v49  ;;  %v6475_v13 = vmul.f32 0.5, %v2919_v37 }
 0x2e3   : > { %v5018_v50 = vpop.eup %5017  ;;  %v3031_v58 = vadd.f32 1.0, %v5016_v41  ;;  %v3159_v19 = vmul.f32 0.70710677, %v2919_v37  ;;  %v3146_v9 = vmul.f32 0.70710677, %v2906_v2  ;;  %v2809_v11 = vadd.f32 %v2777_v61, %v6417_v23 }
 0x2e4   : > { %v5020_v63 = vpop.eup %5019  ;;  %v3207_v8 = vadd.f32 1.0, %v5018_v50  ;;  %5027 = verf.f32 %v3144_v62  ;;  %v6478_v16 = vmul.f32 0.5, %v2794_v49  ;;  %v2921_v59 = vadd.f32 %v2889_v54, %v6433_v43 }
 0x2e5   : > { %v3033_v35 = vadd.f32 1.0, %v5020_v63  ;;  %5029 = verf.f32 %v2970_v32  ;;  %v6481_v46 = vmul.f32 %v3031_v58, %v2935_v29  ;;  %v6483_v14 = vmul.f32 0.5, %v2906_v2 }
 0x2e6   : > { %5031 = verf.f32 %v3146_v9  ;;  %v2985_v24 = vmul.f32 0.70710677, %v2809_v11  ;;  %v6485_v27 = vmul.f32 %v3207_v8, %v3111_v17  ;;  %v6487_v34 = vmul.f32 0.5, %v2809_v11 }
 0x2e7   : > { %5033 = verf.f32 %v3159_v19  ;;  %v3161_v20 = vmul.f32 0.70710677, %v2921_v59  ;;  %v5022_v7 = vpop.eup %5021  ;;  %v2808_v23 = vadd.f32 %v2776_v28, %v6427_v3  ;;  %v2888_v10 = vmul.f32 %v2856_v42, %v6366_v52 }
 0x2e8   : > { %5035 = verf.f32 %v2985_v24  ;;  %v2778_v43 = vmul.f32 %v2746_v57, %v6369_v18  ;;  %v5024_v29 = vpop.eup %5023  ;;  %v6492_v48 = vmul.f32 %v3033_v35, %v2937_v44  ;;  %v3209_v37 = vadd.f32 1.0, %v5022_v7 }
 0x2e9   : > { %5037 = verf.f32 %v3161_v20  ;;  %v2890_v17 = vmul.f32 %v2858_v47, %v6369_v18  ;;  %v3032_v61 = vadd.f32 1.0, %v5024_v29  ;;  %v6495_v54 = vmul.f32 0.5, %v2921_v59 }
 0x2ea   : > { %v2920_v49 = vadd.f32 %v2888_v10, %v6454_v0  ;;  %v2984_v2 = vmul.f32 0.70710677, %v2808_v23  ;;  %v6498_v62 = vmul.f32 %v3209_v37, %v3113_v26  ;;  %v6500_v3 = vmul.f32 0.5, %v2808_v23  ;;  %v2134_v42 = vpop.f32.mrb[68].mxu0 }
 0x2eb   : > { %v5026_v41 = vpop.eup %5025  ;;  %v2810_v52 = vadd.f32 %v2778_v43, %v6446_v55  ;;  %v2922_v44 = vadd.f32 %v2890_v17, %v6461_v30  ;;  %v6504_v57 = vmul.f32 %v3032_v61, %v2936_v4  ;;  %v2195_v47 = vpop.f32.mrb[68].mxu1  ;;  %v2250_v63 = vrot.slane %v2134_v42, 4 }
 0x2ec   : > { %v3047_v28 = vadd.f32 1.0, %v5026_v41  ;;  %5039 = verf.f32 %v2984_v2  ;;  %v6506_v18 = vmul.f32 0.5, %v2920_v49  ;;  %v6508_v50 = vpop.f32.mrb[69].mxu0  ;;  %v3160_v0 = vmul.f32 0.70710677, %v2920_v49  ;;  %v6516_v8 = vpop.f32.mrb[69].mxu1 }
 0x2ed   : > { %v6510_v58 = vmul.f32 0.5, %v2810_v52  ;;  %v2986_v26 = vmul.f32 0.70710677, %v2810_v52  ;;  %v6512_v32 = vmul.f32 0.5, %v2922_v44  ;;  %v3162_v30 = vmul.f32 0.70710677, %v2922_v44 }
 0x2ee   : > { %v5028_v19 = vpop.eup %5027  ;;  %v6514_v55 = vmul.f32 %v3047_v28, %v2951_v45  ;;  %v2459_v4 = vrot.slane %v2134_v42, 2  ;;  %v6518_v9 = vpop.f32.mrb[70].mxu0  ;;  %5041 = verf.f32 %v3160_v0  ;;  %v2252_v59 = vrot.slane %v2195_v47, 4 }
 0x2ef   : > { %v5030_v11 = vpop.eup %5029  ;;  %v3208_v35 = vadd.f32 1.0, %v5028_v19  ;;  %v2461_v24 = vrot.slane %v2195_v47, 2  ;;  %v6520_v20 = vpop.f32.mrb[70].mxu1  ;;  %5043 = verf.f32 %v2986_v26  ;;  %v2282_v45 = vmul.f32 %v2250_v63, %v2134_v42 }
 0x2f0   : > { %v6522_v7 = vpop.f32.mrb[71].mxu0  ;;  %v5032_v23 = vpop.eup %5031  ;;  %v3034_v10 = vadd.f32 1.0, %v5030_v11  ;;  %v2491_v43 = vmul.f32 %v2459_v4, %v2134_v42  ;;  %5045 = verf.f32 %v3162_v30  ;;  %v2284_v49 = vmul.f32 %v2252_v59, %v2195_v47 }
 0x2f1   : > { %v6524_v29 = vpop.f32.mrb[71].mxu1  ;;  %v5034_v37 = vpop.eup %5033  ;;  %v6527_v17 = vmul.f32 %v3208_v35, %v6473_v51  ;;  %v3210_v61 = vadd.f32 1.0, %v5032_v23  ;;  %v2371_v44 = vsel %vm2286_vm3, %v2282_v45, 0.0  ;;  %v2493_v45 = vmul.f32 %v2461_v24, %v2195_v47 }
 0x2f2   : > { %v5036_v2 = vpop.eup %5035  ;;  %v6530_v41 = vmul.f32 %v3034_v10, %v6478_v16  ;;  %v3223_v52 = vadd.f32 1.0, %v5034_v37  ;;  %v2523_v28 = vrot.slane %v2491_v43, 2  ;;  %v2372_v19 = vrot.slane %v2371_v44, 4  ;;  %v6537_v63 = vpop.f32.mrb[72].mxu0 }
 0x2f3   : > { %v5038_v0 = vpop.eup %5037  ;;  %v6534_v42 = vmul.f32 %v3210_v61, %v6483_v14  ;;  %v3049_v26 = vadd.f32 1.0, %v5036_v2  ;;  %v2385_v51 = vsel %vm2286_vm3, %v2284_v49, 0.0  ;;  %v6541_v35 = vpop.f32.mrb[72].mxu1  ;;  %v2525_v47 = vrot.slane %v2493_v45, 2 }
 0x2f4   : > { %v3255_v30 = vmul.f32 %v3223_v52, %v6475_v13  ;;  %v3225_v4 = vadd.f32 1.0, %v5038_v0  ;;  %v2627_v16 = vsel %vm2286_vm3, %v2523_v28, 0.0  ;;  %v2386_v11 = vrot.slane %v2385_v51, 4  ;;  %v6543_v59 = vpop.f32.mrb[73].mxu0  ;;  %v6548_v43 = vpop.f32.mrb[73].mxu1 }
 0x2f5   : > { %v6546_v23 = vmul.f32 %v3049_v26, %v6487_v34  ;;  %v2373_v14 = vadd.f32 %v2372_v19, %v2371_v44  ;;  %v2628_v10 = vrot.slane %v2627_v16, 4  ;;  %v6550_v37 = vpop.f32.mrb[74].mxu0  ;;  %v2251_v52 = vrot.slane %v6508_v50, 4  ;;  %v6555_v28 = vpop.f32.mrb[74].mxu1 }
 0x2f6   : > { %v5040_v61 = vpop.eup %5039  ;;  %v3257_v13 = vmul.f32 %v3225_v4, %v6495_v54  ;;  %v2387_v49 = vadd.f32 %v2386_v11, %v2385_v51  ;;  %v3271_v2 = vpack.c.bf16 %v3255_v30, %v6485_v27  ;;  %v6557_v0 = vpop.f32.mrb[75].mxu0 }
 0x2f7   : > { %v3048_v34 = vadd.f32 1.0, %v5040_v61  ;;  %v2374_v44 = vrot.slane %v2373_v14, 2  ;;  %v2629_v26 = vadd.f32 %v2628_v10, %v2627_v16  ;;  %v6559_v24 = vpop.f32.mrb[75].mxu1  ;;  %v2283_v51 = vmul.f32 %v2251_v52, %v6508_v50 }
 0x2f8   : > { %v2388_v19 = vrot.slane %v2387_v49, 2  ;;  %v3319_v36 = vand.u32 %v6022_v6, %v3271_v2  ;;  %v3273_v54 = vpack.c.bf16 %v3257_v13, %v6498_v62  ;;  %v5042_v27 = vpop.eup %5041  ;;  %v2641_v61 = vsel %vm2286_vm3, %v2525_v47, 0.0 }
 0x2f9   : > { %v6565_v30 = vmul.f32 %v3048_v34, %v6500_v3  ;;  %v2375_v4 = vadd.f32 %v2374_v44, %v2373_v14  ;;  %v2630_v11 = vrot.slane %v2629_v26, 2  ;;  %v5044_v60 = vpop.eup %5043  ;;  %v3224_v16 = vadd.f32 1.0, %v5042_v27 }
 0x2fa   : > { %v2389_v10 = vadd.f32 %v2388_v19, %v2387_v49  ;;  %v2642_v45 = vrot.slane %v2641_v61, 4  ;;  %v3325_v38 = vand.u32 %v6022_v6, %v3273_v54  ;;  %v5046_v31 = vpop.eup %5045  ;;  %v3050_v2 = vadd.f32 1.0, %v5044_v60  ;;  %v6571_v52 = vpop.f32.mrb[76].mxu0 }
 0x2fb   : > { %v2631_v22 = vadd.f32 %v2630_v11, %v2629_v26  ;;  %v2378_v62 = vsel %vm2286_vm3, %v2283_v51, 0.0  ;;  %v2460_v13 = vrot.slane %v6508_v50, 2  ;;  %v3256_v3 = vmul.f32 %v3224_v16, %v6506_v18  ;;  %v6574_v47 = vpop.f32.mrb[76].mxu1  ;;  %v6576_v49 = vpop.f32.mrb[77].mxu0 }
 0x2fc   : > { %v3226_v14 = vadd.f32 1.0, %v5046_v31  ;;  %v2643_v34 = vadd.f32 %v2642_v45, %v2641_v61  ;;  %v2379_v44 = vrot.slane %v2378_v62, 4  ;;  %v6579_v19 = vmul.f32 %v3050_v2, %v6510_v58  ;;  %v6584_v51 = vpop.f32.mrb[77].mxu1  ;;  %v2158_v27 = vpop.f32.mrb[78].mxu0 }
 0x2fd   : > { %v2492_v60 = vmul.f32 %v2460_v13, %v6508_v50  ;;  %v2253_v26 = vrot.slane %v6516_v8, 4  ;;  %v2462_v54 = vrot.slane %v6516_v8, 2  ;;  %v3272_v18 = vpack.c.bf16 %v3256_v3, %v6527_v17  ;;  %v2219_v16 = vpop.f32.mrb[78].mxu1  ;;  %v2159_v45 = vpop.f32.mrb[79].mxu0 }
 0x2fe   : > { %v3258_v31 = vmul.f32 %v3226_v14, %v6512_v32  ;;  %v2644_v11 = vrot.slane %v2643_v34, 2  ;;  %v2380_v61 = vadd.f32 %v2379_v44, %v2378_v62  ;;  %v2376_v2 = vrot.slane %v2375_v4, 1  ;;  %v2220_v13 = vpop.f32.mrb[79].mxu1 }
 0x2ff   : > { %v2524_v39 = vrot.slane %v2492_v60, 2  ;;  %v2285_v58 = vmul.f32 %v2253_v26, %v6516_v8  ;;  %v2494_v50 = vmul.f32 %v2462_v54, %v6516_v8  ;;  %v3322_v25 = vand.u32 %v6022_v6, %v3272_v18 }
 0x300   : > { %v3274_v56 = vpack.c.bf16 %v3258_v31, %v6534_v42  ;;  %v2645_v27 = vadd.f32 %v2644_v11, %v2643_v34  ;;  %v2381_v40 = vrot.slane %v2380_v61, 2  ;;  %v2377_v3 = vadd.f32 %v2376_v2, %v2375_v4 }
 0x301   : > { %v2634_v32 = vsel %vm2286_vm3, %v2524_v39, 0.0  ;;  %v2392_v17 = vsel %vm2286_vm3, %v2285_v58, 0.0  ;;  %v2526_v62 = vrot.slane %v2494_v50, 2  ;;  %3506 = vmatprep.subr.bf16.mxu0 %v3322_v25  ;;  %v2632_v54 = vrot.slane %v2631_v22, 1 }
 0x302   : > { %v3328_v14 = vand.u32 %v6022_v6, %v3274_v56  ;;  %v2382_v44 = vadd.f32 %v2381_v40, %v2380_v61  ;;  %v2635_v60 = vrot.slane %v2634_v32, 4  ;;  %v2393_v8 = vrot.slane %v2392_v17, 4  ;;  %3507 = vmatpush1.bf16.msra.mxu0 %v3319_v36 }
 0x303   : > { %v2648_v26 = vsel %vm2286_vm3, %v2526_v62, 0.0  ;;  %5047 = vtanh.f32 %v2377_v3  ;;  %v2390_v42 = vrot.slane %v2389_v10, 1  ;;  %v2646_v18 = vrot.slane %v2645_v27, 1 }
 0x304   : > { %3547 = vmatprep.subr.bf16.mxu1 %v3328_v14  ;;  %v2636_v34 = vadd.f32 %v2635_v60, %v2634_v32  ;;  %v2394_v31 = vadd.f32 %v2393_v8, %v2392_v17  ;;  %v2649_v39 = vrot.slane %v2648_v26, 4  ;;  %v2633_v11 = vadd.f32 %v2632_v54, %v2631_v22 }
 0x305   : > { %3548 = vmatpush1.bf16.msra.mxu1 %v3325_v38  ;;  %v2391_v4 = vadd.f32 %v2390_v42, %v2389_v10  ;;  %v2383_v25 = vrot.slane %v2382_v44, 1  ;;  %v3096_v56 = vpack.c.bf16 %v6565_v30, %v6504_v57  ;;  %v2647_v16 = vadd.f32 %v2646_v18, %v2645_v27  ;;  %4512 = vmatmul.mubr.msk.bf16.vlgmr.msra.gmra.mrb[88].mxu0 %vm3287_vm5, %v6161_v1 }
 0x306   : > { %v2637_v40 = vrot.slane %v2636_v34, 2  ;;  %v2395_v61 = vrot.slane %v2394_v31, 2  ;;  %v2650_v36 = vadd.f32 %v2649_v39, %v2648_v26  ;;  %5049 = vtanh.f32 %v2633_v11  ;;  %3620 = vmatprep.mubr.bf16.mxu0 %v6972_v33 }
 0x307   : > { %v2384_v45 = vadd.f32 %v2383_v25, %v2382_v44  ;;  %v3098_v38 = vpack.c.bf16 %v6579_v19, %v6530_v41  ;;  %5051 = vtanh.f32 %v2391_v4  ;;  %v3095_v50 = vpack.c.bf16 %v6514_v55, %v6481_v46 }
 0x308   : > { %v2638_v22 = vadd.f32 %v2637_v40, %v2636_v34  ;;  %v2396_v10 = vadd.f32 %v2395_v61, %v2394_v31  ;;  %v2651_v58 = vrot.slane %v2650_v36, 2  ;;  %4513 = vmatmul.mubr.msk.bf16.vlgmr.msra.gmra.mrb[88].mxu1 %vm3287_vm5, %v6161_v1  ;;  %5053 = vtanh.f32 %v2647_v16 }
 0x309   : > { %3661 = vmatprep.mubr.bf16.mxu1 %v6972_v33  ;;  %v3097_v2 = vpack.c.bf16 %v6546_v23, %v6492_v48  ;;  %5055 = vtanh.f32 %v2384_v45  ;;  %v3698_v57 = vand.u32 %v6022_v6, %v3095_v50 }
 0x30a   : > { %v2652_v13 = vadd.f32 %v2651_v58, %v2650_v36  ;;  %v2639_v27 = vrot.slane %v2638_v22, 1  ;;  %v2397_v32 = vrot.slane %v2396_v10, 1 }
 0x30b   : > { %v3704_v41 = vand.u32 %v6022_v6, %v3097_v2 }
 0x30c   : > { %v2640_v17 = vadd.f32 %v2639_v27, %v2638_v22  ;;  %v2398_v62 = vadd.f32 %v2397_v32, %v2396_v10  ;;  %v2653_v3 = vrot.slane %v2652_v13, 1 }
 0x30d   : > { %v5048_v14 = vpop.eup %5047 }
 0x30e   : > { %v2427_v44 = vadd.f32 1.0, %v5048_v14  ;;  %5057 = vtanh.f32 %v2640_v17  ;;  %v2654_v60 = vadd.f32 %v2653_v3, %v2652_v13 }
 0x30f   : > { %5059 = vtanh.f32 %v2398_v62 }
 0x310   : > { %v2443_v8 = vmul.f32 0.5, %v2427_v44  ;;  %5061 = vtanh.f32 %v2654_v60  ;;  %v5050_v26 = vpop.eup %5049 }
 0x311   : > { %v5052_v54 = vpop.eup %5051  ;;  %v2683_v42 = vadd.f32 1.0, %v5050_v26 }
 0x312   : > { %v2715_v34 = vmul.f32 %v2443_v8, %v6518_v9  ;;  %v2731_v31 = vmul.f32 %v2443_v8, %v6537_v63  ;;  %v2747_v39 = vsub.f32 1.0, %v2443_v8  ;;  %v5054_v18 = vpop.eup %5053  ;;  %v2429_v11 = vadd.f32 1.0, %v5052_v54 }
 0x313   : > { %v5056_v4 = vpop.eup %5055  ;;  %v2699_v25 = vmul.f32 0.5, %v2683_v42  ;;  %v2685_v40 = vadd.f32 1.0, %v5054_v18 }
 0x314   : > { %v2763_v61 = vmul.f32 %v2747_v39, %v6550_v37  ;;  %v2779_v36 = vmul.f32 %v2747_v39, %v6571_v52  ;;  %v6614_v16 = vmul.f32 0.5, %v2429_v11  ;;  %v2428_v45 = vadd.f32 1.0, %v5056_v4 }
 0x315   : > { %v2827_v22 = vmul.f32 %v2699_v25, %v6518_v9  ;;  %v6617_v10 = vmul.f32 0.5, %v2685_v40  ;;  %v2843_v58 = vmul.f32 %v2699_v25, %v6537_v63  ;;  %v2859_v62 = vsub.f32 1.0, %v2699_v25 }
 0x316   : > { %v6620_v13 = vadd.f32 %v2763_v61, %v2715_v34  ;;  %v2717_v27 = vmul.f32 %v6614_v16, %v6520_v20  ;;  %v6624_v32 = vmul.f32 0.5, %v2428_v45  ;;  %v6628_v17 = vmul.f32 %v6614_v16, %v6541_v35 }
 0x317   : > { %v2829_v9 = vmul.f32 %v6617_v10, %v6520_v20  ;;  %v6634_v14 = vmul.f32 %v6617_v10, %v6541_v35  ;;  %v2875_v26 = vmul.f32 %v2859_v62, %v6550_v37  ;;  %v2749_v20 = vsub.f32 1.0, %v6614_v16 }
 0x318   : > { %v5058_v3 = vpop.eup %5057  ;;  %v2716_v60 = vmul.f32 %v6624_v32, %v6522_v7  ;;  %v6640_v8 = vmul.f32 %v6624_v32, %v6543_v59  ;;  %v2971_v34 = vmul.f32 0.70710677, %v6620_v13  ;;  %v2861_v35 = vsub.f32 1.0, %v6617_v10 }
 0x319   : > { %v5060_v63 = vpop.eup %5059  ;;  %v2684_v44 = vadd.f32 1.0, %v5058_v3  ;;  %v6646_v11 = vadd.f32 %v2875_v26, %v2827_v22  ;;  %v2748_v4 = vsub.f32 1.0, %v6624_v32  ;;  %v2765_v40 = vmul.f32 %v2749_v20, %v6555_v28 }
 0x31a   : > { %v5062_v54 = vpop.eup %5061  ;;  %v2430_v42 = vadd.f32 1.0, %v5060_v63  ;;  %v2877_v61 = vmul.f32 %v2861_v35, %v6555_v28  ;;  %v6651_v37 = vadd.f32 %v2779_v36, %v2731_v31  ;;  %5063 = verf.f32 %v2971_v34 }
 0x31b   : > { %v2700_v39 = vmul.f32 0.5, %v2684_v44  ;;  %v2686_v18 = vadd.f32 1.0, %v5062_v54  ;;  %v3147_v22 = vmul.f32 0.70710677, %v6646_v11  ;;  %v6658_v44 = vadd.f32 %v2765_v40, %v2717_v27 }
 0x31c   : > { %v2446_v25 = vmul.f32 0.5, %v2430_v42  ;;  %v6662_v28 = vadd.f32 %v2877_v61, %v2829_v9  ;;  %v2764_v31 = vmul.f32 %v2748_v4, %v6557_v0 }
 0x31d   : > { %v2828_v45 = vmul.f32 %v2700_v39, %v6522_v7  ;;  %v2702_v3 = vmul.f32 0.5, %v2686_v18  ;;  %v2844_v16 = vmul.f32 %v2700_v39, %v6543_v59  ;;  %v2860_v7 = vsub.f32 1.0, %v2700_v39 }
 0x31e   : > { %v2718_v10 = vmul.f32 %v2446_v25, %v6524_v29  ;;  %v2734_v63 = vmul.f32 %v2446_v25, %v6548_v43  ;;  %v2973_v59 = vmul.f32 0.70710677, %v6658_v44  ;;  %v6666_v36 = vadd.f32 %v2764_v31, %v2716_v60 }
 0x31f   : > { %v2830_v32 = vmul.f32 %v2702_v3, %v6524_v29  ;;  %v2846_v26 = vmul.f32 %v2702_v3, %v6548_v43  ;;  %v2750_v54 = vsub.f32 1.0, %v2446_v25  ;;  %v3149_v42 = vmul.f32 0.70710677, %v6662_v28 }
 0x320   : > { %v2876_v27 = vmul.f32 %v2860_v7, %v6557_v0  ;;  %v2862_v18 = vsub.f32 1.0, %v2702_v3  ;;  %v2891_v29 = vmul.f32 %v2859_v62, %v6571_v52  ;;  %5065 = verf.f32 %v3147_v22 }
 0x321   : > { %v2766_v43 = vmul.f32 %v2750_v54, %v6559_v24  ;;  %v2972_v34 = vmul.f32 0.70710677, %v6666_v36  ;;  %5067 = verf.f32 %v2973_v59  ;;  %v2987_v25 = vmul.f32 0.70710677, %v6651_v37 }
 0x322   : > { %v6672_v9 = vadd.f32 %v2876_v27, %v2828_v45  ;;  %v2878_v39 = vmul.f32 %v2862_v18, %v6559_v24  ;;  %v2923_v40 = vadd.f32 %v2891_v29, %v2843_v58  ;;  %5069 = verf.f32 %v3149_v42 }
 0x323   : > { %v6676_v60 = vadd.f32 %v2766_v43, %v2718_v10  ;;  %5071 = verf.f32 %v2987_v25  ;;  %v2781_v45 = vmul.f32 %v2749_v20, %v6574_v47  ;;  %v2893_v24 = vmul.f32 %v2861_v35, %v6574_v47 }
 0x324   : > { %v3148_v0 = vmul.f32 0.70710677, %v6672_v9  ;;  %v6680_v61 = vadd.f32 %v2878_v39, %v2830_v32  ;;  %5073 = verf.f32 %v2972_v34  ;;  %v3163_v62 = vmul.f32 0.70710677, %v2923_v40  ;;  %v5064_v3 = vpop.eup %5063 }
 0x325   : > { %v2974_v52 = vmul.f32 0.70710677, %v6676_v60  ;;  %v2780_v58 = vmul.f32 %v2748_v4, %v6576_v49  ;;  %v2892_v22 = vmul.f32 %v2860_v7, %v6576_v49  ;;  %v2782_v32 = vmul.f32 %v2750_v54, %v6584_v51 }
 0x326   : > { %5075 = verf.f32 %v3148_v0  ;;  %v3150_v10 = vmul.f32 0.70710677, %v6680_v61  ;;  %v2894_v31 = vmul.f32 %v2862_v18, %v6584_v51  ;;  %v2813_v59 = vadd.f32 %v2781_v45, %v6628_v17 }
 0x327   : > { %5077 = verf.f32 %v3163_v62  ;;  %v2925_v42 = vadd.f32 %v2893_v24, %v6634_v14  ;;  %v2812_v20 = vadd.f32 %v2780_v58, %v6640_v8  ;;  %v2924_v27 = vadd.f32 %v2892_v22, %v2844_v16 }
 0x328   : > { %v6693_v47 = vadd.f32 %v2782_v32, %v2734_v63  ;;  %v6695_v35 = vadd.f32 %v2894_v31, %v2846_v26  ;;  %v3035_v29 = vadd.f32 1.0, %v5064_v3  ;;  %5079 = verf.f32 %v2974_v52 }
 0x329   : > { %v2989_v49 = vmul.f32 0.70710677, %v2813_v59  ;;  %5081 = verf.f32 %v3150_v10  ;;  %v3165_v7 = vmul.f32 0.70710677, %v2925_v42  ;;  %v2939_v51 = vmul.f32 0.5, %v6620_v13 }
 0x32a   : > { %v5066_v4 = vpop.eup %5065  ;;  %v2988_v17 = vmul.f32 0.70710677, %v2812_v20  ;;  %v3164_v14 = vmul.f32 0.70710677, %v2924_v27  ;;  %v2955_v63 = vmul.f32 0.5, %v6651_v37  ;;  %v3115_v0 = vmul.f32 0.5, %v6646_v11 }
 0x32b   : > { %v5068_v54 = vpop.eup %5067  ;;  %5083 = verf.f32 %v2989_v49  ;;  %v6698_v16 = vmul.f32 %v3035_v29, %v2939_v51  ;;  %v2990_v26 = vmul.f32 0.70710677, %v6693_v47  ;;  %v3211_v34 = vadd.f32 1.0, %v5066_v4 }
 0x32c   : > { %v5070_v18 = vpop.eup %5069  ;;  %5085 = verf.f32 %v3165_v7  ;;  %v3166_v25 = vmul.f32 0.70710677, %v6695_v35  ;;  %v2941_v45 = vmul.f32 0.5, %v6658_v44  ;;  %v3131_v37 = vmul.f32 0.5, %v2923_v40 }
 0x32d   : > { %v5072_v8 = vpop.eup %5071  ;;  %5087 = verf.f32 %v2988_v17  ;;  %v3243_v24 = vmul.f32 %v3211_v34, %v3115_v0  ;;  %v3037_v58 = vadd.f32 1.0, %v5068_v54  ;;  %v3117_v32 = vmul.f32 0.5, %v6662_v28 }
 0x32e   : > { %v5074_v43 = vpop.eup %5073  ;;  %v3051_v39 = vadd.f32 1.0, %v5072_v8  ;;  %5089 = verf.f32 %v3164_v14  ;;  %v3213_v31 = vadd.f32 1.0, %v5070_v18  ;;  %v2940_v4 = vmul.f32 0.5, %v6666_v36 }
 0x32f   : > { %5091 = verf.f32 %v2990_v26  ;;  %v3116_v11 = vmul.f32 0.5, %v6672_v9  ;;  %v3036_v49 = vadd.f32 1.0, %v5074_v43  ;;  %v2942_v7 = vmul.f32 0.5, %v6676_v60 }
 0x330   : > { %v5076_v13 = vpop.eup %5075  ;;  %v6704_v52 = vmul.f32 %v3051_v39, %v2955_v63  ;;  %5093 = verf.f32 %v3166_v25  ;;  %v3118_v44 = vmul.f32 0.5, %v6680_v61  ;;  %v2957_v17 = vmul.f32 0.5, %v2813_v59 }
 0x331   : > { %v5078_v62 = vpop.eup %5077  ;;  %v3212_v51 = vadd.f32 1.0, %v5076_v13  ;;  %v3133_v14 = vmul.f32 0.5, %v2925_v42  ;;  %v2956_v8 = vmul.f32 0.5, %v2812_v20  ;;  %v6714_v26 = vmul.f32 %v3037_v58, %v2941_v45 }
 0x332   : > { %v3227_v3 = vadd.f32 1.0, %v5078_v62  ;;  %v3099_v10 = vpack.c.bf16 %v6704_v52, %v6698_v16  ;;  %v5080_v22 = vpop.eup %5079  ;;  %v3245_v9 = vmul.f32 %v3213_v31, %v3117_v32  ;;  %v3132_v25 = vmul.f32 0.5, %v2924_v27 }
 0x333   : > { %v5082_v29 = vpop.eup %5081  ;;  %v3038_v28 = vadd.f32 1.0, %v5080_v22  ;;  %v6716_v0 = vmul.f32 %v3036_v49, %v2940_v4  ;;  %v2958_v59 = vmul.f32 0.5, %v6693_v47  ;;  %v3244_v20 = vmul.f32 %v3212_v51, %v3116_v11 }
 0x334   : > { %v3259_v40 = vmul.f32 %v3227_v3, %v3131_v37  ;;  %v3214_v39 = vadd.f32 1.0, %v5082_v29  ;;  %v3134_v37 = vmul.f32 0.5, %v6695_v35  ;;  %v3710_v48 = vand.u32 %v6022_v6, %v3099_v10 }
 0x335   : > { %v5084_v54 = vpop.eup %5083  ;;  %v3070_v58 = vmul.f32 %v3038_v28, %v2942_v7  ;;  %v6975_v28 = vld [vmem:[#allocation7_spill] sm:$0xff] }
 0x336   : > { %v5086_v63 = vpop.eup %5085  ;;  %v3053_v18 = vadd.f32 1.0, %v5084_v54  ;;  %v3275_v36 = vpack.c.bf16 %v3259_v40, %v3243_v24  ;;  %v3246_v32 = vmul.f32 %v3214_v39, %v3118_v44  ;;  %v6973_v44 = vpack.c.bf16 %v6101_v5, %v6064_v15 }
 0x337   : > { %v5088_v34 = vpop.eup %5087  ;;  %v3229_v43 = vadd.f32 1.0, %v5086_v63  ;;  %v6974_v63 = vld [vmem:[#allocation10_spill] sm:$0xff]  ;;  %v6980_v15 = vpack.c.bf16 %v6345_v53, %v6288_v12  ;;  %v6986_v12 = vld [vmem:[#allocation13_spill] sm:$0xff]  ;;  %v6987_v53 = vld [vmem:[#allocation11_spill] sm:$0xff] }
 0x338   : > { %v5090_v60 = vpop.eup %5089  ;;  %v6718_v61 = vmul.f32 %v3053_v18, %v2957_v17  ;;  %v3052_v13 = vadd.f32 1.0, %v5088_v34  ;;  %v3331_v7 = vand.u32 %v6022_v6, %v3275_v36  ;;  %v6976_v18 = vpack.c.bf16 %v6974_v63, %v6975_v28  ;;  %v6977_v36 = vld [vmem:[#allocation8_spill] sm:$0xff] }
 0x339   : > { %v5092_v42 = vpop.eup %5091  ;;  %v3261_v62 = vmul.f32 %v3229_v43, %v3133_v14  ;;  %v3228_v45 = vadd.f32 1.0, %v5090_v60  ;;  %v3677_v14 = vand.u32 %v6022_v6, %v6973_v44  ;;  %v3689_v5 = vand.u32 %v6022_v6, %v6980_v15  ;;  %v6982_v60 = vld [vmem:[#allocation6_spill] sm:$0xff] }
 0x33a   : > { %v5094_v24 = vpop.eup %5093  ;;  %v3084_v3 = vmul.f32 %v3052_v13, %v2956_v8  ;;  %v3054_v22 = vadd.f32 1.0, %v5092_v42  ;;  %v3101_v27 = vpack.c.bf16 %v6718_v61, %v6714_v26  ;;  %v3683_v34 = vand.u32 %v6022_v6, %v6976_v18 }
 0x33b   : > { %v3260_v31 = vmul.f32 %v3228_v45, %v3132_v25  ;;  %v3230_v4 = vadd.f32 1.0, %v5094_v24  ;;  %v3277_v29 = vpack.c.bf16 %v3261_v62, %v3245_v9  ;;  %v6978_v9 = vld [vmem:[#allocation5_spill] sm:$0xff]  ;;  %v6988_v62 = vpack.c.bf16 %v6986_v12, %v6987_v53  ;;  %v6990_v24 = vld [vmem:[#allocation12_spill] sm:$0xff] }
 0x33c   : > { %v3086_v49 = vmul.f32 %v3054_v22, %v2958_v59  ;;  %v3100_v47 = vpack.c.bf16 %v3084_v3, %v6716_v0  ;;  %v6979_v39 = vpack.c.bf16 %v6977_v36, %v6978_v9  ;;  %v6981_v25 = vld [vmem:[#allocation9_spill] sm:$0xff]  ;;  %v6984_v59 = vld [vmem:[#allocation14_spill] sm:$0xff]  ;;  %v3707_v22 = vand.u32 %v6022_v6, %v3098_v38 }
 0x33d   : > { %v3262_v40 = vmul.f32 %v3230_v4, %v3134_v37  ;;  %v3276_v11 = vpack.c.bf16 %v3260_v31, %v3244_v20  ;;  %v3337_v8 = vand.u32 %v6022_v6, %v3277_v29  ;;  %v6983_v0 = vpack.c.bf16 %v6981_v25, %v6982_v60  ;;  %v5128_v37 = vld [vmem:[%s6943_s1 + $0x20] sm:$0x1] }
 0x33e   : > { %v3102_v54 = vpack.c.bf16 %v3086_v49, %v3070_v58  ;;  %v3674_v43 = vand.u32 %v6022_v6, %v6979_v39  ;;  %v6985_v42 = vpack.c.bf16 %v6355_v21, %v6984_v59  ;;  %v3686_v45 = vand.u32 %v6022_v6, %v6988_v62  ;;  %v6989_v21 = vld [vmem:[#allocation15_spill] sm:$0xff] }
 0x33f   : > { %v3334_v51 = vand.u32 %v6022_v6, %v3276_v11  ;;  %v3278_v35 = vpack.c.bf16 %v3262_v40, %v3246_v32  ;;  %v3680_v13 = vand.u32 %v6022_v6, %v6983_v0  ;;  %v6991_v58 = vpack.c.bf16 %v6989_v21, %v6990_v24 }
 0x340   : > { %v3695_v20 = vand.u32 %v6022_v6, %v6985_v42  ;;  %v3713_v30 = vand.u32 %v6022_v6, %v3100_v47  ;;  %v3719_v19 = vand.u32 %v6022_v6, %v3102_v54  ;;  %v3716_v31 = vand.u32 %v6022_v6, %v3101_v27 }
 0x341   : > { %3588 = vmatprep.subr.bf16.mxu0 %v3334_v51  ;;  %v3340_v17 = vand.u32 %v6022_v6, %v3278_v35  ;;  %v3692_v3 = vand.u32 %v6022_v6, %v6991_v58  ;;  %v4141_v24 = vlaneseq }
 0x342   : > { %3589 = vmatpush1.bf16.msra.mxu0 %v3331_v7 }
 0x343   : > { %3629 = vmatprep.subr.bf16.mxu1 %v3340_v17  ;;  %3721 = vmatprep.subr.bf16.mxu0 %v3677_v14 }
 0x344   : > { %3630 = vmatpush1.bf16.msra.mxu1 %v3337_v8 }
 0x345   : > { %3762 = vmatprep.subr.bf16.mxu1 %v3683_v34  ;;  %4514 = vmatmul.mubr.msk.bf16.vlgmr.msra.gmra.mrb[92].mxu0 %vm3287_vm5, %v6161_v1  ;;  %v6826_v34 = vpop.permute.xlu1 %4051 }
 0x346   : > { %3722 = vmatpush1.bf16.msra.mxu0 %v3674_v43  ;;  %3753 = vmatprep.mubr.bf16.mxu0 %v6972_v33 }
 0x347   : > { %4515 = vmatmul.mubr.msk.bf16.vlgmr.msra.gmra.mrb[92].mxu1 %vm3287_vm5, %v6161_v1  ;;  %3803 = vmatprep.subr.bf16.mxu0 %v3689_v5  ;;  %v3701_v1 = vand.u32 %v6022_v6, %v3096_v56 }
 0x348   : > { %3763 = vmatpush1.bf16.msra.mxu1 %v3680_v13  ;;  %3794 = vmatprep.mubr.bf16.mxu1 %v6972_v33 }
 0x349   : > { %3844 = vmatprep.subr.bf16.mxu1 %v3695_v20 }
 0x34d   : > { %4516 = vmatmul.mubr.msk.bf16.vlgmr.msra.gmra.mrb[96].mxu0 %vm3287_vm5, %v5128_v37 }
 0x34e   : > { %3804 = vmatpush1.bf16.msra.mxu0 %v3686_v45  ;;  %3835 = vmatprep.mubr.bf16.mxu0 %v6972_v33 }
 0x34f   : > { %4517 = vmatmul.mubr.msk.bf16.vlgmr.msra.gmra.mrb[96].mxu1 %vm3287_vm5, %v5128_v37  ;;  %3885 = vmatprep.subr.bf16.mxu0 %v3701_v1  ;;  %v5195_v1 = vmov 1966171168  }
 0x350   : > { %3845 = vmatpush1.bf16.msra.mxu1 %v3692_v3  ;;  %3876 = vmatprep.mubr.bf16.mxu1 %v6972_v33  ;;  %v4139_v21 = vunpack.c.l.s4 %v5195_v1 }
 0x351   : > { %3926 = vmatprep.subr.bf16.mxu1 %v3707_v22 }
 0x355   : > { %4518 = vmatmul.mubr.msk.bf16.vlgmr.msra.gmra.mrb[100].mxu0 %vm3287_vm5, %v5128_v37 }
 0x356   : > { %3886 = vmatpush1.bf16.msra.mxu0 %v3698_v57  ;;  %3917 = vmatprep.mubr.bf16.mxu0 %v6972_v33 }
 0x357   : > { %4519 = vmatmul.mubr.msk.bf16.vlgmr.msra.gmra.mrb[100].mxu1 %vm3287_vm5, %v5128_v37  ;;  %3967 = vmatprep.subr.bf16.mxu0 %v3713_v30 }
 0x358   : > { %3927 = vmatpush1.bf16.msra.mxu1 %v3704_v41  ;;  %3958 = vmatprep.mubr.bf16.mxu1 %v6972_v33 }
 0x359   : > { %4008 = vmatprep.subr.bf16.mxu1 %v3719_v19 }
 0x35c   : > { %v3376_v46 = vpop.f32.mrb[80].mxu0 }
 0x35d   : > { %v3378_v56 = vpop.f32.mrb[81].mxu0  ;;  %4520 = vmatmul.mubr.msk.bf16.vlgmr.msra.gmra.mrb[104].mxu0 %vm3287_vm5, %v5128_v37 }
 0x35e   : > { %v3417_v55 = vpop.f32.mrb[80].mxu1  ;;  %v3380_v50 = vpop.f32.mrb[82].mxu0  ;;  %3968 = vmatpush1.bf16.msra.mxu0 %v3710_v48  ;;  %3999 = vmatprep.mubr.bf16.mxu0 %v6972_v33  ;;  %v4140_v48 = vunpack.c.0.s8 %v4139_v21 }
 0x35f   : > { %v3419_v38 = vpop.f32.mrb[81].mxu1  ;;  %v3381_v2 = vpop.f32.mrb[83].mxu0  ;;  %4521 = vmatmul.mubr.msk.bf16.vlgmr.msra.gmra.mrb[104].mxu1 %vm3287_vm5, %v5128_v37 }
 0x360   : > { %v3421_v23 = vpop.f32.mrb[82].mxu1  ;;  %4009 = vmatpush1.bf16.msra.mxu1 %v3716_v31  ;;  %4040 = vmatprep.mubr.bf16.mxu1 %v6972_v33 }
 0x361   : > { %v3422_v32 = vpop.f32.mrb[83].mxu1  ;;  %v4142_v23 = vshrl.u32 %v4141_v24, 7 }
 0x365   : > { %4522 = vmatmul.mubr.msk.bf16.vlgmr.msra.gmra.mrb[108].mxu0 %vm3287_vm5, %v5128_v37 }
 0x367   : > { %4523 = vmatmul.mubr.msk.bf16.vlgmr.msra.gmra.mrb[108].mxu1 %vm3287_vm5, %v5128_v37 }
 0x39e   : > { %v3458_v16 = vpop.f32.mrb[84].mxu0 }
 0x39f   : > { %v3460_v52 = vpop.f32.mrb[85].mxu0  ;;  %v3499_v10 = vpop.f32.mrb[84].mxu1 }
 0x3a0   : > { %v3462_v4 = vpop.f32.mrb[86].mxu0  ;;  %v3501_v29 = vpop.f32.mrb[85].mxu1 }
 0x3a1   : > { %v3463_v49 = vpop.f32.mrb[87].mxu0  ;;  %v3503_v26 = vpop.f32.mrb[86].mxu1 }
 0x3a2   : > { %v3504_v61 = vpop.f32.mrb[87].mxu1 }
 0x3d8   : > { %v6810_v6 = vpop.f32.mrb[88].mxu0 }
 0x3d9   : > { %v6812_v27 = vpop.f32.mrb[89].mxu0 }
 0x3da   : > { %v3544_v40 = vpop.f32.mrb[90].mxu0 }
 0x3db   : > { %v6814_v47 = vpop.f32.mrb[88].mxu1  ;;  %v3545_v11 = vpop.f32.mrb[91].mxu0 }
 0x3dc   : > { %v6816_v33 = vpop.f32.mrb[89].mxu1  ;;  %v6837_v11 = vsub.s32 %v4140_v48, %v4142_v23 }
 0x3dd   : > { %v3585_v54 = vpop.f32.mrb[90].mxu1 }
 0x3de   : > { %v3586_v51 = vpop.f32.mrb[91].mxu1 }
 0x418   : > { %v6818_v35 = vpop.f32.mrb[92].mxu0 }
 0x419   : > { %v6820_v7 = vpop.f32.mrb[93].mxu0 }
 0x41a   : > { %v6822_v17 = vpop.f32.mrb[92].mxu1  ;;  %v3626_v44 = vpop.f32.mrb[94].mxu0 }
 0x41b   : > { %v6824_v14 = vpop.f32.mrb[93].mxu1  ;;  %v3627_v8 = vpop.f32.mrb[95].mxu0 }
 0x41c   : > { %v3667_v63 = vpop.f32.mrb[94].mxu1 }
 0x41d   : > { %v3668_v28 = vpop.f32.mrb[95].mxu1 }
 0x420   : > { %v3755_v18 = vpop.f32.mrb[96].mxu0 }
 0x421   : > { %v3756_v36 = vadd.f32 %v3755_v18, %v3376_v46  ;;  %v3757_v9 = vpop.f32.mrb[97].mxu0 }
 0x422   : > { %v3796_v39 = vpop.f32.mrb[96].mxu1  ;;  %v3758_v43 = vadd.f32 %v3757_v9, %v3378_v56  ;;  %v3759_v15 = vpop.f32.mrb[98].mxu0 }
 0x423   : > { %v4054_v5 = vadd.f32 %v6826_v34, %v3756_v36  ;;  %v3797_v25 = vadd.f32 %v3796_v39, %v3417_v55  ;;  %v3798_v60 = vpop.f32.mrb[97].mxu1  ;;  %v3760_v0 = vpop.f32.mrb[99].mxu0 }
 0x424   : > { %v4055_v13 = vadd.f32 %v6826_v34, %v3758_v43  ;;  %v3799_v59 = vadd.f32 %v3798_v60, %v3419_v38  ;;  %v3800_v42 = vpop.f32.mrb[98].mxu1 }
 0x425   : > { %5095 = vtanh.f32 %v4054_v5  ;;  %v4056_v20 = vadd.f32 %v6826_v34, %v3797_v25  ;;  %v3801_v12 = vpop.f32.mrb[99].mxu1 }
 0x426   : > { %5097 = vtanh.f32 %v4055_v13  ;;  %v4057_v53 = vadd.f32 %v6826_v34, %v3799_v59 }
 0x427   : > { %5099 = vtanh.f32 %v4056_v20 }
 0x428   : > { %5101 = vtanh.f32 %v4057_v53  ;;  %v3837_v62 = vpop.f32.mrb[100].mxu0 }
 0x429   : > { %v3838_v45 = vadd.f32 %v3837_v62, %v3458_v16  ;;  %v3839_v37 = vpop.f32.mrb[101].mxu0 }
 0x42a   : > { %v3878_v58 = vpop.f32.mrb[100].mxu1  ;;  %v3840_v3 = vadd.f32 %v3839_v37, %v3460_v52  ;;  %v3841_v22 = vpop.f32.mrb[102].mxu0 }
 0x42b   : > { %v4058_v57 = vadd.f32 %v6826_v34, %v3838_v45  ;;  %v3879_v30 = vadd.f32 %v3878_v58, %v3499_v10  ;;  %v3880_v41 = vpop.f32.mrb[101].mxu1  ;;  %v3842_v19 = vpop.f32.mrb[103].mxu0 }
 0x42c   : > { %v4059_v46 = vadd.f32 %v6826_v34, %v3840_v3  ;;  %v3881_v55 = vadd.f32 %v3880_v41, %v3501_v29  ;;  %v3882_v56 = vpop.f32.mrb[102].mxu1 }
 0x42d   : > { %5103 = vtanh.f32 %v4058_v57  ;;  %v4060_v38 = vadd.f32 %v6826_v34, %v3879_v30  ;;  %v3883_v50 = vpop.f32.mrb[103].mxu1 }
 0x42e   : > { %5105 = vtanh.f32 %v4059_v46  ;;  %v4061_v2 = vadd.f32 %v6826_v34, %v3881_v55 }
 0x42f   : > { %v5096_v32 = vpop.eup %5095  ;;  %5107 = vtanh.f32 %v4060_v38 }
 0x430   : > { %v5098_v31 = vpop.eup %5097  ;;  %v4086_v16 = vadd.f32 1.0, %v5096_v32  ;;  %5109 = vtanh.f32 %v4061_v2  ;;  %v3919_v52 = vpop.f32.mrb[104].mxu0 }
 0x431   : > { %v5100_v10 = vpop.eup %5099  ;;  %v4087_v4 = vadd.f32 1.0, %v5098_v31  ;;  %v3920_v29 = vadd.f32 %v3919_v52, %v6810_v6  ;;  %v3921_v49 = vpop.f32.mrb[105].mxu0 }
 0x432   : > { %v5102_v26 = vpop.eup %5101  ;;  %v4102_v61 = vmul.f32 0.5, %v4086_v16  ;;  %v4088_v40 = vadd.f32 1.0, %v5100_v10  ;;  %v3960_v54 = vpop.f32.mrb[104].mxu1  ;;  %v3922_v51 = vadd.f32 %v3921_v49, %v6812_v27 }
 0x433   : > { %v3923_v44 = vpop.f32.mrb[106].mxu0  ;;  %v4103_v8 = vmul.f32 0.5, %v4087_v4  ;;  %v4089_v63 = vadd.f32 1.0, %v5102_v26  ;;  %v4062_v28 = vadd.f32 %v6826_v34, %v3920_v29  ;;  %v3961_v18 = vadd.f32 %v3960_v54, %v6814_v47  ;;  %v3962_v36 = vpop.f32.mrb[105].mxu1 }
 0x434   : > { %v3924_v9 = vpop.f32.mrb[107].mxu0  ;;  %v4237_v39 = vsub.f32 1.0, %v4102_v61  ;;  %v4104_v6 = vmul.f32 0.5, %v4088_v40  ;;  %v4063_v43 = vadd.f32 %v6826_v34, %v3922_v51  ;;  %v3963_v15 = vadd.f32 %v3962_v36, %v6816_v33  ;;  %v3964_v5 = vpop.f32.mrb[106].mxu1 }
 0x435   : > { %v4134_v25 = vcombine.low %v4102_v61, %v4103_v8  ;;  %v4238_v60 = vsub.f32 1.0, %v4103_v8  ;;  %v4105_v0 = vmul.f32 0.5, %v4089_v63  ;;  %5111 = vtanh.f32 %v4062_v28  ;;  %v3965_v27 = vpop.f32.mrb[107].mxu1 }
 0x436   : > { %v4239_v13 = vsub.f32 1.0, %v4104_v6  ;;  %v4064_v59 = vadd.f32 %v6826_v34, %v3961_v18  ;;  %5113 = vtanh.f32 %v4063_v43  ;;  %v4065_v47 = vadd.f32 %v6826_v34, %v3963_v15 }
 0x437   : > { %v5104_v42 = vpop.eup %5103  ;;  %v6847_v20 = vrot.slane %v4134_v25, %v6837_v11  ;;  %v4269_v12 = vcombine.low %v4237_v39, %v4238_v60  ;;  %v4135_v53 = vcombine.low %v4104_v6, %v4105_v0  ;;  %v4240_v62 = vsub.f32 1.0, %v4105_v0 }
 0x438   : > { %v5106_v33 = vpop.eup %5105  ;;  %v4090_v45 = vadd.f32 1.0, %v5104_v42  ;;  %5115 = vtanh.f32 %v4064_v59  ;;  %v4001_v37 = vpop.f32.mrb[108].mxu0 }
 0x439   : > { %v5108_v1 = vpop.eup %5107  ;;  %v4279_v21 = vrot.slane %v4269_v12, %v6837_v11  ;;  %v6851_v24 = vrot.slane %v4135_v53, %v6837_v11  ;;  %v4270_v58 = vcombine.low %v4239_v13, %v4240_v62  ;;  %v4091_v3 = vadd.f32 1.0, %v5106_v33  ;;  %v4003_v22 = vpop.f32.mrb[109].mxu0 }
 0x43a   : > { %v5110_v57 = vpop.eup %5109  ;;  %v4106_v30 = vmul.f32 0.5, %v4090_v45  ;;  %v4092_v41 = vadd.f32 1.0, %v5108_v1  ;;  %5117 = vtanh.f32 %v4065_v47  ;;  %v4002_v19 = vadd.f32 %v4001_v37, %v6818_v35  ;;  %v4042_v46 = vpop.f32.mrb[108].mxu1 }
 0x43b   : > { %v4005_v55 = vpop.f32.mrb[110].mxu0  ;;  %v4166_v56 = vcombine.low %v6847_v20, %v6851_v24  ;;  %v4286_v38 = vrot.slane %v4270_v58, %v6837_v11  ;;  %v4107_v50 = vmul.f32 0.5, %v4091_v3  ;;  %v4093_v48 = vadd.f32 1.0, %v5110_v57  ;;  %v4044_v23 = vpop.f32.mrb[109].mxu1 }
 0x43c   : > { %v4006_v2 = vpop.f32.mrb[111].mxu0  ;;  %v4241_v32 = vsub.f32 1.0, %v4106_v30  ;;  %v4108_v31 = vmul.f32 0.5, %v4092_v41  ;;  %v4066_v16 = vadd.f32 %v6826_v34, %v4002_v19  ;;  %v4043_v52 = vadd.f32 %v4042_v46, %v6822_v17  ;;  %v4046_v10 = vpop.f32.mrb[110].mxu1 }
 0x43d   : > { %v4301_v4 = vcombine.low %v4279_v21, %v4286_v38  ;;  %v4136_v35 = vcombine.low %v4106_v30, %v4107_v50  ;;  %v4242_v29 = vsub.f32 1.0, %v4107_v50  ;;  %v4047_v49 = vpop.f32.mrb[111].mxu1  ;;  %v4109_v61 = vmul.f32 0.5, %v4093_v48 }
 0x43e   : > { %v4243_v26 = vsub.f32 1.0, %v4108_v31  ;;  %5119 = vtanh.f32 %v4066_v16  ;;  %v4068_v40 = vadd.f32 %v6826_v34, %v4043_v52  ;;  %v4004_v8 = vadd.f32 %v4003_v22, %v6820_v7 }
 0x43f   : > { %v5112_v54 = vpop.eup %5111  ;;  %v4158_v51 = vrot.slane %v4136_v35, %v6837_v11  ;;  %v4271_v44 = vcombine.low %v4241_v32, %v4242_v29  ;;  %v4045_v63 = vadd.f32 %v4044_v23, %v6824_v14  ;;  %v4137_v28 = vcombine.low %v4108_v31, %v4109_v61 }
 0x440   : > { %v5114_v17 = vpop.eup %5113  ;;  %v4244_v18 = vsub.f32 1.0, %v4109_v61  ;;  %v4094_v36 = vadd.f32 1.0, %v5112_v54  ;;  %5121 = vtanh.f32 %v4068_v40  ;;  %v4067_v39 = vadd.f32 %v6826_v34, %v4004_v8 }
 0x441   : > { %v4095_v9 = vadd.f32 1.0, %v5114_v17  ;;  %v4069_v6 = vadd.f32 %v6826_v34, %v4045_v63  ;;  %v4293_v15 = vrot.slane %v4271_v44, %v6837_v11  ;;  %v4165_v5 = vrot.slane %v4137_v28, %v6837_v11 }
 0x442   : > { %v5116_v43 = vpop.eup %5115  ;;  %v4272_v7 = vcombine.low %v4243_v26, %v4244_v18  ;;  %v4110_v25 = vmul.f32 0.5, %v4094_v36  ;;  %5123 = vtanh.f32 %v4067_v39  ;;  %v4174_v12 = vrot.slane %v4166_v56, %v6837_v11 }
 0x443   : > { %v4096_v14 = vadd.f32 1.0, %v5116_v43  ;;  %v4111_v60 = vmul.f32 0.5, %v4095_v9  ;;  %v4167_v27 = vcombine.low %v4158_v51, %v4165_v5  ;;  %5125 = vtanh.f32 %v4069_v6 }
 0x444   : > { %v5118_v0 = vpop.eup %5117  ;;  %v4300_v13 = vrot.slane %v4272_v7, %v6837_v11  ;;  %v4245_v59 = vsub.f32 1.0, %v4110_v25  ;;  %v4309_v24 = vrot.slane %v4301_v4, %v6837_v11 }
 0x445   : > { %v4112_v34 = vmul.f32 0.5, %v4096_v14  ;;  %v4183_v47 = vcombine.low %v4110_v25, %v4111_v60  ;;  %v4246_v42 = vsub.f32 1.0, %v4111_v60  ;;  %v4097_v20 = vadd.f32 1.0, %v5118_v0 }
 0x446   : > { %v4181_v53 = vrot.slane %v4167_v27, %v6837_v11  ;;  %v4302_v62 = vcombine.low %v4293_v15, %v4300_v13 }
 0x447   : > { %v4247_v33 = vsub.f32 1.0, %v4112_v34  ;;  %v4318_v45 = vcombine.low %v4245_v59, %v4246_v42  ;;  %v4113_v37 = vmul.f32 0.5, %v4097_v20  ;;  %v4193_v3 = vrot.slane %v4183_v47, %v6837_v11 }
 0x448   : > { %v5120_v1 = vpop.eup %5119  ;;  %v4182_v21 = vcombine.low %v4174_v12, %v4181_v53  ;;  %v4316_v58 = vrot.slane %v4302_v62, %v6837_v11 }
 0x449   : > { %v4184_v22 = vcombine.low %v4112_v34, %v4113_v37  ;;  %v4248_v57 = vsub.f32 1.0, %v4113_v37  ;;  %v4098_v30 = vadd.f32 1.0, %v5120_v1  ;;  %v4328_v46 = vrot.slane %v4318_v45, %v6837_v11 }
 0x44a   : > { %v5122_v41 = vpop.eup %5121  ;;  %4234 = vst [vmem:[%s6876_s10] ss:$2 sm:$0xff] %v4182_v21  ;;  %v4317_v19 = vcombine.low %v4309_v24, %v4316_v58 }
 0x44b   : > { %v4200_v55 = vrot.slane %v4184_v22, %v6837_v11  ;;  %v4319_v56 = vcombine.low %v4247_v33, %v4248_v57  ;;  %v4100_v38 = vadd.f32 1.0, %v5122_v41  ;;  %v4114_v50 = vmul.f32 0.5, %v4098_v30 }
 0x44c   : > { %4525 = vst [vmem:[%s6876_s10 + $0x1] ss:$2 sm:$0xff] %v4317_v19  ;;  %v5124_v48 = vpop.eup %5123 }
 0x44d   : > { %v4215_v23 = vcombine.low %v4193_v3, %v4200_v55  ;;  %v4335_v2 = vrot.slane %v4319_v56, %v6837_v11  ;;  %v4116_v32 = vmul.f32 0.5, %v4100_v38  ;;  %v5126_v31 = vpop.eup %5125  ;;  %v4099_v16 = vadd.f32 1.0, %v5124_v48 }
 0x44e   : > { %v4101_v10 = vadd.f32 1.0, %v5126_v31  ;;  %v4249_v4 = vsub.f32 1.0, %v4114_v50 }
 0x44f   : > { %v4350_v52 = vcombine.low %v4328_v46, %v4335_v2  ;;  %v4115_v35 = vmul.f32 0.5, %v4099_v16  ;;  %v4251_v29 = vsub.f32 1.0, %v4116_v32  ;;  %v4223_v36 = vrot.slane %v4215_v23, %v6837_v11 }
 0x450   : > { %v4117_v49 = vmul.f32 0.5, %v4101_v10 }
 0x451   : > { %v4185_v26 = vcombine.low %v4114_v50, %v4115_v35  ;;  %v4250_v61 = vsub.f32 1.0, %v4115_v35  ;;  %v4358_v43 = vrot.slane %v4350_v52, %v6837_v11 }
 0x452   : > { %v4186_v40 = vcombine.low %v4116_v32, %v4117_v49  ;;  %v4252_v54 = vsub.f32 1.0, %v4117_v49 }
 0x453   : > { %v4207_v51 = vrot.slane %v4185_v26, %v6837_v11  ;;  %v4320_v44 = vcombine.low %v4249_v4, %v4250_v61 }
 0x454   : > { %v4214_v8 = vrot.slane %v4186_v40, %v6837_v11  ;;  %v4321_v63 = vcombine.low %v4251_v29, %v4252_v54 }
 0x455   : > { %v4342_v17 = vrot.slane %v4320_v44, %v6837_v11 }
 0x456   : > { %v4216_v28 = vcombine.low %v4207_v51, %v4214_v8  ;;  %v4349_v18 = vrot.slane %v4321_v63, %v6837_v11 }
 0x458   : > { %v4230_v9 = vrot.slane %v4216_v28, %v6837_v11  ;;  %v4351_v39 = vcombine.low %v4342_v17, %v4349_v18 }
 0x45a   : > { %v4231_v6 = vcombine.low %v4223_v36, %v4230_v9  ;;  %v4365_v15 = vrot.slane %v4351_v39, %v6837_v11 }
 0x45c   : > { %4524 = vst [vmem:[%s6876_s10 + $0x10] ss:$2 sm:$0xff] %v4231_v6  ;;  %v4366_v5 = vcombine.low %v4358_v43, %v4365_v15 }
 0x45e   : > { %4526 = vst [vmem:[%s6876_s10 + $0x11] ss:$2 sm:$0xff] %v4366_v5 }
 0x45f   : > { %5142 = shalt.err (!%p5139_p3)
}
 0x460   : > { %s5143_s29 = scalar_lea.hbm %s6897_s24, 512  ;;  %s5147_s5 = scalar_lea.hbm %s6945_s3, 2048 }
 0x461   : > { %p5144_p4 = scmp.ne.s32.totalorder %s6897_s24, %s5143_s29  ;;  %p5148_p9 = scmp.lt.u32.totalorder %s6897_s24, %s6945_s3 }
 0x462   : > { %p5149_p10 = scmp.lt.u32.totalorder %s5147_s5, %s5143_s29  ;;  %p5151_p12 = scmp.lt.u32.totalorder %s5143_s29, %s6897_s24 }
 0x463   : > { %p5145_p7 = pnand %p5144_p4, %p5255_p5 }
 0x464   : > { %p5150_p11 = por %p5149_p10, %p5148_p9 }
 0x465   : > { %p5146_p8 = pneg %p5145_p7 }
 0x466   : > { %p5152_p13 = por %p5151_p12, %p5150_p11 }
 0x468   : > { %p5153_p0 = pnand %p5152_p13, %p5146_p8 }
 0x46a   : > { %5156 = shalt.err (!%p5153_p0)
}
 0x46b   : > { %4757 = dma.vmem_to_hbm [thread:$0]  (%p5255_p5), %s6899_s17, 512, %s6897_s24, %s4374_s16  }
 0x46c PF: > { %p4763_p1 = scmp.ge.s32.totalorder %s5191_s15, 2  ;;  %s4400_s8 = sand.u32 1, %s5179_s12  }
 0x46d   : > { %s4401_s9 = scalar_lea.sflag [#allocation3], %s4400_s8 }
 0x46e   : > { %p4760_p2 = pnand %p4763_p1, %p5259_p6 }
 0x470   : > { %5174 = dma.done.wait (!%p4760_p2), %s4401_s9, 512  }
 0x471   : > { %5176 = vsyncadd (!%p4760_p2), %s4401_s9, 4294966784  ;;  %p13_p3 = scmp.ge.s32.totalorder %s5242_s18, 6   ;;  %s6992_s12 = smov %s5183_s13 }
 0x472   : > { %s6993_s13 = smov %s5187_s14  ;;  %s6994_s14 = smov %s5253_s21 }
 0x473   : > { %s6995_s15 = smov %s5242_s18  ;;  %15 = sbr.rel (!%p13_p3) target bundleno = 3 (0x3), region = 70 }
 0x47a   :  { %4406 = vsyncpa [#allocation3], 1 }
 0x47b   :  { %4408 = vsyncpa [#allocation3 + $0x1], 1 }

</bundles_post_ra>
